<compile_context>
chip_gen: v7x
topology: tpu7x:2x2x1
jax: 0.10.0
libtpu: 0.0.40
codegen_flags: <defaults>
</compile_context>

<pallas_src>
import functools

import jax
import jax.numpy as jnp
from jax.experimental import pallas as pl
from jax.experimental.pallas import tpu as pltpu

_BN_EPS = 1e-5
_LANE = 128


def _round_up(x, m):
    return ((x + m - 1) // m) * m


# ----------------------------- Pallas kernel --------------------------------
# Fused [Conv(3x3,pad=1) + folded-BN + ReLU] x 2 on one row tile.
#   xp_hbm : (N, H+4, Wpad, Cin_p) bf16 in HBM (2 zero halo rows/cols per side)
#   w1_ref : (3, 3*Cin_p,  Cout_p) bf16  (dy, [dx,cin] concatenated along K)
#   b1_ref : (1, Cout_p)           f32   folded BN shift, layer 1
#   w2_ref : (3, 3*Cout_p, Cout_p) bf16
#   b2_ref : (1, Cout_p)           f32   folded BN shift, layer 2
#   o_ref  : (1, th, W, Cout_p)    bf16  output row tile (lane-dense)
def _convblock_kernel(xp_hbm, w1_ref, b1_ref, w2_ref, b2_ref, o_ref, xbuf, sem,
                      *, h, w, th, whp, tiles_per_group):
    n = pl.program_id(0)              # batch element           ("parallel")
    g = pl.program_id(1)              # row-tile group          ("parallel")
    t = pl.program_id(2)              # row tile within group   ("arbitrary")
    i = g * tiles_per_group + t       # global row-tile index

    cin_p = xbuf.shape[3]
    cout_p = o_ref.shape[3]
    h1r = th + 2                      # layer-1 extended rows (1-row halo/side)

    def fetch(row_tile, slot):
        pltpu.make_async_copy(
            xp_hbm.at[n, pl.ds(row_tile * th, th + 4)],   # th rows + 2-row halo/side
            xbuf.at[slot],
            sem.at[slot],
        ).start()

    # Prologue: prime the double buffer at the start of each (batch, group)
    # run.  Megacore-safe: every core primes its own runs at t == 0.
    @pl.when(t == 0)
    def _():
        fetch(i, 0)

    slot = t % 2

    # Prefetch the next row tile of the SAME (batch, group) run.
    @pl.when(t + 1 < tiles_per_group)
    def _():
        fetch(i + 1, 1 - slot)

    # Wait for this tile (descriptor matches the copy that filled `slot`).
    pltpu.make_async_copy(
        xp_hbm.at[n, pl.ds(i * th, th + 4)],
        xbuf.at[slot],
        sem.at[slot],
    ).wait()

    x_tile = xbuf[slot]               # (th+4, Wpad, cin_p) bf16, zero spatial halo

    # -------- layer 1 over the extended (th+2) x whp window ------------------
    # dx-shifted slices built once, concatenated along K: one MXU matmul per dy.
    c1 = jnp.concatenate([x_tile[:, dx:dx + whp, :] for dx in range(3)], axis=-1)

    def l1_dot(dy):
        m = c1[dy:dy + h1r].reshape(h1r * whp, 3 * cin_p)
        return jnp.dot(m, w1_ref[dy], preferred_element_type=jnp.float32)

    acc1 = l1_dot(0)
    acc1 = acc1 + l1_dot(1)
    acc1 = acc1 + l1_dot(2)
    h1 = jnp.maximum(acc1 + b1_ref[...], 0.0).reshape(h1r, whp, cout_p)

    # Zero the halo ring: positions outside the image must be exactly 0 so the
    # in-VMEM layer-2 stencil reproduces Conv2d(padding=1) semantics.
    ry = jax.lax.broadcasted_iota(jnp.int32, (h1r, whp, cout_p), 0) + (i * th - 1)
    rx = jax.lax.broadcasted_iota(jnp.int32, (h1r, whp, cout_p), 1)
    valid = (ry >= 0) & (ry < h) & (rx >= 1) & (rx <= w)
    h1 = jnp.where(valid, h1, 0.0).astype(jnp.bfloat16)

    # -------- layer 2: final th x w rows of this tile -------------------------
    c2 = jnp.concatenate([h1[:, dx:dx + w, :] for dx in range(3)], axis=-1)

    def l2_dot(dy):
        m = c2[dy:dy + th].reshape(th * w, 3 * cout_p)
        return jnp.dot(m, w2_ref[dy], preferred_element_type=jnp.float32)

    acc2 = l2_dot(0)
    acc2 = acc2 + l2_dot(1)
    acc2 = acc2 + l2_dot(2)
    y = jnp.maximum(acc2 + b2_ref[...], 0.0)                  # BN shift + ReLU
    o_ref[0] = y.reshape(th, w, cout_p).astype(o_ref.dtype)


# ----------------------------- tiling / budget -------------------------------

def _vmem_capacity_bytes():
    try:
        return int(pltpu.get_tpu_info().vmem_capacity_bytes)
    except Exception:                                  # pragma: no cover
        return 64 << 20                                # conservative (v7x)


def _tile_vmem_bytes(th, w, wpad, whp, cin_p, cout_p):
    """Conservative VMEM working-set estimate for one fused row tile."""
    m1 = (th + 2) * whp                      # layer-1 extended positions
    m2 = th * w                              # final output positions
    b = 0
    b += 2 * (th + 4) * wpad * cin_p * 2     # input double buffer (bf16)
    b += 2 * m2 * cout_p * 2                 # output double buffer (bf16)
    b += 2 * 9 * cin_p * cout_p * 2          # w1 (pipeline double-buffers it)
    b += 2 * 9 * cout_p * cout_p * 2         # w2
    b += (th + 4) * whp * 3 * cin_p * 2      # layer-1 dx-concat (bf16)
    b += m1 * cout_p * (4 + 2)               # layer-1 f32 acc + bf16 h1
    b += (th + 2) * w * 3 * cout_p * 2       # layer-2 dx-concat (bf16)
    b += m2 * cout_p * (4 + 4)               # layer-2 acc + epilogue temps
    return int(b * 1.15)                     # headroom for relayout temps


def _pick_tiling(n, h, w, wpad, whp, cin_p, cout_p, budget, max_m=32768):
    divisors = [t for t in range(1, h + 1) if h % t == 0]
    feasible = [t for t in divisors
                if t * w <= max_m
                and _tile_vmem_bytes(t, w, wpad, whp, cin_p, cout_p) <= budget]
    if not feasible:
        feasible = [1]
    th = max(feasible)
    if n == 1:
        # Prefer an even tile count so the group axis can feed both v7x cores.
        even = [t for t in feasible if (h // t) % 2 == 0]
        if even:
            th = max(even)
    n_tiles = h // th
    groups = 2 if (n == 1 and n_tiles % 2 == 0) else 1
    return th, groups


# ----------------------------- wrapper ---------------------------------------

def convblock_fused(x, w1_k, b1_k, w2_k, b2_k):
    """Fused [Conv3x3+BN+ReLU] x 2 on NHWC bf16 lane-padded activations.

    x : (N, H, W, Cin_p) bf16, channels zero-padded to a multiple of 128.
    Returns (N, H, W, Cout_p) bf16.
    """
    n, h, w, cin_p = x.shape
    cout_p = w1_k.shape[-1]
    whp = _round_up(w + 2, 8)            # layer-1 extended output width
    wpad = _round_up(whp + 2, 8)         # padded-input width (>= W + 4)

    # Single XLA-side spatial pad (2 halo rows/cols per side for the fused
    # two-layer 3x3 stencil); fused with the NCHW->NHWC transpose + cast.
    xp = jnp.pad(x, ((0, 0), (2, 2), (2, wpad - w - 2), (0, 0)))

    cap = _vmem_capacity_bytes()
    budget = int(cap * 0.65)             # 128 MiB parts get ~2x the v7x budget
    th, groups = _pick_tiling(n, h, w, wpad, whp, cin_p, cout_p, budget)
    tiles_per_group = (h // th) // groups

    kernel = functools.partial(_convblock_kernel, h=h, w=w, th=th, whp=whp,
                               tiles_per_group=tiles_per_group)

    flops = 2 * n * h * w * 9 * (cin_p + cout_p) * cout_p
    bytes_accessed = (xp.size * 2 + w1_k.size * 2 + w2_k.size * 2
                      + (b1_k.size + b2_k.size) * 4 + n * h * w * cout_p * 2)

    return pl.pallas_call(
        kernel,
        out_shape=jax.ShapeDtypeStruct((n, h, w, cout_p), jnp.bfloat16),
        grid_spec=pltpu.PrefetchScalarGridSpec(
            num_scalar_prefetch=0,
            grid=(n, groups, tiles_per_group),
            in_specs=[
                pl.BlockSpec(memory_space=pl.ANY),                 # xp in HBM
                pl.BlockSpec((3, 3 * cin_p, cout_p), lambda b, g, t: (0, 0, 0)),
                pl.BlockSpec((1, cout_p), lambda b, g, t: (0, 0)),
                pl.BlockSpec((3, 3 * cout_p, cout_p), lambda b, g, t: (0, 0, 0)),
                pl.BlockSpec((1, cout_p), lambda b, g, t: (0, 0)),
            ],
            out_specs=pl.BlockSpec(
                (1, th, w, cout_p),
                lambda b, g, t: (b, g * tiles_per_group + t, 0, 0)),
            scratch_shapes=[
                pltpu.VMEM((2, th + 4, wpad, cin_p), jnp.bfloat16),  # halo tiles
                pltpu.SemaphoreType.DMA((2,)),
            ],
        ),
        compiler_params=pltpu.CompilerParams(
            dimension_semantics=("parallel", "parallel", "arbitrary"),
            vmem_limit_bytes=min(int(cap * 0.85), cap - (4 << 20))),
        cost_estimate=pl.CostEstimate(
            flops=int(flops), transcendentals=0,
            bytes_accessed=int(bytes_accessed)),
    )(xp, w1_k, b1_k, w2_k, b2_k)


# ------------------------------ parameters -----------------------------------

def _fold_bn(kg, kb, km, kv, c):
    gamma = 1.0 + 0.1 * jax.random.normal(kg, (c,), jnp.float32)
    beta = 0.1 * jax.random.normal(kb, (c,), jnp.float32)
    mean = 0.1 * jax.random.normal(km, (c,), jnp.float32)
    var = jax.random.uniform(kv, (c,), jnp.float32, minval=0.5, maxval=1.5)
    scale = gamma / jnp.sqrt(var + _BN_EPS)
    shift = beta - mean * scale
    return scale, shift


def _prep_weight(w_oihw, scale, cin_p, cout_p):
    """(O, I, 3, 3) f32 -> (3, 3*Cin_p, Cout_p) bf16, BN scale folded into O.

    The K axis of each dy slice is ordered (dx, cin) to match the in-kernel
    dx-concatenation."""
    o, i = w_oihw.shape[0], w_oihw.shape[1]
    wf = w_oihw * scale[:, None, None, None]
    wf = jnp.transpose(wf, (2, 3, 1, 0))                  # (ky, kx, I, O)
    wf = jnp.pad(wf, ((0, 0), (0, 0), (0, cin_p - i), (0, cout_p - o)))
    return wf.reshape(3, 3 * cin_p, cout_p).astype(jnp.bfloat16)


def _prep_shift(shift, cout_p):
    return jnp.pad(shift, (0, cout_p - shift.shape[0])
                   ).reshape(1, cout_p).astype(jnp.float32)


# -------------------------------- ConvBlock ----------------------------------

class ConvBlock:
    """JAX/Pallas port of models/unet.py::ConvBlock (BatchNorm in eval mode)."""
    # TODO(synk): training-mode BatchNorm (batch statistics) is not implemented;
    # running stats are folded into the conv weights/shift (inference semantics).

    def __init__(self, in_channels, out_channels, resize=None, *, key):
        self.resize = resize
        self.in_channels = in_channels
        self.out_channels = out_channels
        self.cin_p = _round_up(in_channels, _LANE)
        self.cout_p = _round_up(out_channels, _LANE)

        ks = jax.random.split(key, 10)
        self.w1 = 0.1 * jax.random.normal(
            ks[0], (out_channels, in_channels, 3, 3), jnp.float32)
        self.s1, self.sh1 = _fold_bn(ks[1], ks[2], ks[3], ks[4], out_channels)
        self.w2 = 0.1 * jax.random.normal(
            ks[5], (out_channels, out_channels, 3, 3), jnp.float32)
        self.s2, self.sh2 = _fold_bn(ks[6], ks[7], ks[8], ks[9], out_channels)

        # Kernel-ready params: bf16 scale-folded weights, lane-padded channels,
        # taps concatenated along K per dy.
        self.w1_k = _prep_weight(self.w1, self.s1, self.cin_p, self.cout_p)
        self.b1_k = _prep_shift(self.sh1, self.cout_p)
        self.w2_k = _prep_weight(self.w2, self.s2, self.cout_p, self.cout_p)
        self.b2_k = _prep_shift(self.sh2, self.cout_p)

    def __call__(self, x1, x2=None):
        # x1 (and x2) are NCHW float32, like the PyTorch module.
        if self.resize == "down":
            x1 = jax.lax.reduce_window(x1, -jnp.inf, jax.lax.max,
                                       (1, 1, 2, 2), (1, 1, 2, 2), "VALID")
        if self.resize == "up":
            n, c, h, w = x1.shape
            # nn.Upsample(scale_factor=2, mode='bilinear', align_corners=False)
            x1 = jax.image.resize(x1, (n, c, 2 * h, 2 * w),
                                  method="bilinear", antialias=False)
            diff_y = x2.shape[2] - x1.shape[2]
            diff_x = x2.shape[3] - x1.shape[3]
            x1 = jnp.pad(x1, ((0, 0), (0, 0),
                              (diff_y // 2, diff_y - diff_y // 2),
                              (diff_x // 2, diff_x - diff_x // 2)))
            x1 = jnp.concatenate([x1, x2], axis=1)

        n, c, h, w = x1.shape
        # Single NCHW -> NHWC transpose + channel pad + bf16 cast at the module
        # boundary; both conv layers then run fused inside one pallas_call.
        x = jnp.transpose(x1, (0, 2, 3, 1))
        x = jnp.pad(x, ((0, 0), (0, 0), (0, 0), (0, self.cin_p - c)))
        x = x.astype(jnp.bfloat16)
        y = convblock_fused(x, self.w1_k, self.b1_k, self.w2_k, self.b2_k)
        y = y[..., :self.out_channels].astype(jnp.float32)
        return jnp.transpose(y, (0, 3, 1, 2))


# ------------------------------ references -----------------------------------

def _ref_forward_bf16(block, x_nchw):
    """Independent XLA-conv reference with the SAME numerics as the Pallas
    pipeline (bf16 operands, f32 accumulation, bf16 intermediate)."""
    x = jnp.transpose(x_nchw, (0, 2, 3, 1))
    x = jnp.pad(x, ((0, 0), (0, 0), (0, 0), (0, block.cin_p - x.shape[-1])))
    x = x.astype(jnp.bfloat16)

    def layer(hin, wk, shift):
        cin_p, cout_p = wk.shape[1] // 3, wk.shape[2]
        w_hwio = wk.reshape(3, 3, cin_p, cout_p)
        y = jax.lax.conv_general_dilated(
            hin, w_hwio, (1, 1), ((1, 1), (1, 1)),
            dimension_numbers=("NHWC", "HWIO", "NHWC"),
            preferred_element_type=jnp.float32)
        return jnp.maximum(y + shift.reshape(1, 1, 1, -1), 0.0).astype(jnp.bfloat16)

    y = layer(x, block.w1_k, block.b1_k)
    y = layer(y, block.w2_k, block.b2_k)
    y = y[..., :block.out_channels].astype(jnp.float32)
    return jnp.transpose(y, (0, 3, 1, 2))


def _ref_forward_f32(block, x_nchw):
    """Full-precision reference (original module semantics, eval-mode BN)."""
    def layer(hin, wk, s, b):
        y = jax.lax.conv_general_dilated(
            hin, wk, (1, 1), ((1, 1), (1, 1)),
            dimension_numbers=("NCHW", "OIHW", "NCHW"))
        y = y * s[None, :, None, None] + b[None, :, None, None]
        return jnp.maximum(y, 0.0)
    y = layer(x_nchw, block.w1, block.s1, block.sh1)
    return layer(y, block.w2, block.s2, block.sh2)


if __name__ == "__main__":
    key = jax.random.PRNGKey(0)
    kx, kp = jax.random.split(key)
    x = jax.random.normal(kx, (2, 4, 16, 16), jnp.float32)    # NCHW, like PyTorch

    block = ConvBlock(in_channels=4, out_channels=8, resize=None, key=kp)
    fwd = jax.jit(lambda a: block(a))
    out = jax.block_until_ready(fwd(x))
    assert out.shape == (2, 8, 16, 16), out.shape

    # Tight check vs. a reference with identical bf16/f32 numerics.
    ref_b = jax.block_until_ready(_ref_forward_bf16(block, x))
    err_b = float(jnp.max(jnp.abs(out - ref_b)))
    assert jnp.allclose(out, ref_b, atol=2e-2, rtol=2e-2), err_b

    # Loose sanity check vs. the full-f32 reference (bf16 MXU inputs by design).
    ref_f = jax.block_until_ready(_ref_forward_f32(block, x))
    err_f = float(jnp.max(jnp.abs(out - ref_f)))
    assert jnp.allclose(out, ref_f, atol=2.5e-1, rtol=2.5e-1), err_f

    print("KERNEL_OK")
</pallas_src>

<mosaic_0001>
module attributes {stable_mosaic.version = 11 : i64} {
  func.func @_convblock_kernel(%arg0: i32, %arg1: i32, %arg2: i32, %arg3: memref<2x20x32x128xbf16, #tpu.memory_space<any>>, %arg4: memref<3x384x128xbf16, #tpu.memory_space<vmem>>, %arg5: memref<1x128xf32, #tpu.memory_space<vmem>>, %arg6: memref<3x384x128xbf16, #tpu.memory_space<vmem>>, %arg7: memref<1x128xf32, #tpu.memory_space<vmem>>, %arg8: memref<1x16x16x128xbf16, #tpu.memory_space<vmem>>, %arg9: memref<2x20x32x128xbf16, #tpu.memory_space<vmem>>, %arg10: memref<2x!tpu.dma_semaphore, #tpu.memory_space<semaphore_mem>>) attributes {dimension_semantics = [#tpu.dimension_semantics<parallel>, #tpu.dimension_semantics<parallel>, #tpu.dimension_semantics<arbitrary>], iteration_bounds = array<i64: 2, 1, 1>, scalar_prefetch = 0 : i64, scratch_operands = 2 : i64, tpu.core_type = #tpu.core_type<tc>, window_params = [{}, {pipeline_mode = #tpu.pipeline_mode<synchronous>, transform_indices = @transform_1, window_bounds = array<i64: 3, 384, 128>}, {pipeline_mode = #tpu.pipeline_mode<synchronous>, transform_indices = @transform_2, window_bounds = array<i64: 1, 128>}, {pipeline_mode = #tpu.pipeline_mode<synchronous>, transform_indices = @transform_3, window_bounds = array<i64: 3, 384, 128>}, {pipeline_mode = #tpu.pipeline_mode<synchronous>, transform_indices = @transform_4, window_bounds = array<i64: 1, 128>}, {transform_indices = @transform_5, window_bounds = array<i64: 1, 16, 16, 128>}]} {
    %c1_i32 = arith.constant 1 : i32
    %0 = arith.muli %arg1, %c1_i32 : i32
    %1 = arith.addi %0, %arg2 : i32
    %c0_i32 = arith.constant 0 : i32
    %2 = arith.cmpi eq, %arg2, %c0_i32 : i32
    %3 = arith.extui %2 : i1 to i32
    %c0_i32_0 = arith.constant 0 : i32
    %4 = arith.cmpi ne, %3, %c0_i32_0 : i32
    scf.if %4 {
      %c16_i32_54 = arith.constant 16 : i32
      %107 = arith.muli %1, %c16_i32_54 : i32
      %c0_i32_55 = arith.constant 0 : i32
      %c0_i32_56 = arith.constant 0 : i32
      %c0_i32_57 = arith.constant 0 : i32
      %c0_i32_58 = arith.constant 0 : i32
      %108 = tpu.memref_slice %arg3[%arg0, %107, %c0_i32_57, %c0_i32_58] : memref<2x20x32x128xbf16, #tpu.memory_space<any>> -> memref<1x20x32x128xbf16, #tpu.memory_space<any>>
      %109 = tpu.memref_squeeze %108 : memref<1x20x32x128xbf16, #tpu.memory_space<any>> -> memref<20x32x128xbf16, #tpu.memory_space<any>>
      %c0_i32_59 = arith.constant 0 : i32
      %c0_i32_60 = arith.constant 0 : i32
      %c0_i32_61 = arith.constant 0 : i32
      %110 = tpu.memref_slice %arg9[%c0_i32_55, %c0_i32_59, %c0_i32_60, %c0_i32_61] : memref<2x20x32x128xbf16, #tpu.memory_space<vmem>> -> memref<1x20x32x128xbf16, #tpu.memory_space<vmem>>
      %111 = tpu.memref_squeeze %110 : memref<1x20x32x128xbf16, #tpu.memory_space<vmem>> -> memref<20x32x128xbf16, #tpu.memory_space<vmem>>
      %112 = tpu.memref_slice %arg10[%c0_i32_56] : memref<2x!tpu.dma_semaphore, #tpu.memory_space<semaphore_mem>> -> memref<1x!tpu.dma_semaphore, #tpu.memory_space<semaphore_mem>>
      %113 = tpu.memref_squeeze %112 : memref<1x!tpu.dma_semaphore, #tpu.memory_space<semaphore_mem>> -> memref<!tpu.dma_semaphore, #tpu.memory_space<semaphore_mem>>
      tpu.enqueue_dma source(%109 : memref<20x32x128xbf16, #tpu.memory_space<any>>) target(%111 : memref<20x32x128xbf16, #tpu.memory_space<vmem>>) target_semaphore(%113 : memref<!tpu.dma_semaphore, #tpu.memory_space<semaphore_mem>>)
    } else {
    }
    %c2_i32 = arith.constant 2 : i32
    %c0_i32_1 = arith.constant 0 : i32
    %5 = arith.cmpi eq, %c2_i32, %c0_i32_1 : i32
    %c1_i32_2 = arith.constant 1 : i32
    %6 = arith.select %5, %c1_i32_2, %c2_i32 : i32
    %7 = arith.remsi %arg2, %6 : i32
    %c0_i32_3 = arith.constant 0 : i32
    %8 = arith.cmpi ne, %7, %c0_i32_3 : i32
    %c0_i32_4 = arith.constant 0 : i32
    %9 = arith.cmpi slt, %7, %c0_i32_4 : i32
    %c0_i32_5 = arith.constant 0 : i32
    %10 = arith.cmpi slt, %6, %c0_i32_5 : i32
    %11 = arith.xori %9, %10 : i1
    %12 = arith.andi %11, %8 : i1
    %13 = arith.addi %7, %6 : i32
    %14 = arith.select %12, %13, %7 : i32
    %c1_i32_6 = arith.constant 1 : i32
    %15 = arith.addi %arg2, %c1_i32_6 : i32
    %c1_i32_7 = arith.constant 1 : i32
    %16 = arith.cmpi slt, %15, %c1_i32_7 : i32
    %17 = arith.extui %16 : i1 to i32
    %c0_i32_8 = arith.constant 0 : i32
    %18 = arith.cmpi ne, %17, %c0_i32_8 : i32
    scf.if %18 {
      %c1_i32_54 = arith.constant 1 : i32
      %107 = arith.addi %1, %c1_i32_54 : i32
      %c1_i32_55 = arith.constant 1 : i32
      %108 = arith.subi %c1_i32_55, %14 : i32
      %c16_i32_56 = arith.constant 16 : i32
      %109 = arith.muli %107, %c16_i32_56 : i32
      %c0_i32_57 = arith.constant 0 : i32
      %c0_i32_58 = arith.constant 0 : i32
      %110 = tpu.memref_slice %arg3[%arg0, %109, %c0_i32_57, %c0_i32_58] : memref<2x20x32x128xbf16, #tpu.memory_space<any>> -> memref<1x20x32x128xbf16, #tpu.memory_space<any>>
      %111 = tpu.memref_squeeze %110 : memref<1x20x32x128xbf16, #tpu.memory_space<any>> -> memref<20x32x128xbf16, #tpu.memory_space<any>>
      %c0_i32_59 = arith.constant 0 : i32
      %c0_i32_60 = arith.constant 0 : i32
      %c0_i32_61 = arith.constant 0 : i32
      %112 = tpu.memref_slice %arg9[%108, %c0_i32_59, %c0_i32_60, %c0_i32_61] : memref<2x20x32x128xbf16, #tpu.memory_space<vmem>> -> memref<1x20x32x128xbf16, #tpu.memory_space<vmem>>
      %113 = tpu.memref_squeeze %112 : memref<1x20x32x128xbf16, #tpu.memory_space<vmem>> -> memref<20x32x128xbf16, #tpu.memory_space<vmem>>
      %114 = tpu.memref_slice %arg10[%108] : memref<2x!tpu.dma_semaphore, #tpu.memory_space<semaphore_mem>> -> memref<1x!tpu.dma_semaphore, #tpu.memory_space<semaphore_mem>>
      %115 = tpu.memref_squeeze %114 : memref<1x!tpu.dma_semaphore, #tpu.memory_space<semaphore_mem>> -> memref<!tpu.dma_semaphore, #tpu.memory_space<semaphore_mem>>
      tpu.enqueue_dma source(%111 : memref<20x32x128xbf16, #tpu.memory_space<any>>) target(%113 : memref<20x32x128xbf16, #tpu.memory_space<vmem>>) target_semaphore(%115 : memref<!tpu.dma_semaphore, #tpu.memory_space<semaphore_mem>>)
    } else {
    }
    %c16_i32 = arith.constant 16 : i32
    %19 = arith.muli %1, %c16_i32 : i32
    %c0_i32_9 = arith.constant 0 : i32
    %c0_i32_10 = arith.constant 0 : i32
    %20 = tpu.memref_slice %arg3[%arg0, %19, %c0_i32_9, %c0_i32_10] : memref<2x20x32x128xbf16, #tpu.memory_space<any>> -> memref<1x20x32x128xbf16, #tpu.memory_space<any>>
    %21 = tpu.memref_squeeze %20 : memref<1x20x32x128xbf16, #tpu.memory_space<any>> -> memref<20x32x128xbf16, #tpu.memory_space<any>>
    %c0_i32_11 = arith.constant 0 : i32
    %c0_i32_12 = arith.constant 0 : i32
    %c0_i32_13 = arith.constant 0 : i32
    %22 = tpu.memref_slice %arg9[%14, %c0_i32_11, %c0_i32_12, %c0_i32_13] : memref<2x20x32x128xbf16, #tpu.memory_space<vmem>> -> memref<1x20x32x128xbf16, #tpu.memory_space<vmem>>
    %23 = tpu.memref_squeeze %22 : memref<1x20x32x128xbf16, #tpu.memory_space<vmem>> -> memref<20x32x128xbf16, #tpu.memory_space<vmem>>
    %24 = tpu.memref_slice %arg10[%14] : memref<2x!tpu.dma_semaphore, #tpu.memory_space<semaphore_mem>> -> memref<1x!tpu.dma_semaphore, #tpu.memory_space<semaphore_mem>>
    %25 = tpu.memref_squeeze %24 : memref<1x!tpu.dma_semaphore, #tpu.memory_space<semaphore_mem>> -> memref<!tpu.dma_semaphore, #tpu.memory_space<semaphore_mem>>
    tpu.wait_dma2 semaphore(%25 : memref<!tpu.dma_semaphore, #tpu.memory_space<semaphore_mem>>) src(%21 : memref<20x32x128xbf16, #tpu.memory_space<any>>) dst(%23 : memref<20x32x128xbf16, #tpu.memory_space<vmem>>)
    %26 = arith.index_cast %14 : i32 to index
    %c0 = arith.constant 0 : index
    %c0_14 = arith.constant 0 : index
    %c0_15 = arith.constant 0 : index
    %27 = vector.load %arg9[%26, %c0, %c0_14, %c0_15] : memref<2x20x32x128xbf16, #tpu.memory_space<vmem>>, vector<1x20x32x128xbf16>
    %28 = vector.shape_cast %27 : vector<1x20x32x128xbf16> to vector<20x32x128xbf16>
    %29 = vector.extract_strided_slice %28 {offsets = [0, 0, 0], sizes = [20, 24, 128], strides = [1, 1, 1]} : vector<20x32x128xbf16> to vector<20x24x128xbf16>
    %30 = vector.extract_strided_slice %28 {offsets = [0, 1, 0], sizes = [20, 24, 128], strides = [1, 1, 1]} : vector<20x32x128xbf16> to vector<20x24x128xbf16>
    %31 = vector.extract_strided_slice %28 {offsets = [0, 2, 0], sizes = [20, 24, 128], strides = [1, 1, 1]} : vector<20x32x128xbf16> to vector<20x24x128xbf16>
    %32 = tpu.concatenate %29, %30, %31 in 2 : vector<20x24x128xbf16>, vector<20x24x128xbf16>, vector<20x24x128xbf16> -> vector<20x24x384xbf16>
    %33 = vector.extract_strided_slice %32 {offsets = [0, 0, 0], sizes = [18, 24, 384], strides = [1, 1, 1]} : vector<20x24x384xbf16> to vector<18x24x384xbf16>
    %34 = vector.shape_cast %33 : vector<18x24x384xbf16> to vector<432x384xbf16>
    %c0_16 = arith.constant 0 : index
    %c0_17 = arith.constant 0 : index
    %c0_18 = arith.constant 0 : index
    %35 = vector.load %arg4[%c0_16, %c0_17, %c0_18] : memref<3x384x128xbf16, #tpu.memory_space<vmem>>, vector<1x384x128xbf16>
    %36 = vector.shape_cast %35 : vector<1x384x128xbf16> to vector<384x128xbf16>
    %cst = arith.constant dense<0.000000e+00> : vector<432x128xf32>
    %37 = tpu.matmul %34, %36, %cst {dimension_numbers = #tpu.dot_dimension_numbers<[1], [0], [0], [1], [0, 0, 1, 1], [], []>} : vector<432x384xbf16>, vector<384x128xbf16>, vector<432x128xf32> -> vector<432x128xf32>
    %38 = vector.extract_strided_slice %32 {offsets = [1, 0, 0], sizes = [18, 24, 384], strides = [1, 1, 1]} : vector<20x24x384xbf16> to vector<18x24x384xbf16>
    %39 = vector.shape_cast %38 : vector<18x24x384xbf16> to vector<432x384xbf16>
    %c1 = arith.constant 1 : index
    %c0_19 = arith.constant 0 : index
    %c0_20 = arith.constant 0 : index
    %40 = vector.load %arg4[%c1, %c0_19, %c0_20] : memref<3x384x128xbf16, #tpu.memory_space<vmem>>, vector<1x384x128xbf16>
    %41 = vector.shape_cast %40 : vector<1x384x128xbf16> to vector<384x128xbf16>
    %cst_21 = arith.constant dense<0.000000e+00> : vector<432x128xf32>
    %42 = tpu.matmul %39, %41, %cst_21 {dimension_numbers = #tpu.dot_dimension_numbers<[1], [0], [0], [1], [0, 0, 1, 1], [], []>} : vector<432x384xbf16>, vector<384x128xbf16>, vector<432x128xf32> -> vector<432x128xf32>
    %43 = arith.addf %37, %42 : vector<432x128xf32>
    %44 = vector.extract_strided_slice %32 {offsets = [2, 0, 0], sizes = [18, 24, 384], strides = [1, 1, 1]} : vector<20x24x384xbf16> to vector<18x24x384xbf16>
    %45 = vector.shape_cast %44 : vector<18x24x384xbf16> to vector<432x384xbf16>
    %c2 = arith.constant 2 : index
    %c0_22 = arith.constant 0 : index
    %c0_23 = arith.constant 0 : index
    %46 = vector.load %arg4[%c2, %c0_22, %c0_23] : memref<3x384x128xbf16, #tpu.memory_space<vmem>>, vector<1x384x128xbf16>
    %47 = vector.shape_cast %46 : vector<1x384x128xbf16> to vector<384x128xbf16>
    %cst_24 = arith.constant dense<0.000000e+00> : vector<432x128xf32>
    %48 = tpu.matmul %45, %47, %cst_24 {dimension_numbers = #tpu.dot_dimension_numbers<[1], [0], [0], [1], [0, 0, 1, 1], [], []>} : vector<432x384xbf16>, vector<384x128xbf16>, vector<432x128xf32> -> vector<432x128xf32>
    %49 = arith.addf %43, %48 : vector<432x128xf32>
    %c0_25 = arith.constant 0 : index
    %c0_26 = arith.constant 0 : index
    %50 = vector.load %arg5[%c0_25, %c0_26] : memref<1x128xf32, #tpu.memory_space<vmem>>, vector<1x128xf32>
    %51 = vector.broadcast %50 : vector<1x128xf32> to vector<432x128xf32>
    %52 = arith.addf %49, %51 : vector<432x128xf32>
    %cst_27 = arith.constant 0.000000e+00 : f32
    %53 = vector.broadcast %cst_27 : f32 to vector<432x128xf32>
    %54 = arith.maximumf %52, %53 : vector<432x128xf32>
    %55 = vector.shape_cast %54 : vector<432x128xf32> to vector<18x24x128xf32>
    %56 = tpu.iota {dimensions = array<i32: 0>} : vector<18x24x128xi32>
    %c16_i32_28 = arith.constant 16 : i32
    %57 = arith.muli %1, %c16_i32_28 : i32
    %c1_i32_29 = arith.constant 1 : i32
    %58 = arith.subi %57, %c1_i32_29 : i32
    %59 = vector.broadcast %58 : i32 to vector<18x24x128xi32>
    %60 = arith.addi %56, %59 : vector<18x24x128xi32>
    %61 = tpu.iota {dimensions = array<i32: 1>} : vector<18x24x128xi32>
    %c0_i32_30 = arith.constant 0 : i32
    %62 = vector.broadcast %c0_i32_30 : i32 to vector<18x24x128xi32>
    %63 = arith.cmpi sge, %60, %62 : vector<18x24x128xi32>
    %c16_i32_31 = arith.constant 16 : i32
    %64 = vector.broadcast %c16_i32_31 : i32 to vector<18x24x128xi32>
    %65 = arith.cmpi slt, %60, %64 : vector<18x24x128xi32>
    %66 = arith.andi %63, %65 : vector<18x24x128xi1>
    %c1_i32_32 = arith.constant 1 : i32
    %67 = vector.broadcast %c1_i32_32 : i32 to vector<18x24x128xi32>
    %68 = arith.cmpi sge, %61, %67 : vector<18x24x128xi32>
    %69 = arith.andi %66, %68 : vector<18x24x128xi1>
    %c16_i32_33 = arith.constant 16 : i32
    %70 = vector.broadcast %c16_i32_33 : i32 to vector<18x24x128xi32>
    %71 = arith.cmpi sle, %61, %70 : vector<18x24x128xi32>
    %72 = arith.andi %69, %71 : vector<18x24x128xi1>
    %cst_34 = arith.constant 0.000000e+00 : f32
    %73 = vector.broadcast %cst_34 : f32 to vector<18x24x128xf32>
    %74 = arith.select %72, %55, %73 : vector<18x24x128xi1>, vector<18x24x128xf32>
    %75 = arith.truncf %74 : vector<18x24x128xf32> to vector<18x24x128xbf16>
    %76 = vector.extract_strided_slice %75 {offsets = [0, 0, 0], sizes = [18, 16, 128], strides = [1, 1, 1]} : vector<18x24x128xbf16> to vector<18x16x128xbf16>
    %77 = vector.extract_strided_slice %75 {offsets = [0, 1, 0], sizes = [18, 16, 128], strides = [1, 1, 1]} : vector<18x24x128xbf16> to vector<18x16x128xbf16>
    %78 = vector.extract_strided_slice %75 {offsets = [0, 2, 0], sizes = [18, 16, 128], strides = [1, 1, 1]} : vector<18x24x128xbf16> to vector<18x16x128xbf16>
    %79 = tpu.concatenate %76, %77, %78 in 2 : vector<18x16x128xbf16>, vector<18x16x128xbf16>, vector<18x16x128xbf16> -> vector<18x16x384xbf16>
    %80 = vector.extract_strided_slice %79 {offsets = [0, 0, 0], sizes = [16, 16, 384], strides = [1, 1, 1]} : vector<18x16x384xbf16> to vector<16x16x384xbf16>
    %81 = vector.shape_cast %80 : vector<16x16x384xbf16> to vector<256x384xbf16>
    %c0_35 = arith.constant 0 : index
    %c0_36 = arith.constant 0 : index
    %c0_37 = arith.constant 0 : index
    %82 = vector.load %arg6[%c0_35, %c0_36, %c0_37] : memref<3x384x128xbf16, #tpu.memory_space<vmem>>, vector<1x384x128xbf16>
    %83 = vector.shape_cast %82 : vector<1x384x128xbf16> to vector<384x128xbf16>
    %cst_38 = arith.constant dense<0.000000e+00> : vector<256x128xf32>
    %84 = tpu.matmul %81, %83, %cst_38 {dimension_numbers = #tpu.dot_dimension_numbers<[1], [0], [0], [1], [0, 0, 1, 1], [], []>} : vector<256x384xbf16>, vector<384x128xbf16>, vector<256x128xf32> -> vector<256x128xf32>
    %85 = vector.extract_strided_slice %79 {offsets = [1, 0, 0], sizes = [16, 16, 384], strides = [1, 1, 1]} : vector<18x16x384xbf16> to vector<16x16x384xbf16>
    %86 = vector.shape_cast %85 : vector<16x16x384xbf16> to vector<256x384xbf16>
    %c1_39 = arith.constant 1 : index
    %c0_40 = arith.constant 0 : index
    %c0_41 = arith.constant 0 : index
    %87 = vector.load %arg6[%c1_39, %c0_40, %c0_41] : memref<3x384x128xbf16, #tpu.memory_space<vmem>>, vector<1x384x128xbf16>
    %88 = vector.shape_cast %87 : vector<1x384x128xbf16> to vector<384x128xbf16>
    %cst_42 = arith.constant dense<0.000000e+00> : vector<256x128xf32>
    %89 = tpu.matmul %86, %88, %cst_42 {dimension_numbers = #tpu.dot_dimension_numbers<[1], [0], [0], [1], [0, 0, 1, 1], [], []>} : vector<256x384xbf16>, vector<384x128xbf16>, vector<256x128xf32> -> vector<256x128xf32>
    %90 = arith.addf %84, %89 : vector<256x128xf32>
    %91 = vector.extract_strided_slice %79 {offsets = [2, 0, 0], sizes = [16, 16, 384], strides = [1, 1, 1]} : vector<18x16x384xbf16> to vector<16x16x384xbf16>
    %92 = vector.shape_cast %91 : vector<16x16x384xbf16> to vector<256x384xbf16>
    %c2_43 = arith.constant 2 : index
    %c0_44 = arith.constant 0 : index
    %c0_45 = arith.constant 0 : index
    %93 = vector.load %arg6[%c2_43, %c0_44, %c0_45] : memref<3x384x128xbf16, #tpu.memory_space<vmem>>, vector<1x384x128xbf16>
    %94 = vector.shape_cast %93 : vector<1x384x128xbf16> to vector<384x128xbf16>
    %cst_46 = arith.constant dense<0.000000e+00> : vector<256x128xf32>
    %95 = tpu.matmul %92, %94, %cst_46 {dimension_numbers = #tpu.dot_dimension_numbers<[1], [0], [0], [1], [0, 0, 1, 1], [], []>} : vector<256x384xbf16>, vector<384x128xbf16>, vector<256x128xf32> -> vector<256x128xf32>
    %96 = arith.addf %90, %95 : vector<256x128xf32>
    %c0_47 = arith.constant 0 : index
    %c0_48 = arith.constant 0 : index
    %97 = vector.load %arg7[%c0_47, %c0_48] : memref<1x128xf32, #tpu.memory_space<vmem>>, vector<1x128xf32>
    %98 = vector.broadcast %97 : vector<1x128xf32> to vector<256x128xf32>
    %99 = arith.addf %96, %98 : vector<256x128xf32>
    %cst_49 = arith.constant 0.000000e+00 : f32
    %100 = vector.broadcast %cst_49 : f32 to vector<256x128xf32>
    %101 = arith.maximumf %99, %100 : vector<256x128xf32>
    %102 = vector.shape_cast %101 : vector<256x128xf32> to vector<16x16x128xf32>
    %103 = arith.truncf %102 : vector<16x16x128xf32> to vector<16x16x128xbf16>
    %c0_50 = arith.constant 0 : index
    %c0_51 = arith.constant 0 : index
    %c0_52 = arith.constant 0 : index
    %c0_53 = arith.constant 0 : index
    %104 = vector.load %arg8[%c0_50, %c0_51, %c0_52, %c0_53] : memref<1x16x16x128xbf16, #tpu.memory_space<vmem>>, vector<1x16x16x128xbf16>
    %105 = vector.shape_cast %104 : vector<1x16x16x128xbf16> to vector<16x16x128xbf16>
    %106 = vector.shape_cast %103 : vector<16x16x128xbf16> to vector<1x16x16x128xbf16>
    tpu.vector_store %arg8[%c0_50, %c0_51, %c0_52, %c0_53], %106 {strides = array<i32>} : memref<1x16x16x128xbf16, #tpu.memory_space<vmem>>, vector<1x16x16x128xbf16>,
    return
  }
  func.func @transform_1(%arg0: i32, %arg1: i32, %arg2: i32) -> (i32, i32, i32) {
    %c0_i32 = arith.constant 0 : i32
    %c0_i32_0 = arith.constant 0 : i32
    %c0_i32_1 = arith.constant 0 : i32
    %c0_i32_2 = arith.constant 0 : i32
    return %c0_i32, %c0_i32_0, %c0_i32_1 : i32, i32, i32
  }
  func.func @transform_2(%arg0: i32, %arg1: i32, %arg2: i32) -> (i32, i32) {
    %c0_i32 = arith.constant 0 : i32
    %c0_i32_0 = arith.constant 0 : i32
    %c0_i32_1 = arith.constant 0 : i32
    return %c0_i32, %c0_i32_0 : i32, i32
  }
  func.func @transform_3(%arg0: i32, %arg1: i32, %arg2: i32) -> (i32, i32, i32) {
    %c0_i32 = arith.constant 0 : i32
    %c0_i32_0 = arith.constant 0 : i32
    %c0_i32_1 = arith.constant 0 : i32
    %c0_i32_2 = arith.constant 0 : i32
    return %c0_i32, %c0_i32_0, %c0_i32_1 : i32, i32, i32
  }
  func.func @transform_4(%arg0: i32, %arg1: i32, %arg2: i32) -> (i32, i32) {
    %c0_i32 = arith.constant 0 : i32
    %c0_i32_0 = arith.constant 0 : i32
    %c0_i32_1 = arith.constant 0 : i32
    return %c0_i32, %c0_i32_0 : i32, i32
  }
  func.func @transform_5(%arg0: i32, %arg1: i32, %arg2: i32) -> (i32, i32, i32, i32) {
    %c1_i32 = arith.constant 1 : i32
    %0 = arith.muli %arg1, %c1_i32 : i32
    %1 = arith.addi %0, %arg2 : i32
    %c0_i32 = arith.constant 0 : i32
    %c0_i32_0 = arith.constant 0 : i32
    %c0_i32_1 = arith.constant 0 : i32
    return %arg0, %1, %c0_i32, %c0_i32_0 : i32, i32, i32, i32
  }
}

</mosaic_0001>

<bundles_post_ra>
// kernel: _lambda_.1
= control target key start
LH: loop header
LB: loop body
LE: loop exit
PB: predicated region body
PF: predicated region fallthrough
CT: control target
= control target key end

     0   :  { %s8678_s18 = smov 0   ;;  %s8680_s19 = smov 0   ;;  %s11735_s0 = inlined_call_operand.vmem [shape: bf16[2,20,32,128], index: 0, kind: input, shape index: {}]   ;;  %s11736_s1 = inlined_call_operand.vmem [shape: bf16[3,384,128], index: 1, kind: input, shape index: {}]   ;;  %s11737_s2 = inlined_call_operand.vmem [shape: f32[1,128], index: 2, kind: input, shape index: {}]   ;;  %s11738_s3 = inlined_call_operand.vmem [shape: bf16[3,384,128], index: 3, kind: input, shape index: {}]   ;;  %s11739_s4 = inlined_call_operand.vmem [shape: f32[1,128], index: 4, kind: input, shape index: {}]   ;;  %s11740_s5 = inlined_call_operand.vmem [shape: bf16[2,16,16,128], index: 5, kind: output, shape index: {}]  }
   0x1   :  { %s8682_s20 = smov 0  }
   0x2 LB: > { %s34_s21 = sadd.s32 1, %s8637_s19  ;;  %p6274_p0 = scmp.ge.s32.totalorder %s8641_s20, 1  ;;  %s8641_s20 = sphi %s8682_s20, %s15_s20   ;;  %s8637_s19 = sphi %s8680_s19, %s12139_s19   ;;  %s8633_s18 = sphi %s8678_s18, %s12138_s18  }
   0x3   : > { %p36_p1 = scmp.ge.s32.totalorder %s34_s21, 2  ;;  %p176_p2 = scmp.lt.s32.totalorder %s8641_s20, 3 }
   0x5   : > { %s12141_s21 = smov (%p36_p1, %s34_s21), 0  ;;  %p177_p3 = pnand %p6274_p0, %p176_p2 }
   0x7   : > { %180 = sbr.rel (%p177_p3) target bundleno = 1460 (0x5b4), region = 36 }
   0xe   : > { %p205_p4 = scmp.lt.s32.totalorder %s8633_s18, 1  ;;  %s6981_s22 = smul.u32 320, %s8633_s18 }
  0x10   : > { %s12143_s18 = smov (!%p205_p4, %s8633_s18), 1  ;;  %s8699_s25 = scalar_lea.vmem %s11735_s0, %s6981_s22 }
  0x11   : > { %s6980_s26 = sshll.u32 %s12143_s18, 7  ;;  %v260_v0 = vld [vmem:[%s8699_s25] sm:$0xff]  ;;  %v262_v1 = vld [vmem:[%s8699_s25 + $0x8] sm:$0xff]  ;;  %v264_v2 = vld [vmem:[%s8699_s25 + $0x10] sm:$0xff] }
  0x12   : > { %s8707_s29 = scalar_lea.vmem %s11740_s5, %s6980_s26  ;;  %261 = vst [vmem:[#allocation2] sm:$0xff] %v260_v0  ;;  %263 = vst [vmem:[#allocation2 + $0x8] sm:$0xff] %v262_v1  ;;  %v266_v3 = vld [vmem:[%s8699_s25 + $0x18] sm:$0xff]  ;;  %v268_v4 = vld [vmem:[%s8699_s25 + $0x20] sm:$0xff] }
  0x13   : > { %265 = vst [vmem:[#allocation2 + $0x10] sm:$0xff] %v264_v2  ;;  %v270_v5 = vld [vmem:[%s8699_s25 + $0x28] sm:$0xff]  ;;  %267 = vst [vmem:[#allocation2 + $0x18] sm:$0xff] %v266_v3  ;;  %v272_v6 = vld [vmem:[%s8699_s25 + $0x30] sm:$0xff] }
  0x14   : > { %269 = vst [vmem:[#allocation2 + $0x20] sm:$0xff] %v268_v4  ;;  %271 = vst [vmem:[#allocation2 + $0x28] sm:$0xff] %v270_v5  ;;  %v274_v7 = vld [vmem:[%s8699_s25 + $0x38] sm:$0xff]  ;;  %v276_v8 = vld [vmem:[%s8699_s25 + $0x40] sm:$0xff] }
  0x15   : > { %273 = vst [vmem:[#allocation2 + $0x30] sm:$0xff] %v272_v6  ;;  %275 = vst [vmem:[#allocation2 + $0x38] sm:$0xff] %v274_v7  ;;  %v278_v9 = vld [vmem:[%s8699_s25 + $0x48] sm:$0xff]  ;;  %v280_v10 = vld [vmem:[%s8699_s25 + $0x50] sm:$0xff] }
  0x16   : > { %277 = vst [vmem:[#allocation2 + $0x40] sm:$0xff] %v276_v8  ;;  %v282_v11 = vld [vmem:[%s8699_s25 + $0x58] sm:$0xff]  ;;  %279 = vst [vmem:[#allocation2 + $0x48] sm:$0xff] %v278_v9  ;;  %v284_v12 = vld [vmem:[%s8699_s25 + $0x60] sm:$0xff] }
  0x17   : > { %281 = vst [vmem:[#allocation2 + $0x50] sm:$0xff] %v280_v10  ;;  %283 = vst [vmem:[#allocation2 + $0x58] sm:$0xff] %v282_v11  ;;  %v286_v13 = vld [vmem:[%s8699_s25 + $0x68] sm:$0xff]  ;;  %v288_v14 = vld [vmem:[%s8699_s25 + $0x70] sm:$0xff] }
  0x18   : > { %285 = vst [vmem:[#allocation2 + $0x60] sm:$0xff] %v284_v12  ;;  %287 = vst [vmem:[#allocation2 + $0x68] sm:$0xff] %v286_v13  ;;  %v290_v15 = vld [vmem:[%s8699_s25 + $0x78] sm:$0xff]  ;;  %v292_v16 = vld [vmem:[%s8699_s25 + $0x80] sm:$0xff] }
  0x19   : > { %289 = vst [vmem:[#allocation2 + $0x70] sm:$0xff] %v288_v14  ;;  %v294_v17 = vld [vmem:[%s8699_s25 + $0x88] sm:$0xff]  ;;  %291 = vst [vmem:[#allocation2 + $0x78] sm:$0xff] %v290_v15  ;;  %v296_v18 = vld [vmem:[%s8699_s25 + $0x90] sm:$0xff] }
  0x1a   : > { %293 = vst [vmem:[#allocation2 + $0x80] sm:$0xff] %v292_v16  ;;  %295 = vst [vmem:[#allocation2 + $0x88] sm:$0xff] %v294_v17  ;;  %v298_v19 = vld [vmem:[%s8699_s25 + $0x98] sm:$0xff]  ;;  %v300_v20 = vld [vmem:[%s8699_s25 + $0xa0] sm:$0xff] }
  0x1b   : > { %297 = vst [vmem:[#allocation2 + $0x90] sm:$0xff] %v296_v18  ;;  %299 = vst [vmem:[#allocation2 + $0x98] sm:$0xff] %v298_v19  ;;  %v302_v21 = vld [vmem:[%s8699_s25 + $0xa8] sm:$0xff]  ;;  %v304_v22 = vld [vmem:[%s8699_s25 + $0xb0] sm:$0xff] }
  0x1c   : > { %301 = vst [vmem:[#allocation2 + $0xa0] sm:$0xff] %v300_v20  ;;  %v306_v23 = vld [vmem:[%s8699_s25 + $0xb8] sm:$0xff]  ;;  %303 = vst [vmem:[#allocation2 + $0xa8] sm:$0xff] %v302_v21  ;;  %v308_v24 = vld [vmem:[%s8699_s25 + $0xc0] sm:$0xff] }
  0x1d   : > { %305 = vst [vmem:[#allocation2 + $0xb0] sm:$0xff] %v304_v22  ;;  %307 = vst [vmem:[#allocation2 + $0xb8] sm:$0xff] %v306_v23  ;;  %v310_v25 = vld [vmem:[%s8699_s25 + $0xc8] sm:$0xff]  ;;  %v312_v26 = vld [vmem:[%s8699_s25 + $0xd0] sm:$0xff] }
  0x1e   : > { %309 = vst [vmem:[#allocation2 + $0xc0] sm:$0xff] %v308_v24  ;;  %311 = vst [vmem:[#allocation2 + $0xc8] sm:$0xff] %v310_v25  ;;  %v314_v27 = vld [vmem:[%s8699_s25 + $0xd8] sm:$0xff]  ;;  %v316_v28 = vld [vmem:[%s8699_s25 + $0xe0] sm:$0xff] }
  0x1f   : > { %313 = vst [vmem:[#allocation2 + $0xd0] sm:$0xff] %v312_v26  ;;  %v318_v29 = vld [vmem:[%s8699_s25 + $0xe8] sm:$0xff]  ;;  %315 = vst [vmem:[#allocation2 + $0xd8] sm:$0xff] %v314_v27  ;;  %v320_v30 = vld [vmem:[%s8699_s25 + $0xf0] sm:$0xff] }
  0x20   : > { %317 = vst [vmem:[#allocation2 + $0xe0] sm:$0xff] %v316_v28  ;;  %319 = vst [vmem:[#allocation2 + $0xe8] sm:$0xff] %v318_v29  ;;  %v322_v31 = vld [vmem:[%s8699_s25 + $0xf8] sm:$0xff]  ;;  %v324_v32 = vld [vmem:[%s8699_s25 + $0x100] sm:$0xff] }
  0x21   : > { %321 = vst [vmem:[#allocation2 + $0xf0] sm:$0xff] %v320_v30  ;;  %323 = vst [vmem:[#allocation2 + $0xf8] sm:$0xff] %v322_v31  ;;  %v326_v33 = vld [vmem:[%s8699_s25 + $0x108] sm:$0xff]  ;;  %v328_v34 = vld [vmem:[%s8699_s25 + $0x110] sm:$0xff] }
  0x22   : > { %325 = vst [vmem:[#allocation2 + $0x100] sm:$0xff] %v324_v32  ;;  %v330_v35 = vld [vmem:[%s8699_s25 + $0x118] sm:$0xff]  ;;  %327 = vst [vmem:[#allocation2 + $0x108] sm:$0xff] %v326_v33  ;;  %v332_v36 = vld [vmem:[%s8699_s25 + $0x120] sm:$0xff] }
  0x23   : > { %329 = vst [vmem:[#allocation2 + $0x110] sm:$0xff] %v328_v34  ;;  %331 = vst [vmem:[#allocation2 + $0x118] sm:$0xff] %v330_v35  ;;  %v334_v37 = vld [vmem:[%s8699_s25 + $0x128] sm:$0xff]  ;;  %v336_v38 = vld [vmem:[%s8699_s25 + $0x130] sm:$0xff] }
  0x24   : > { %333 = vst [vmem:[#allocation2 + $0x120] sm:$0xff] %v332_v36  ;;  %335 = vst [vmem:[#allocation2 + $0x128] sm:$0xff] %v334_v37  ;;  %v338_v39 = vld [vmem:[%s8699_s25 + $0x138] sm:$0xff] }
  0x25   : > { %337 = vst [vmem:[#allocation2 + $0x130] sm:$0xff] %v336_v38  ;;  %339 = vst [vmem:[#allocation2 + $0x138] sm:$0xff] %v338_v39 }
  0x26   : > { %347 = vsyncadd [#allocation3], 5120 }
  0x27   : > { %8629 = dma.done.wait [#allocation3], 5120 }
  0x28   : > { %8630 = vsyncadd [#allocation3], 4294962176  ;;  %v11741_v40 = vmov 0   ;;  %v11744_v41 = vmov 0.0   ;;  %vm8645_vm0 = vmmov 0   ;;  %v8426_v42 = vld [vmem:[%s11736_s1 + $0xc0] sm:$0xff]  }
  0x29   : > { %1523 = vmatprep.subr.bf16.mxu0 %v11741_v40  ;;  %7705 = vmatprep.subr.bf16.mxu1 %v11744_v41  ;;  %v8427_v43 = vld [vmem:[%s11736_s1 + $0x140] sm:$0xff]   ;;  %v8428_v44 = vld [vmem:[%s11736_s1 + $0xc8] sm:$0xff]   ;;  %v8430_v46 = vld [vmem:[%s11736_s1 + $0xd0] sm:$0xff]   ;;  %vm547_vm1 = vsmask.f32 7424  ;;  %vm888_vm2 = vcmask 1046528  }
  0x2a   : > { %7721 = vmatprep.mubr.msk.bf16.mxu1 %vm8645_vm0, %v11744_v41  ;;  %1524 = vmatpush1.bf16.msra.mxu0 %v8426_v42  ;;  %v8429_v45 = vld [vmem:[%s11736_s1 + $0x148] sm:$0xff]   ;;  %v8431_v47 = vld [vmem:[%s11736_s1 + $0x150] sm:$0xff]   ;;  %v8432_v48 = vld [vmem:[%s11736_s1 + $0xd8] sm:$0xff]   ;;  %vm8646_vm5 = vmmov 1  }
  0x2b   : > { %7706 = vmatpush3.bf16.msra.mxu1 %v8427_v43  ;;  %1525 = vmatprep.subr.bf16.mxu0 %v11741_v40  ;;  %v8433_v49 = vld [vmem:[%s11736_s1 + $0x158] sm:$0xff]   ;;  %v8434_v50 = vld [vmem:[%s11736_s1 + $0xe0] sm:$0xff]   ;;  %v8436_v52 = vld [vmem:[%s11736_s1 + $0xe8] sm:$0xff]  }
  0x2c   : > { %7707 = vmatprep.subr.bf16.mxu1 %v11744_v41  ;;  %v8435_v51 = vld [vmem:[%s11736_s1 + $0x160] sm:$0xff]   ;;  %v8791_v53 = vld [vmem:[#allocation2 + $0x10] sm:$0xff]  ;;  %v8437_v54 = vld [vmem:[%s11736_s1 + $0x168] sm:$0xff]  }
  0x2d   : > { %v566_v55 = vshll.u32 %v8791_v53, 16  ;;  %v564_v56 = vshrl.u32 %v8791_v53, 16  ;;  %v8438_v57 = vld [vmem:[%s11736_s1 + $0xf0] sm:$0xff]   ;;  %v8803_v58 = vld [vmem:[#allocation2 + $0x18] sm:$0xff]  ;;  %v892_v2 = vrot.slane %v8791_v53, 1  ;;  %v8824_v4 = vld [vmem:[#allocation2 + $0x20] sm:$0xff] }
  0x2e   : > { %1526 = vmatpush1.bf16.msra.mxu0 %v8428_v44  ;;  %v8439_v60 = vld [vmem:[%s11736_s1 + $0x170] sm:$0xff]   ;;  %v571_v61 = vshll.u32 %v8803_v58, 16  ;;  %v8440_v63 = vld [vmem:[%s11736_s1 + $0xf8] sm:$0xff]   ;;  %v8822_v3 = vrot.slane %v8803_v58, 1  ;;  %v8831_v6 = vld [vmem:[#allocation2 + $0x28] sm:$0xff]  ;;  %v895_v10 = vrot.slane %v8824_v4, 1 }
  0x2f   : > { %7708 = vmatpush3.bf16.msra.mxu1 %v8429_v45  ;;  %1527 = vmatprep.subr.bf16.mxu0 %v11741_v40  ;;  %v568_v59 = vrot.slane %v566_v55, 1  ;;  %v8441_v1 = vld [vmem:[%s11736_s1 + $0x178] sm:$0xff]   ;;  %v8442_v7 = vld [vmem:[%s11736_s1 + $0x100] sm:$0xff]   ;;  %v8847_v11 = vrot.slane %v8831_v6, 1  ;;  %v8444_v12 = vld [vmem:[%s11736_s1 + $0x108] sm:$0xff]   ;;  %v581_v25 = vshll.u32 %v8824_v4, 16 }
  0x30   : > { %7709 = vmatprep.subr.bf16.mxu1 %v11744_v41  ;;  %v8814_v0 = vrot.slane %v571_v61, 1  ;;  %v8840_v8 = vsel %vm888_vm2, %v892_v2, %v8822_v3  ;;  %v8443_v9 = vld [vmem:[%s11736_s1] sm:$0xff]   ;;  %v8447_v14 = vld [vmem:[%s11736_s1 + $0x8] sm:$0xff]   ;;  %v8445_v16 = vld [vmem:[%s11736_s1 + $0x110] sm:$0xff]   ;;  %v579_v32 = vshrl.u32 %v8824_v4, 16  ;;  %v586_v35 = vshll.u32 %v8831_v6, 16 }
  0x31   : > { %v569_v62 = vor.u32 %v568_v59, %v564_v56  ;;  %v8857_v13 = vsel %vm888_vm2, %v895_v10, %v8847_v11  ;;  %v8451_v17 = vld [vmem:[%s11736_s1 + $0x10] sm:$0xff]   ;;  %v8446_v18 = vld [vmem:[%s11736_s1 + $0x118] sm:$0xff]   ;;  %v975_v20 = vunpack.c.l.b16 %v8847_v11  ;;  %v8448_v23 = vld [vmem:[%s11736_s1 + $0x120] sm:$0xff]   ;;  %v583_v33 = vrot.slane %v581_v25, 1 }
  0x32   : > { %1528 = vmatpush1.bf16.msra.mxu0 %v8430_v46  ;;  %v6411_v15 = vcombine.low %v8822_v3, %v8857_v13  ;;  %v972_v19 = vunpack.c.h.b16 %v8857_v13  ;;  %v8454_v21 = vld [vmem:[%s11736_s1 + $0x18] sm:$0xff]   ;;  %v8890_v24 = vld [vmem:[#allocation2 + $0x30] sm:$0xff]  ;;  %v8455_v27 = vld [vmem:[%s11736_s1 + $0x20] sm:$0xff]   ;;  %v575_v37 = vshrl.u32 %v8803_v58, 16  ;;  %v588_v45 = vrot.slane %v586_v35, 1 }
  0x33   : > { %7710 = vmatpush3.bf16.msra.mxu1 %v8431_v47  ;;  %1529 = vmatprep.subr.bf16.mxu0 %v11741_v40  ;;  %v8828_v5 = vsel %vm547_vm1, %v569_v62, %v8814_v0  ;;  %v8894_v26 = vld [vmem:[#allocation2 + $0x38] sm:$0xff]  ;;  %v8449_v28 = vld [vmem:[%s11736_s1 + $0x128] sm:$0xff]   ;;  %v898_v29 = vrot.slane %v8890_v24, 1  ;;  %v8907_v31 = vld [vmem:[#allocation2 + $0x40] sm:$0xff]  ;;  %v584_v44 = vor.u32 %v583_v33, %v579_v32  ;;  %v6409_v2 = vcombine.low %v8803_v58, %v8824_v4 }
  0x34   : > { %7711 = vmatprep.subr.bf16.mxu1 %v11744_v41  ;;  %1555 = vmatprep.mubr.bf16.mxu0 %v8828_v5  ;;  %v1225_v22 = vpack.c.b16 %v975_v20, %v972_v19  ;;  %v8905_v30 = vrot.slane %v8894_v26, 1  ;;  %v8913_v34 = vld [vmem:[#allocation2 + $0x48] sm:$0xff]  ;;  %v8450_v36 = vld [vmem:[%s11736_s1 + $0x130] sm:$0xff]   ;;  %v901_v39 = vrot.slane %v8907_v31, 1  ;;  %v8452_v47 = vld [vmem:[%s11736_s1 + $0x138] sm:$0xff]   ;;  %v594_v10 = vshrl.u32 %v8890_v24, 16 }
  0x35   : > { %v8457_v38 = vld [vmem:[%s11736_s1 + $0x28] sm:$0xff]   ;;  %v8926_v42 = vrot.slane %v8913_v34, 1  ;;  %v8459_v46 = vld [vmem:[%s11736_s1 + $0x30] sm:$0xff]   ;;  %v8463_v59 = vld [vmem:[%s11736_s1 + $0x40] sm:$0xff]  }
  0x36   : > { %1530 = vmatpush1.bf16.msra.mxu0 %v8432_v48  ;;  %v8931_v43 = vsel %vm888_vm2, %v898_v29, %v8905_v30  ;;  %v8942_v48 = vor.u32 %v575_v37, %v8814_v0  ;;  %v596_v0 = vshll.u32 %v8890_v24, 16  ;;  %v8466_v58 = vld [vmem:[%s11736_s1 + $0x90] sm:$0xff]   ;;  %v9001_v4 = vld [vmem:[#allocation2 + $0x60] sm:$0xff]  ;;  %v8469_v29 = vld [vmem:[%s11736_s1 + $0x58] sm:$0xff]  }
  0x37   : > { %7712 = vmatpush3.bf16.msra.mxu1 %v8433_v49  ;;  %1531 = vmatprep.subr.bf16.mxu0 %v11741_v40  ;;  %v590_v49 = vshrl.u32 %v8831_v6, 16  ;;  %v993_v61 = vunpack.c.l.b16 %v8926_v42  ;;  %v7160_v32 = vld [vmem:[#allocation2 + $0x24] sm:$0xff]  ;;  %v907_v33 = vrot.slane %v9001_v4, 1 }
  0x38   : > { %7713 = vmatprep.subr.bf16.mxu1 %v11744_v41 }
  0x39   : > { %v8963_v56 = vor.u32 %v590_v49, %v588_v45 }
  0x3a   : > { %1532 = vmatpush1.bf16.msra.mxu0 %v8434_v50  ;;  %v8950_v50 = vsel %vm888_vm2, %v901_v39, %v8926_v42 }
  0x3b   : > { %7714 = vmatpush3.bf16.msra.mxu1 %v8435_v51  ;;  %1533 = vmatprep.subr.bf16.mxu0 %v11741_v40  ;;  %v8953_v51 = vsel %vm547_vm1, %v584_v44, %v588_v45  ;;  %v8472_v45 = vld [vmem:[%s11736_s1 + $0x60] sm:$0xff]  }
  0x3c   : > { %7715 = vmatprep.subr.bf16.mxu1 %v11744_v41  ;;  %v6410_v55 = vcombine.low %v8942_v48, %v8953_v51  ;;  %v971_v62 = vunpack.c.h.b16 %v8953_v51 }
  0x3e   : > { %1534 = vmatpush1.bf16.msra.mxu0 %v8436_v52  ;;  %v8461_v52 = vld [vmem:[%s11736_s1 + $0x38] sm:$0xff]  }
  0x3f   : > { %7716 = vmatpush3.bf16.msra.mxu1 %v8437_v54  ;;  %1535 = vmatprep.subr.bf16.mxu0 %v11741_v40  ;;  %v6414_v54 = vcombine.low %v8905_v30, %v8950_v50 }
  0x40   : > { %7717 = vmatprep.subr.bf16.mxu1 %v11744_v41 }
  0x42   : > { %1536 = vmatpush1.bf16.msra.mxu0 %v8438_v57  ;;  %v8458_v57 = vld [vmem:[%s11736_s1 + $0x80] sm:$0xff]  }
  0x43   : > { %7718 = vmatpush3.bf16.msra.mxu1 %v8439_v60  ;;  %1537 = vmatprep.subr.bf16.mxu0 %v11741_v40  ;;  %v990_v60 = vunpack.c.h.b16 %v8950_v50 }
  0x44   : > { %7719 = vmatprep.subr.bf16.mxu1 %v11744_v41 }
  0x45   : > { %v1234_v6 = vpack.c.b16 %v993_v61, %v990_v60 }
  0x46   : > { %1538 = vmatpush1.bf16.msra.mxu0 %v8440_v63  ;;  %v974_v63 = vunpack.c.l.b16 %v8963_v56 }
  0x47   : > { %7720 = vmatpush3.bf16.msra.mxu1 %v8441_v1  ;;  %1539 = vmatprep.subr.bf16.mxu0 %v11741_v40  ;;  %v8465_v1 = vld [vmem:[%s11736_s1 + $0x48] sm:$0xff]  }
  0x48   : > { %2327 = vmatprep.subr.bf16.mxu1 %v11741_v40 }
  0x4a   : > { %7722 = vmatmul.mubr.bf16.vlgmr.msra.gmra.mrb[0].mxu1 %v8840_v8  ;;  %1540 = vmatpush1.bf16.msra.mxu0 %v8442_v7  ;;  %v1224_v7 = vpack.c.b16 %v974_v63, %v971_v62 }
  0x4b   : > { %2328 = vmatpush1.bf16.msra.mxu1 %v8443_v9  ;;  %1541 = vmatprep.subr.bf16.mxu0 %v11741_v40  ;;  %v8991_v9 = vld [vmem:[#allocation2 + $0x50] sm:$0xff] }
  0x4c   : > { %7725 = vmatprep.mubr.msk.bf16.mxu1 %vm8645_vm0, %v11744_v41  ;;  %2329 = vmatprep.subr.bf16.mxu1 %v11741_v40 }
  0x4e   : > { %1542 = vmatpush1.bf16.msra.mxu0 %v8444_v12  ;;  %v601_v12 = vshll.u32 %v8894_v26, 16 }
  0x4f   : > { %1543 = vmatprep.subr.bf16.mxu0 %v11741_v40  ;;  %2330 = vmatpush1.bf16.msra.mxu1 %v8447_v14  ;;  %v8995_v14 = vld [vmem:[#allocation2 + $0x58] sm:$0xff] }
  0x50   : > { %2331 = vmatprep.subr.bf16.mxu1 %v11741_v40  ;;  %v9010_v19 = vrot.slane %v8995_v14, 1  ;;  %v603_v20 = vrot.slane %v601_v12, 1  ;;  %v624_v12 = vshrl.u32 %v8991_v9, 16 }
  0x52   : > { %7726 = vmatmul.mubr.bf16.gmra.mrb[4].mxu1 %v6411_v15  ;;  %1544 = vmatpush1.bf16.msra.mxu0 %v8445_v16  ;;  %v598_v15 = vrot.slane %v596_v0, 1  ;;  %v611_v16 = vshll.u32 %v8907_v31, 16  ;;  %v8475_v0 = vld [vmem:[%s11736_s1 + $0xa0] sm:$0xff]  }
  0x53   : > { %1545 = vmatprep.subr.bf16.mxu0 %v11741_v40  ;;  %7729 = vmatprep.mubr.msk.bf16.mxu1 %vm8645_vm0, %v11744_v41 }
  0x54   : > { %2332 = vmatpush1.bf16.msra.mxu1 %v8451_v17  ;;  %v8468_v17 = vld [vmem:[%s11736_s1 + $0x50] sm:$0xff]   ;;  %v613_v25 = vrot.slane %v611_v16, 1  ;;  %v641_v16 = vshll.u32 %v9001_v4, 16 }
  0x55   : > { %2333 = vmatprep.subr.bf16.mxu1 %v11741_v40 }
  0x56   : > { %1546 = vmatpush1.bf16.msra.mxu0 %v8446_v18  ;;  %v904_v18 = vrot.slane %v8991_v9, 1 }
  0x57   : > { %1547 = vmatprep.subr.bf16.mxu0 %v11741_v40 }
  0x58   : > { %2334 = vmatpush1.bf16.msra.mxu1 %v8454_v21  ;;  %v9012_v21 = vld [vmem:[#allocation2 + $0x68] sm:$0xff]  ;;  %v9033_v37 = vsel %vm888_vm2, %v904_v18, %v9010_v19 }
  0x59   : > { %2335 = vmatprep.subr.bf16.mxu1 %v11741_v40  ;;  %v9028_v35 = vrot.slane %v9012_v21, 1  ;;  %v9096_v18 = vld [vmem:[#allocation2 + $0x88] sm:$0xff] }
  0x5a   : > { %7730 = vmatmul.mubr.bf16.gmra.mrb[8].mxu1 %v1225_v22  ;;  %1548 = vmatpush1.bf16.msra.mxu0 %v8448_v23  ;;  %v599_v22 = vor.u32 %v598_v15, %v594_v10  ;;  %v609_v23 = vshrl.u32 %v8907_v31, 16  ;;  %v9089_v10 = vld [vmem:[#allocation2 + $0x78] sm:$0xff]  ;;  %v631_v15 = vshll.u32 %v8995_v14, 16 }
  0x5b   : > { %1549 = vmatprep.subr.bf16.mxu0 %v11741_v40  ;;  %7733 = vmatprep.mubr.msk.bf16.mxu1 %vm8645_vm0, %v11744_v41  ;;  %v9052_v49 = vsel %vm888_vm2, %v907_v33, %v9028_v35  ;;  %v1011_v61 = vunpack.c.l.b16 %v9028_v35 }
  0x5c   : > { %2336 = vmatpush1.bf16.msra.mxu1 %v8455_v27  ;;  %v616_v27 = vshll.u32 %v8913_v34, 16  ;;  %v614_v39 = vor.u32 %v613_v25, %v609_v23  ;;  %11869 = vst [vmem:[#allocation7_spill] sm:$0xff] %v9052_v49  ;;  %v1008_v60 = vunpack.c.h.b16 %v9052_v49  ;;  %v643_v23 = vrot.slane %v641_v16, 1 }
  0x5d   : > { %2337 = vmatprep.subr.bf16.mxu1 %v11741_v40  ;;  %v661_v16 = vshll.u32 %v9089_v10, 16 }
  0x5e   : > { %1550 = vmatpush1.bf16.msra.mxu0 %v8449_v28  ;;  %v8470_v28 = vld [vmem:[%s11736_s1 + $0x98] sm:$0xff]   ;;  %v618_v44 = vrot.slane %v616_v27, 1  ;;  %v7162_v27 = vld [vmem:[#allocation2 + $0x44] sm:$0xff] }
  0x5f   : > { %1551 = vmatprep.subr.bf16.mxu0 %v11741_v40 }
  0x60   : > { %2338 = vmatpush1.bf16.msra.mxu1 %v8457_v38  ;;  %v9036_v38 = vsel %vm547_vm1, %v599_v22, %v603_v20  ;;  %v639_v22 = vshrl.u32 %v9001_v4, 16 }
  0x61   : > { %2339 = vmatprep.subr.bf16.mxu1 %v11741_v40 }
  0x62   : > { %7734 = vmatmul.mubr.bf16.gmra.mrb[12].mxu1 %v8931_v43  ;;  %1552 = vmatpush1.bf16.msra.mxu0 %v8450_v36  ;;  %v605_v36 = vshrl.u32 %v8894_v26, 16 }
  0x63   : > { %1553 = vmatprep.subr.bf16.mxu0 %v11741_v40  ;;  %7737 = vmatprep.mubr.msk.bf16.mxu1 %vm8645_vm0, %v11744_v41 }
  0x64   : > { %2340 = vmatpush1.bf16.msra.mxu1 %v8459_v46  ;;  %v9045_v46 = vor.u32 %v605_v36, %v603_v20  ;;  %v633_v20 = vrot.slane %v631_v15, 1 }
  0x65   : > { %2341 = vmatprep.subr.bf16.mxu1 %v11741_v40 }
  0x66   : > { %1554 = vmatpush1.bf16.msra.mxu0 %v8452_v47  ;;  %v620_v47 = vshrl.u32 %v8913_v34, 16  ;;  %v6417_v34 = vcombine.low %v9010_v19, %v9052_v49 }
  0x67   : > { %7829 = vmatprep.subr.bf16.mxu0 %v11744_v41 }
  0x68   : > { %2342 = vmatpush1.bf16.msra.mxu1 %v8461_v52  ;;  %v9055_v52 = vsel %vm547_vm1, %v614_v39, %v618_v44 }
  0x69   : > { %1556 = vmatmul.mubr.bf16.vlgmr.msra.gmra.mrb[0].mxu0 %v8791_v53  ;;  %2343 = vmatprep.subr.bf16.mxu1 %v11741_v40  ;;  %v8462_v53 = vld [vmem:[%s11736_s1 + $0x88] sm:$0xff]   ;;  %11870 = vst [vmem:[#allocation8_spill] sm:$0xff] %v9055_v52  ;;  %v989_v62 = vunpack.c.h.b16 %v9055_v52 }
  0x6a   : > { %7738 = vmatmul.mubr.bf16.gmra.mrb[16].mxu1 %v6414_v54  ;;  %1563 = vmatprep.mubr.bf16.mxu0 %v6410_v55  ;;  %v8473_v54 = vld [vmem:[%s11736_s1 + $0x68] sm:$0xff]   ;;  %v6413_v55 = vcombine.low %v9045_v46, %v9055_v52 }
  0x6b   : > { %7741 = vmatprep.mubr.msk.bf16.mxu1 %vm8645_vm0, %v11744_v41  ;;  %7830 = vmatpush3.bf16.msra.mxu0 %v8458_v57  ;;  %v9065_v57 = vor.u32 %v620_v47, %v618_v44  ;;  %v644_v44 = vor.u32 %v643_v23, %v639_v22  ;;  %v650_v47 = vshrl.u32 %v9012_v21, 16  ;;  %v8479_v22 = vld [vmem:[%s11736_s1 + $0xa8] sm:$0xff]  }
  0x6c   : > { %7831 = vmatprep.subr.bf16.mxu0 %v11744_v41  ;;  %2344 = vmatpush1.bf16.msra.mxu1 %v8463_v59  ;;  %v9067_v59 = vld [vmem:[#allocation2 + $0x70] sm:$0xff] }
  0x6d   : > { %2345 = vmatprep.subr.bf16.mxu1 %v11741_v40  ;;  %v992_v63 = vunpack.c.l.b16 %v9065_v57 }
  0x6f   : > { %7832 = vmatpush3.bf16.msra.mxu0 %v8462_v53  ;;  %v910_v53 = vrot.slane %v9067_v59, 1 }
  0x70   : > { %2346 = vmatpush1.bf16.msra.mxu1 %v8465_v1  ;;  %7833 = vmatprep.subr.bf16.mxu0 %v11744_v41  ;;  %v626_v1 = vshll.u32 %v8991_v9, 16 }
  0x71   : > { %1564 = vmatmul.mubr.bf16.gmra.mrb[4].mxu0 %v6409_v2  ;;  %2347 = vmatprep.subr.bf16.mxu1 %v11741_v40  ;;  %v6412_v2 = vcombine.low %v8894_v26, %v8907_v31  ;;  %v646_v26 = vshll.u32 %v9012_v21, 16  ;;  %v9100_v31 = vrot.slane %v9089_v10, 1 }
  0x72   : > { %7742 = vmatmul.mubr.bf16.gmra.mrb[20].mxu1 %v1234_v6  ;;  %1571 = vmatprep.mubr.bf16.mxu0 %v1224_v7  ;;  %v1243_v6 = vpack.c.b16 %v1011_v61, %v1008_v60  ;;  %v1233_v7 = vpack.c.b16 %v992_v63, %v989_v62 }
  0x73   : > { %7745 = vmatprep.mubr.msk.bf16.mxu1 %vm8645_vm0, %v11744_v41  ;;  %7834 = vmatpush3.bf16.msra.mxu0 %v8466_v58  ;;  %v628_v58 = vrot.slane %v626_v1, 1  ;;  %v648_v33 = vrot.slane %v646_v26, 1  ;;  %v9112_v36 = vsel %vm888_vm2, %v910_v53, %v9100_v31  ;;  %v656_v53 = vshll.u32 %v9067_v59, 16  ;;  %v9149_v1 = vld [vmem:[#allocation2 + $0x90] sm:$0xff]  ;;  %v9159_v26 = vld [vmem:[#allocation2 + $0xa8] sm:$0xff] }
  0x74   : > { %2348 = vmatpush1.bf16.msra.mxu1 %v8468_v17  ;;  %7835 = vmatprep.subr.bf16.mxu0 %v11744_v41  ;;  %v9094_v17 = vld [vmem:[#allocation2 + $0x80] sm:$0xff]  ;;  %v916_v23 = vrot.slane %v9149_v1, 1 }
  0x75   : > { %2349 = vmatprep.subr.bf16.mxu1 %v11741_v40  ;;  %v629_v25 = vor.u32 %v628_v58, %v624_v12  ;;  %v9139_v61 = vor.u32 %v650_v47, %v648_v33  ;;  %v658_v15 = vrot.slane %v656_v53, 1  ;;  %v9157_v58 = vld [vmem:[#allocation2 + $0xa0] sm:$0xff]  ;;  %v9175_v47 = vrot.slane %v9159_v26, 1 }
  0x77   : > { %7836 = vmatpush3.bf16.msra.mxu0 %v8470_v28  ;;  %v913_v28 = vrot.slane %v9094_v17, 1  ;;  %v9115_v39 = vsel %vm547_vm1, %v629_v25, %v633_v20  ;;  %11875 = vst [vmem:[#allocation13_spill] sm:$0xff] %v9175_v47 }
  0x78   : > { %2350 = vmatpush1.bf16.msra.mxu1 %v8469_v29  ;;  %7837 = vmatprep.subr.bf16.mxu0 %v11744_v41  ;;  %v9107_v29 = vrot.slane %v9096_v18, 1 }
  0x79   : > { %1572 = vmatmul.mubr.bf16.gmra.mrb[8].mxu0 %v7160_v32  ;;  %2351 = vmatprep.subr.bf16.mxu1 %v11741_v40  ;;  %v635_v32 = vshrl.u32 %v8995_v14, 16 }
  0x7a   : > { %7746 = vmatmul.mubr.bf16.gmra.mrb[24].mxu1 %v9033_v37  ;;  %1579 = vmatprep.mubr.bf16.mxu0 %v9036_v38  ;;  %11871 = vst [vmem:[#allocation9_spill] sm:$0xff] %v9107_v29  ;;  %v1029_v63 = vunpack.c.l.b16 %v9107_v29 }
  0x7b   : > { %7749 = vmatprep.mubr.msk.bf16.mxu1 %vm8645_vm0, %v11744_v41  ;;  %7838 = vmatpush3.bf16.msra.mxu0 %v8475_v0 }
  0x7c   : > { %2352 = vmatpush1.bf16.msra.mxu1 %v8472_v45  ;;  %7839 = vmatprep.subr.bf16.mxu0 %v11744_v41  ;;  %v9119_v45 = vor.u32 %v635_v32, %v633_v20  ;;  %v671_v20 = vshll.u32 %v9094_v17, 16 }
  0x7d   : > { %2353 = vmatprep.subr.bf16.mxu1 %v11741_v40 }
  0x7e   : > { %v673_v32 = vrot.slane %v671_v20, 1 }
  0x7f   : > { %7840 = vmatpush3.bf16.msra.mxu0 %v8479_v22 }
  0x80   : > { %2354 = vmatpush1.bf16.msra.mxu1 %v8473_v54  ;;  %v8477_v54 = vld [vmem:[%s11736_s1 + $0x78] sm:$0xff]   ;;  %7841 = vmatprep.subr.bf16.mxu0 %v11744_v41 }
  0x81   : > { %1580 = vmatmul.mubr.bf16.gmra.mrb[12].mxu0 %v8890_v24  ;;  %2355 = vmatprep.subr.bf16.mxu1 %v11741_v40  ;;  %v8476_v24 = vld [vmem:[%s11736_s1 + $0x70] sm:$0xff]  }
  0x82   : > { %7750 = vmatmul.mubr.bf16.gmra.mrb[28].mxu1 %v6417_v34  ;;  %1587 = vmatprep.mubr.bf16.mxu0 %v6413_v55  ;;  %v9129_v34 = vsel %vm888_vm2, %v913_v28, %v9107_v29  ;;  %v9132_v55 = vsel %vm547_vm1, %v644_v44, %v648_v33  ;;  %v669_v28 = vshrl.u32 %v9094_v17, 16  ;;  %v7164_v33 = vld [vmem:[#allocation2 + $0x64] sm:$0xff]  ;;  %v919_v44 = vrot.slane %v9157_v58, 1 }
  0x83   : > { %7753 = vmatprep.mubr.msk.bf16.mxu1 %vm8645_vm0, %v11744_v41  ;;  %11872 = vst [vmem:[#allocation10_spill] sm:$0xff] %v9129_v34  ;;  %11873 = vst [vmem:[#allocation11_spill] sm:$0xff] %v9132_v55  ;;  %v6420_v21 = vcombine.low %v9100_v31, %v9129_v34  ;;  %v6416_v60 = vcombine.low %v9119_v45, %v9132_v55  ;;  %v1026_v62 = vunpack.c.h.b16 %v9129_v34  ;;  %v1007_v0 = vunpack.c.h.b16 %v9132_v55 }
  0x84   : > { %2356 = vmatpush1.bf16.msra.mxu1 %v8476_v24  ;;  %v1010_v24 = vunpack.c.l.b16 %v9139_v61  ;;  %v9195_v53 = vsel %vm888_vm2, %v919_v44, %v9175_v47 }
  0x85   : > { %2357 = vmatprep.subr.bf16.mxu1 %v11741_v40  ;;  %11877 = vst [vmem:[#allocation15_spill] sm:$0xff] %v9195_v53 }
  0x86   : > { %v1242_v12 = vpack.c.b16 %v1010_v24, %v1007_v0  ;;  %v680_v24 = vshrl.u32 %v9096_v18, 16 }
  0x88   : > { %2358 = vmatpush1.bf16.msra.mxu1 %v8477_v54  ;;  %v665_v54 = vshrl.u32 %v9089_v10, 16 }
  0x89   : > { %1588 = vmatmul.mubr.bf16.gmra.mrb[16].mxu0 %v6412_v2  ;;  %3045 = vmatprep.subr.bf16.mxu1 %v11741_v40  ;;  %v9151_v2 = vld [vmem:[#allocation2 + $0x98] sm:$0xff]  ;;  %v9234_v40 = vld [vmem:[#allocation2 + $0xc8] sm:$0xff] }
  0x8a   : > { %7754 = vmatmul.mubr.bf16.gmra.mrb[32].mxu1 %v1243_v6  ;;  %1595 = vmatprep.mubr.bf16.mxu0 %v1233_v7  ;;  %v6415_v6 = vcombine.low %v8995_v14, %v9001_v4  ;;  %v1252_v7 = vpack.c.b16 %v1029_v63, %v1026_v62  ;;  %v9167_v25 = vrot.slane %v9151_v2, 1  ;;  %v663_v14 = vrot.slane %v661_v16, 1 }
  0x8b   : > { %7757 = vmatprep.mubr.msk.bf16.mxu1 %vm8645_vm0, %v11744_v41  ;;  %v676_v4 = vshll.u32 %v9096_v18, 16  ;;  %v674_v63 = vor.u32 %v673_v32, %v669_v28  ;;  %v701_v28 = vshll.u32 %v9157_v58, 16  ;;  %v1044_v32 = vunpack.c.h.b16 %v9195_v53 }
  0x8c   : > { %11874 = vst [vmem:[#allocation12_spill] sm:$0xff] %v9167_v25  ;;  %v9188_v0 = vor.u32 %v665_v54, %v663_v14  ;;  %v6423_v18 = vcombine.low %v9167_v25, %v9195_v53 }
  0x91   : > { %1596 = vmatmul.mubr.bf16.gmra.mrb[20].mxu0 %v7162_v27 }
  0x92   : > { %7758 = vmatmul.mubr.bf16.gmra.mrb[36].mxu1 %v9112_v36  ;;  %1603 = vmatprep.mubr.bf16.mxu0 %v9115_v39 }
  0x93   : > { %7761 = vmatprep.mubr.msk.bf16.mxu1 %vm8645_vm0, %v11744_v41 }
  0x99   : > { %1604 = vmatmul.mubr.bf16.gmra.mrb[24].mxu0 %v8991_v9  ;;  %v654_v9 = vshrl.u32 %v9067_v59, 16 }
  0x9a   : > { %7762 = vmatmul.mubr.bf16.gmra.mrb[40].mxu1 %v6420_v21  ;;  %1611 = vmatprep.mubr.bf16.mxu0 %v6416_v60  ;;  %v678_v21 = vrot.slane %v676_v4, 1  ;;  %v9181_v60 = vsel %vm888_vm2, %v916_v23, %v9167_v25 }
  0x9b   : > { %7765 = vmatprep.mubr.msk.bf16.mxu1 %vm8645_vm0, %v11744_v41  ;;  %v659_v27 = vor.u32 %v658_v15, %v654_v9  ;;  %11876 = vst [vmem:[#allocation14_spill] sm:$0xff] %v9181_v60  ;;  %v691_v15 = vshll.u32 %v9151_v2, 16 }
  0x9c   : > { %v9198_v9 = vsel %vm547_vm1, %v674_v63, %v678_v21  ;;  %v9210_v20 = vor.u32 %v680_v24, %v678_v21  ;;  %v6418_v21 = vcombine.low %v9089_v10, %v9094_v17  ;;  %v699_v24 = vshrl.u32 %v9157_v58, 16  ;;  %v7166_v10 = vld [vmem:[#allocation2 + $0x84] sm:$0xff] }
  0x9d   : > { %v9184_v62 = vsel %vm547_vm1, %v659_v27, %v663_v14  ;;  %11878 = vst [vmem:[#allocation16_spill] sm:$0xff] %v9198_v9  ;;  %v6419_v16 = vcombine.low %v9188_v0, %v9198_v9  ;;  %v684_v14 = vshrl.u32 %v9149_v1, 16  ;;  %v693_v27 = vrot.slane %v691_v15, 1  ;;  %v9229_v15 = vld [vmem:[#allocation2 + $0xc0] sm:$0xff] }
  0x9e   : > { %v1025_v44 = vunpack.c.h.b16 %v9198_v9  ;;  %v1028_v54 = vunpack.c.l.b16 %v9210_v20 }
  0xa0   : > { %v1251_v63 = vpack.c.b16 %v1028_v54, %v1025_v44  ;;  %v695_v44 = vshrl.u32 %v9151_v2, 16 }
  0xa1   : > { %1612 = vmatmul.mubr.bf16.gmra.mrb[28].mxu0 %v6415_v6  ;;  %v9200_v6 = vld [vmem:[#allocation2 + $0xb0] sm:$0xff] }
  0xa2   : > { %7766 = vmatmul.mubr.bf16.gmra.mrb[44].mxu1 %v1252_v7  ;;  %1619 = vmatprep.mubr.bf16.mxu0 %v1242_v12  ;;  %v9202_v7 = vld [vmem:[#allocation2 + $0xb8] sm:$0xff]  ;;  %v686_v12 = vshll.u32 %v9149_v1, 16  ;;  %v922_v22 = vrot.slane %v9200_v6, 1 }
  0xa3   : > { %7769 = vmatprep.mubr.msk.bf16.mxu1 %vm8645_vm0, %v11744_v41  ;;  %v9214_v23 = vrot.slane %v9202_v7, 1 }
  0xa4   : > { %v688_v4 = vrot.slane %v686_v12, 1  ;;  %v706_v12 = vshll.u32 %v9159_v26, 16 }
  0xa5   : > { %11879 = vst [vmem:[#allocation17_spill] sm:$0xff] %v9214_v23 }
  0xa6   : > { %v689_v17 = vor.u32 %v688_v4, %v684_v14  ;;  %v9252_v14 = vrot.slane %v9234_v40, 1 }
  0xa8   : > { %v9249_v54 = vsel %vm547_vm1, %v689_v17, %v693_v27  ;;  %11881 = vst [vmem:[#allocation19_spill] sm:$0xff] %v9252_v14 }
  0xa9   : > { %1620 = vmatmul.mubr.bf16.gmra.mrb[32].mxu0 %v7164_v33  ;;  %v1047_v33 = vunpack.c.l.b16 %v9175_v47 }
  0xaa   : > { %7770 = vmatmul.mubr.bf16.gmra.mrb[48].mxu1 %v9181_v60  ;;  %1627 = vmatprep.mubr.bf16.mxu0 %v9184_v62 }
  0xab   : > { %7773 = vmatprep.mubr.msk.bf16.mxu1 %vm8645_vm0, %v11744_v41 }
  0xb1   : > { %1628 = vmatmul.mubr.bf16.gmra.mrb[36].mxu0 %v9067_v59  ;;  %v1261_v59 = vpack.c.b16 %v1047_v33, %v1044_v32  ;;  %v9244_v32 = vsel %vm888_vm2, %v922_v22, %v9214_v23  ;;  %v925_v33 = vrot.slane %v9229_v15, 1  ;;  %v9257_v22 = vor.u32 %v695_v44, %v693_v27 }
  0xb2   : > { %7774 = vmatmul.mubr.bf16.gmra.mrb[52].mxu1 %v6423_v18  ;;  %1635 = vmatprep.mubr.bf16.mxu0 %v6419_v16  ;;  %v703_v18 = vrot.slane %v701_v28, 1  ;;  %v8484_v16 = vld [vmem:[%s11736_s1 + $0xb0] sm:$0xff]   ;;  %v8486_v28 = vld [vmem:[%s11736_s1 + $0xb8] sm:$0xff]   ;;  %11880 = vst [vmem:[#allocation18_spill] sm:$0xff] %v9244_v32 }
  0xb3   : > { %7777 = vmatprep.mubr.msk.bf16.mxu1 %vm8645_vm0, %v11744_v41  ;;  %7842 = vmatpush3.bf16.msra.mxu0 %v8484_v16  ;;  %v1065_v16 = vunpack.c.l.b16 %v9252_v14 }
  0xb4   : > { %7843 = vmatprep.subr.bf16.mxu0 %v11744_v41  ;;  %v704_v4 = vor.u32 %v703_v18, %v699_v24 }
  0xb7   : > { %7844 = vmatpush3.bf16.msra.mxu0 %v8486_v28  ;;  %v716_v28 = vshll.u32 %v9200_v6, 16 }
  0xb8   : > { %7953 = vmatprep.subr.bf16.mxu0 %v11744_v41 }
  0xb9   : > { %1636 = vmatmul.mubr.bf16.gmra.mrb[40].mxu0 %v6418_v21  ;;  %v708_v21 = vrot.slane %v706_v12, 1 }
  0xba   : > { %7778 = vmatmul.mubr.bf16.gmra.mrb[56].mxu1 %v1261_v59  ;;  %1643 = vmatprep.mubr.bf16.mxu0 %v1251_v63  ;;  %v710_v59 = vshrl.u32 %v9159_v26, 16  ;;  %v9264_v63 = vsel %vm888_vm2, %v925_v33, %v9252_v14  ;;  %v6421_v33 = vcombine.low %v9151_v2, %v9157_v58  ;;  %v731_v14 = vshll.u32 %v9229_v15, 16 }
  0xbb   : > { %7781 = vmatprep.mubr.msk.bf16.mxu1 %vm8645_vm0, %v11744_v41  ;;  %11882 = vst [vmem:[#allocation20_spill] sm:$0xff] %v9264_v63  ;;  %v9267_v24 = vsel %vm547_vm1, %v704_v4, %v708_v21  ;;  %v6426_v12 = vcombine.low %v9214_v23, %v9264_v63  ;;  %v1062_v26 = vunpack.c.h.b16 %v9264_v63  ;;  %v721_v4 = vshll.u32 %v9202_v7, 16 }
  0xbc   : > { %11883 = vst [vmem:[#allocation21_spill] sm:$0xff] %v9267_v24  ;;  %v6422_v18 = vcombine.low %v9257_v22, %v9267_v24  ;;  %v9273_v27 = vor.u32 %v710_v59, %v708_v21  ;;  %v9286_v21 = vld [vmem:[#allocation2 + $0xd0] sm:$0xff]  ;;  %v9288_v59 = vld [vmem:[#allocation2 + $0xd8] sm:$0xff]  ;;  %v736_v63 = vshll.u32 %v9234_v40, 16  ;;  %v725_v23 = vshrl.u32 %v9202_v7, 16 }
  0xbd   : > { %v1270_v44 = vpack.c.b16 %v1065_v16, %v1062_v26  ;;  %v9294_v2 = vrot.slane %v9288_v59, 1  ;;  %v723_v58 = vrot.slane %v721_v4, 1  ;;  %v11885_v26 = vmov 0.0  }
  0xbe   : > { %v1046_v17 = vunpack.c.l.b16 %v9273_v27  ;;  %v738_v47 = vrot.slane %v736_v63, 1 }
  0xbf   : > { %11884 = vst [vmem:[#allocation22_spill] sm:$0xff] %v9294_v2 }
  0xc1   : > { %1644 = vmatmul.mubr.bf16.gmra.mrb[44].mxu0 %v7166_v10  ;;  %v1043_v10 = vunpack.c.h.b16 %v9267_v24 }
  0xc2   : > { %7782 = vmatmul.mubr.bf16.gmra.mrb[60].mxu1 %v9244_v32  ;;  %1651 = vmatprep.mubr.bf16.mxu0 %v9249_v54  ;;  %v9318_v32 = vor.u32 %v725_v23, %v723_v58 }
  0xc3   : > { %7785 = vmatprep.mubr.msk.bf16.mxu1 %vm8645_vm0, %v11744_v41 }
  0xc4   : > { %11888 = vst [vmem:[#allocation25_spill] sm:$0xff] %v9318_v32 }
  0xc9   : > { %1652 = vmatmul.mubr.bf16.gmra.mrb[48].mxu0 %v9149_v1  ;;  %v1260_v1 = vpack.c.b16 %v1046_v17, %v1043_v10  ;;  %v9298_v10 = vld [vmem:[#allocation2 + $0xe0] sm:$0xff]  ;;  %v729_v17 = vshrl.u32 %v9229_v15, 16 }
  0xca   : > { %7786 = vmatmul.mubr.bf16.gmra.mrb[64].mxu1 %v6426_v12  ;;  %1659 = vmatprep.mubr.bf16.mxu0 %v6422_v18  ;;  %v714_v12 = vshrl.u32 %v9200_v6, 16  ;;  %v718_v18 = vrot.slane %v716_v28, 1  ;;  %v733_v28 = vrot.slane %v731_v14, 1  ;;  %v931_v4 = vrot.slane %v9298_v10, 1 }
  0xcb   : > { %7789 = vmatprep.mubr.msk.bf16.mxu1 %vm8645_vm0, %v11744_v41  ;;  %v928_v41 = vrot.slane %v9286_v21, 1 }
  0xcc   : > { %v719_v16 = vor.u32 %v718_v18, %v714_v12  ;;  %v734_v14 = vor.u32 %v733_v28, %v729_v17 }
  0xce   : > { %v9311_v12 = vsel %vm547_vm1, %v719_v16, %v723_v58  ;;  %v9328_v53 = vsel %vm547_vm1, %v734_v14, %v738_v47 }
  0xcf   : > { %11890 = vst [vmem:[#allocation27_spill] sm:$0xff] %v9328_v53  ;;  %v6425_v17 = vcombine.low %v9318_v32, %v9328_v53  ;;  %v1061_v28 = vunpack.c.h.b16 %v9328_v53 }
  0xd1   : > { %1660 = vmatmul.mubr.bf16.gmra.mrb[52].mxu0 %v6421_v33  ;;  %v9302_v33 = vld [vmem:[#allocation2 + $0xe8] sm:$0xff] }
  0xd2   : > { %7790 = vmatmul.mubr.bf16.gmra.mrb[68].mxu1 %v1270_v44  ;;  %1667 = vmatprep.mubr.bf16.mxu0 %v1260_v1  ;;  %v7168_v44 = vld [vmem:[#allocation2 + $0xa4] sm:$0xff]  ;;  %v9306_v1 = vsel %vm888_vm2, %v928_v41, %v9294_v2  ;;  %v9314_v18 = vrot.slane %v9302_v33, 1  ;;  %v740_v41 = vshrl.u32 %v9234_v40, 16 }
  0xd3   : > { %7793 = vmatprep.mubr.msk.bf16.mxu1 %vm8645_vm0, %v11885_v26  ;;  %11886 = vst [vmem:[#allocation23_spill] sm:$0xff] %v9306_v1 }
  0xd4   : > { %11887 = vst [vmem:[#allocation24_spill] sm:$0xff] %v9314_v18  ;;  %v9325_v16 = vsel %vm888_vm2, %v931_v4, %v9314_v18  ;;  %v9334_v23 = vor.u32 %v740_v41, %v738_v47  ;;  %v1083_v58 = vunpack.c.l.b16 %v9314_v18  ;;  %v746_v4 = vshll.u32 %v9286_v21, 16 }
  0xd5   : > { %11889 = vst [vmem:[#allocation26_spill] sm:$0xff] %v9325_v16  ;;  %v6429_v63 = vcombine.low %v9294_v2, %v9325_v16  ;;  %v1080_v40 = vunpack.c.h.b16 %v9325_v16  ;;  %v6424_v47 = vcombine.low %v9202_v7, %v9229_v15  ;;  %v751_v41 = vshll.u32 %v9288_v59, 16 }
  0xd6   : > { %11891 = vst [vmem:[#allocation28_spill] sm:$0xff] %v9334_v23  ;;  %v744_v18 = vshrl.u32 %v9286_v21, 16  ;;  %v748_v16 = vrot.slane %v746_v4, 1  ;;  %v761_v2 = vshll.u32 %v9298_v10, 16  ;;  %v766_v4 = vshll.u32 %v9302_v33, 16 }
  0xd7   : > { %v1279_v14 = vpack.c.b16 %v1083_v58, %v1080_v40  ;;  %v753_v15 = vrot.slane %v751_v41, 1  ;;  %v9359_v58 = vld [vmem:[#allocation2 + $0x100] sm:$0xff] }
  0xd8   : > { %v749_v40 = vor.u32 %v748_v16, %v744_v18  ;;  %v937_v41 = vrot.slane %v9359_v58, 1  ;;  %v768_v53 = vrot.slane %v766_v4, 1 }
  0xd9   : > { %1668 = vmatmul.mubr.bf16.gmra.mrb[56].mxu0 %v7168_v44  ;;  %v1064_v44 = vunpack.c.l.b16 %v9334_v23  ;;  %v755_v23 = vshrl.u32 %v9288_v59, 16 }
  0xda   : > { %7794 = vmatmul.mubr.bf16.gmra.mrb[72].mxu1 %v9306_v1  ;;  %1675 = vmatprep.mubr.bf16.mxu0 %v9311_v12  ;;  %v9372_v18 = vsel %vm547_vm1, %v749_v40, %v753_v15 }
  0xdb   : > { %7797 = vmatprep.mubr.msk.bf16.mxu1 %vm8645_vm0, %v11885_v26  ;;  %11894 = vst [vmem:[#allocation31_spill] sm:$0xff] %v9372_v18  ;;  %v9379_v25 = vor.u32 %v755_v23, %v753_v15 }
  0xdd   : > { %11896 = vst [vmem:[#allocation33_spill] sm:$0xff] %v9379_v25 }
  0xe1   : > { %1676 = vmatmul.mubr.bf16.gmra.mrb[60].mxu0 %v9200_v6  ;;  %v1269_v6 = vpack.c.b16 %v1064_v44, %v1061_v28  ;;  %v759_v28 = vshrl.u32 %v9298_v10, 16  ;;  %v763_v44 = vrot.slane %v761_v2, 1 }
  0xe2   : > { %7798 = vmatmul.mubr.bf16.gmra.mrb[76].mxu1 %v6429_v63  ;;  %1683 = vmatprep.mubr.bf16.mxu0 %v6425_v17  ;;  %v9347_v63 = vld [vmem:[#allocation2 + $0xf0] sm:$0xff]  ;;  %v9349_v17 = vld [vmem:[#allocation2 + $0xf8] sm:$0xff] }
  0xe3   : > { %7801 = vmatprep.mubr.msk.bf16.mxu1 %vm8645_vm0, %v11885_v26  ;;  %v934_v1 = vrot.slane %v9347_v63, 1  ;;  %v9355_v7 = vrot.slane %v9349_v17, 1  ;;  %v764_v2 = vor.u32 %v763_v44, %v759_v28 }
  0xe5   : > { %11892 = vst [vmem:[#allocation29_spill] sm:$0xff] %v9355_v7  ;;  %v9389_v29 = vsel %vm547_vm1, %v764_v2, %v768_v53 }
  0xe6   : > { %11898 = vst [vmem:[#allocation35_spill] sm:$0xff] %v9389_v29  ;;  %v6428_v44 = vcombine.low %v9379_v25, %v9389_v29  ;;  %v1079_v4 = vunpack.c.h.b16 %v9389_v29  ;;  %v9438_v25 = vld [vmem:[#allocation2] sm:$0xff] }
  0xe9   : > { %1684 = vmatmul.mubr.bf16.gmra.mrb[64].mxu0 %v6424_v47  ;;  %v9363_v47 = vld [vmem:[#allocation2 + $0x108] sm:$0xff] }
  0xea   : > { %7802 = vmatmul.mubr.bf16.gmra.mrb[80].mxu1 %v1279_v14  ;;  %1691 = vmatprep.mubr.bf16.mxu0 %v1269_v6  ;;  %v7170_v14 = vld [vmem:[#allocation2 + $0xc4] sm:$0xff]  ;;  %v9367_v6 = vsel %vm888_vm2, %v934_v1, %v9355_v7  ;;  %v9375_v16 = vrot.slane %v9363_v47, 1  ;;  %v770_v1 = vshrl.u32 %v9302_v33, 16 }
  0xeb   : > { %7805 = vmatprep.mubr.msk.bf16.mxu1 %vm8645_vm0, %v11885_v26  ;;  %11893 = vst [vmem:[#allocation30_spill] sm:$0xff] %v9367_v6 }
  0xec   : > { %11895 = vst [vmem:[#allocation32_spill] sm:$0xff] %v9375_v16  ;;  %v9386_v40 = vsel %vm888_vm2, %v937_v41, %v9375_v16  ;;  %v9395_v23 = vor.u32 %v770_v1, %v768_v53  ;;  %v1101_v15 = vunpack.c.l.b16 %v9375_v16  ;;  %v776_v41 = vshll.u32 %v9347_v63, 16 }
  0xed   : > { %11897 = vst [vmem:[#allocation34_spill] sm:$0xff] %v9386_v40  ;;  %v6432_v28 = vcombine.low %v9355_v7, %v9386_v40  ;;  %v1098_v33 = vunpack.c.h.b16 %v9386_v40  ;;  %v6427_v53 = vcombine.low %v9288_v59, %v9298_v10  ;;  %v781_v1 = vshll.u32 %v9349_v17, 16 }
  0xee   : > { %11899 = vst [vmem:[#allocation36_spill] sm:$0xff] %v9395_v23  ;;  %v774_v16 = vshrl.u32 %v9347_v63, 16  ;;  %v778_v40 = vrot.slane %v776_v41, 1  ;;  %v791_v7 = vshll.u32 %v9359_v58, 16  ;;  %v796_v41 = vshll.u32 %v9363_v47, 16 }
  0xef   : > { %v1288_v2 = vpack.c.b16 %v1101_v15, %v1098_v33  ;;  %v783_v10 = vrot.slane %v781_v1, 1  ;;  %v9420_v15 = vld [vmem:[#allocation2 + $0x120] sm:$0xff] }
  0xf0   : > { %v779_v33 = vor.u32 %v778_v40, %v774_v16  ;;  %v943_v1 = vrot.slane %v9420_v15, 1  ;;  %v798_v29 = vrot.slane %v796_v41, 1  ;;  %v9455_v41 = vld [vmem:[#allocation2 + $0x8] sm:$0xff] }
  0xf1   : > { %1692 = vmatmul.mubr.bf16.gmra.mrb[68].mxu0 %v7170_v14  ;;  %v1082_v14 = vunpack.c.l.b16 %v9395_v23  ;;  %v785_v23 = vshrl.u32 %v9349_v17, 16 }
  0xf2   : > { %7806 = vmatmul.mubr.bf16.gmra.mrb[84].mxu1 %v9367_v6  ;;  %1699 = vmatprep.mubr.bf16.mxu0 %v9372_v18  ;;  %v9433_v16 = vsel %vm547_vm1, %v779_v33, %v783_v10  ;;  %v800_v18 = vshrl.u32 %v9363_v47, 16 }
  0xf3   : > { %7809 = vmatprep.mubr.msk.bf16.mxu1 %vm8645_vm0, %v11885_v26  ;;  %11902 = vst [vmem:[#allocation39_spill] sm:$0xff] %v9433_v16 }
  0xf9   : > { %1700 = vmatmul.mubr.bf16.gmra.mrb[72].mxu0 %v9286_v21  ;;  %v1278_v21 = vpack.c.b16 %v1082_v14, %v1079_v4  ;;  %v789_v4 = vshrl.u32 %v9359_v58, 16  ;;  %v793_v14 = vrot.slane %v791_v7, 1 }
  0xfa   : > { %7810 = vmatmul.mubr.bf16.gmra.mrb[88].mxu1 %v6432_v28  ;;  %1707 = vmatprep.mubr.bf16.mxu0 %v6428_v44  ;;  %v9408_v28 = vld [vmem:[#allocation2 + $0x110] sm:$0xff]  ;;  %v9410_v44 = vld [vmem:[#allocation2 + $0x118] sm:$0xff] }
  0xfb   : > { %7813 = vmatprep.mubr.msk.bf16.mxu1 %vm8645_vm0, %v11885_v26  ;;  %v940_v6 = vrot.slane %v9408_v28, 1  ;;  %v9416_v59 = vrot.slane %v9410_v44, 1  ;;  %v794_v7 = vor.u32 %v793_v14, %v789_v4  ;;  %v551_v14 = vshll.u32 %v9438_v25, 16 }
  0xfd   : > { %11900 = vst [vmem:[#allocation37_spill] sm:$0xff] %v9416_v59  ;;  %v9452_v4 = vsel %vm547_vm1, %v794_v7, %v798_v29 }
  0xfe   : > { %11906 = vst [vmem:[#allocation43_spill] sm:$0xff] %v9452_v4 }
 0x101   : > { %1708 = vmatmul.mubr.bf16.gmra.mrb[76].mxu0 %v6427_v53  ;;  %v9424_v53 = vld [vmem:[#allocation2 + $0x128] sm:$0xff] }
 0x102   : > { %7814 = vmatmul.mubr.bf16.gmra.mrb[92].mxu1 %v1288_v2  ;;  %1715 = vmatprep.mubr.bf16.mxu0 %v1278_v21  ;;  %v7172_v2 = vld [vmem:[#allocation2 + $0xe4] sm:$0xff]  ;;  %v9428_v21 = vsel %vm888_vm2, %v940_v6, %v9416_v59  ;;  %v9436_v40 = vrot.slane %v9424_v53, 1  ;;  %v9442_v6 = vor.u32 %v785_v23, %v783_v10  ;;  %v9461_v10 = vor.u32 %v800_v18, %v798_v29 }
 0x103   : > { %7817 = vmatprep.mubr.msk.bf16.mxu1 %vm8645_vm0, %v11885_v26  ;;  %11901 = vst [vmem:[#allocation38_spill] sm:$0xff] %v9428_v21  ;;  %v806_v29 = vshll.u32 %v9408_v28, 16 }
 0x104   : > { %11903 = vst [vmem:[#allocation40_spill] sm:$0xff] %v9436_v40  ;;  %11904 = vst [vmem:[#allocation41_spill] sm:$0xff] %v9442_v6  ;;  %v9449_v33 = vsel %vm888_vm2, %v943_v1, %v9436_v40  ;;  %v6431_v47 = vcombine.low %v9442_v6, %v9452_v4  ;;  %v556_v1 = vshll.u32 %v9455_v41, 16  ;;  %v1100_v60 = vunpack.c.l.b16 %v9461_v10 }
 0x105   : > { %11905 = vst [vmem:[#allocation42_spill] sm:$0xff] %v9449_v33  ;;  %v6435_v23 = vcombine.low %v9416_v59, %v9449_v33  ;;  %11907 = vst [vmem:[#allocation44_spill] sm:$0xff] %v9461_v10  ;;  %v1164_v7 = vunpack.c.h.b16 %v9449_v33  ;;  %v1097_v59 = vunpack.c.h.b16 %v9452_v4  ;;  %v811_v4 = vshll.u32 %v9410_v44, 16 }
 0x106   : > { %v821_v10 = vshll.u32 %v9420_v15, 16 }
 0x107   : > { %v1287_v33 = vpack.c.b16 %v1100_v60, %v1097_v59  ;;  %v819_v60 = vshrl.u32 %v9420_v15, 16  ;;  %v826_v59 = vshll.u32 %v9424_v53, 16 }
 0x109   : > { %1716 = vmatmul.mubr.bf16.gmra.mrb[80].mxu0 %v7172_v2  ;;  %v549_v2 = vshrl.u32 %v9438_v25, 16 }
 0x10a   : > { %7818 = vmatmul.mubr.bf16.gmra.mrb[96].mxu1 %v9428_v21  ;;  %1723 = vmatprep.mubr.bf16.mxu0 %v9433_v16  ;;  %v553_v21 = vrot.slane %v551_v14, 1  ;;  %v1167_v16 = vunpack.c.l.b16 %v9436_v40  ;;  %v558_v14 = vrot.slane %v556_v1, 1  ;;  %v804_v40 = vshrl.u32 %v9408_v28, 16  ;;  %v7174_v1 = vld [vmem:[#allocation2 + $0x104] sm:$0xff] }
 0x10b   : > { %7821 = vmatprep.mubr.msk.bf16.mxu1 %vm8645_vm0, %v11885_v26 }
 0x10c   : > { %v554_v18 = vor.u32 %v553_v21, %v549_v2  ;;  %v1297_v6 = vpack.c.b16 %v1167_v16, %v1164_v7 }
 0x10e   : > { %v559_v34 = vsel %vm547_vm1, %v554_v18, %v558_v14 }
 0x111   : > { %1724 = vmatmul.mubr.bf16.gmra.mrb[84].mxu0 %v9347_v63  ;;  %v6430_v63 = vcombine.low %v9349_v17, %v9359_v58  ;;  %v813_v17 = vrot.slane %v811_v4, 1  ;;  %v823_v58 = vrot.slane %v821_v10, 1  ;;  %v828_v4 = vrot.slane %v826_v59, 1 }
 0x112   : > { %7822 = vmatmul.mubr.bf16.gmra.mrb[100].mxu1 %v6435_v23  ;;  %1731 = vmatprep.mubr.bf16.mxu0 %v6431_v47  ;;  %v808_v23 = vrot.slane %v806_v29, 1  ;;  %v560_v47 = vshrl.u32 %v9455_v41, 16  ;;  %v815_v29 = vshrl.u32 %v9410_v44, 16 }
 0x113   : > { %7825 = vmatprep.mubr.msk.bf16.mxu1 %vm8645_vm0, %v11885_v26 }
 0x114   : > { %v809_v21 = vor.u32 %v808_v23, %v804_v40  ;;  %v562_v2 = vor.u32 %v560_v47, %v558_v14  ;;  %v9492_v18 = vor.u32 %v815_v29, %v813_v17  ;;  %v962_v14 = vunpack.c.h.b16 %v8828_v5  ;;  %v8482_v47 = vld [vmem:[%s11736_s1 + $0x188] sm:$0xff]  }
 0x115   : > { %v965_v23 = vunpack.c.l.b16 %v8942_v48  ;;  %v8485_v48 = vld [vmem:[%s11736_s1 + $0x190] sm:$0xff]  }
 0x116   : > { %v9487_v40 = vsel %vm547_vm1, %v809_v21, %v813_v17  ;;  %v11909_v21 = vmov 0  }
 0x119   : > { %1732 = vmatmul.mubr.bf16.gmra.mrb[88].mxu0 %v6430_v63 }
 0x11a   : > { %7826 = vmatmul.mubr.bf16.gmra.mrb[104].mxu1 %v1297_v6  ;;  %1739 = vmatprep.mubr.bf16.mxu0 %v1287_v33  ;;  %v8480_v6 = vld [vmem:[%s11736_s1 + $0x180] sm:$0xff]   ;;  %v824_v33 = vor.u32 %v823_v58, %v819_v60  ;;  %v8589_v60 = vld [vmem:[#allocation2 + $0x10] sm:$0xff] }
 0x11b   : > { %2359 = vmatprep.mubr.bf16.mxu1 %v559_v34  ;;  %v6461_v34 = vcombine.low %v562_v2, %v8828_v5 }
 0x11c   : > { %v9497_v63 = vsel %vm547_vm1, %v824_v33, %v828_v4  ;;  %v6433_v33 = vcombine.low %v9410_v44, %v9420_v15  ;;  %v8491_v44 = vld [vmem:[%s11736_s1 + $0x1a8] sm:$0xff]  }
 0x11d   : > { %v1806_v16 = vpop.f32.mrb[0].mxu1  ;;  %11908 = vst [vmem:[#allocation45_spill] sm:$0xff] %v9497_v63  ;;  %v6434_v5 = vcombine.low %v9492_v18, %v9497_v63 }
 0x11e   : > { %v7723_v7 = vpop.f32.mrb[1].mxu1  ;;  %v2028_v16 = vpack.c.b16 %v965_v23, %v962_v14  ;;  %v8489_v14 = vld [vmem:[%s11736_s1 + $0x1a0] sm:$0xff]  }
 0x11f   : > { %v1809_v32 = vpop.f32.mrb[2].mxu1  ;;  %v1163_v7 = vunpack.c.h.b16 %v9497_v63  ;;  %v9646_v63 = vcombine.low %v9065_v57, %v9115_v39  ;;  %v998_v57 = vunpack.c.h.b16 %v9115_v39 }
 0x120   : > { %v7724_v10 = vpop.f32.mrb[3].mxu1  ;;  %v830_v32 = vshrl.u32 %v9424_v53, 16  ;;  %v6460_v53 = vcombine.low %v9455_v41, %v8589_v60  ;;  %v9543_v60 = vcombine.low %v8963_v56, %v9036_v38  ;;  %v890_v56 = vrot.slane %v9455_v41, 1  ;;  %v8592_v41 = vld [vmem:[#allocation2 + $0x30] sm:$0xff] }
 0x121   : > { %1740 = vmatmul.mubr.bf16.gmra.mrb[92].mxu0 %v7174_v1  ;;  %11911 = vst [vmem:[#allocation47_spill] sm:$0xff] %v9646_v63 }
 0x122   : > { %2360 = vmatmul.mubr.bf16.vlgmr.msra.gmra.mrb[108].mxu1 %v9438_v25  ;;  %1747 = vmatprep.mubr.bf16.mxu0 %v9487_v40  ;;  %v9507_v58 = vor.u32 %v830_v32, %v828_v4  ;;  %v6983_v4 = vld [vmem:[#allocation2 + $0x14] sm:$0xff] }
 0x123   : > { %3046 = vmatpush1.bf16.msra.mxu1 %v8480_v6  ;;  %2367 = vmatprep.mubr.bf16.mxu1 %v6461_v34  ;;  %v8488_v6 = vld [vmem:[%s11736_s1 + $0x198] sm:$0xff]  }
 0x124   : > { %3047 = vmatprep.subr.bf16.mxu1 %v11909_v21  ;;  %11910 = vst [vmem:[#allocation46_spill] sm:$0xff] %v9507_v58  ;;  %v1166_v29 = vunpack.c.l.b16 %v9507_v58 }
 0x125   : > { %v1814_v2 = vpop.f32.mrb[4].mxu1 }
 0x126   : > { %v7727_v17 = vpop.f32.mrb[5].mxu1  ;;  %v1296_v10 = vpack.c.b16 %v1166_v29, %v1163_v7  ;;  %v983_v7 = vunpack.c.l.b16 %v9045_v46  ;;  %v8495_v29 = vld [vmem:[%s11736_s1 + $0x1b8] sm:$0xff]  }
 0x127   : > { %v9509_v59 = vpop.f32.mrb[6].mxu1  ;;  %3048 = vmatpush1.bf16.msra.mxu1 %v8482_v47  ;;  %v7176_v47 = vld [vmem:[#allocation2 + $0x124] sm:$0xff] }
 0x128   : > { %v7728_v1 = vpop.f32.mrb[7].mxu1  ;;  %3049 = vmatprep.subr.bf16.mxu1 %v11909_v21 }
 0x129   : > { %1748 = vmatmul.mubr.bf16.gmra.mrb[96].mxu0 %v9408_v28  ;;  %v980_v1 = vunpack.c.h.b16 %v9036_v38 }
 0x12a   : > { %2368 = vmatmul.mubr.bf16.gmra.mrb[112].mxu1 %v6460_v53  ;;  %1755 = vmatprep.mubr.bf16.mxu0 %v6434_v5  ;;  %v8494_v53 = vld [vmem:[%s11736_s1 + $0x1b0] sm:$0xff]  }
 0x12b   : > { %2375 = vmatprep.mubr.bf16.mxu1 %v2028_v16  ;;  %3050 = vmatpush1.bf16.msra.mxu1 %v8485_v48  ;;  %v9549_v16 = vld [vmem:[#allocation2 + $0x20] sm:$0xff]  ;;  %v889_v48 = vrot.slane %v9438_v25, 1 }
 0x12c   : > { %3051 = vmatprep.subr.bf16.mxu1 %v11909_v21 }
 0x12d   : > { %v9522_v34 = vpop.f32.mrb[8].mxu1  ;;  %v891_v38 = vsel %vm888_vm2, %v889_v48, %v890_v56 }
 0x12e   : > { %v7731_v28 = vpop.f32.mrb[9].mxu1 }
 0x12f   : > { %v9526_v32 = vpop.f32.mrb[10].mxu1  ;;  %3052 = vmatpush1.bf16.msra.mxu1 %v8488_v6 }
 0x130   : > { %v7732_v23 = vpop.f32.mrb[11].mxu1  ;;  %3053 = vmatprep.subr.bf16.mxu1 %v11909_v21 }
 0x131   : > { %1756 = vmatmul.mubr.bf16.gmra.mrb[100].mxu0 %v6433_v33 }
 0x132   : > { %2376 = vmatmul.mubr.bf16.gmra.mrb[116].mxu1 %v6983_v4  ;;  %1763 = vmatprep.mubr.bf16.mxu0 %v1296_v10  ;;  %v8591_v4 = vld [vmem:[#allocation2 + $0x28] sm:$0xff] }
 0x133   : > { %2383 = vmatprep.mubr.bf16.mxu1 %v8953_v51  ;;  %3054 = vmatpush1.bf16.msra.mxu1 %v8489_v14  ;;  %v9565_v10 = vcombine.low %v8591_v4, %v8592_v41  ;;  %v9599_v4 = vld [vmem:[#allocation2 + $0x34] sm:$0xff] }
 0x134   : > { %3055 = vmatprep.subr.bf16.mxu1 %v11909_v21 }
 0x135   : > { %v9537_v15 = vpop.f32.mrb[12].mxu1 }
 0x136   : > { %v7735_v2 = vpop.f32.mrb[13].mxu1 }
 0x137   : > { %v9539_v17 = vpop.f32.mrb[14].mxu1  ;;  %3056 = vmatpush1.bf16.msra.mxu1 %v8491_v44  ;;  %v9570_v44 = vpack.c.b16 %v983_v7, %v980_v1  ;;  %v8499_v1 = vld [vmem:[%s11736_s1 + $0x1c8] sm:$0xff]  }
 0x138   : > { %v7736_v5 = vpop.f32.mrb[15].mxu1  ;;  %3057 = vmatprep.subr.bf16.mxu1 %v11909_v21 }
 0x139   : > { %1764 = vmatmul.mubr.bf16.gmra.mrb[104].mxu0 %v7176_v47  ;;  %v9575_v47 = vld [vmem:[%s11736_s1 + $0x200] sm:$0xff]   ;;  %v9589_v5 = vld [vmem:[%s11736_s1 + $0x208] sm:$0xff]  }
 0x13a   : > { %2384 = vmatmul.mubr.bf16.gmra.mrb[120].mxu1 %v9549_v16  ;;  %7845 = vmatprep.mubr.msk.bf16.mxu0 %vm8645_vm0, %v11885_v26 }
 0x13b   : > { %2391 = vmatprep.mubr.bf16.mxu1 %v9543_v60  ;;  %3058 = vmatpush1.bf16.msra.mxu1 %v8494_v53  ;;  %v8498_v53 = vld [vmem:[%s11736_s1 + $0x1c0] sm:$0xff]  }
 0x13c   : > { %v1557_v6 = vpop.f32.mrb[0].mxu0  ;;  %3059 = vmatprep.subr.bf16.mxu1 %v11909_v21 }
 0x13d   : > { %v9563_v33 = vpop.f32.mrb[16].mxu1  ;;  %v1559_v28 = vpop.f32.mrb[1].mxu0  ;;  %v6462_v6 = vcombine.low %v890_v56, %v8840_v8 }
 0x13e   : > { %v7739_v25 = vpop.f32.mrb[17].mxu1  ;;  %v1560_v14 = vpop.f32.mrb[2].mxu0 }
 0x13f   : > { %v9568_v46 = vpop.f32.mrb[18].mxu1  ;;  %v1562_v23 = vpop.f32.mrb[3].mxu0  ;;  %3060 = vmatpush1.bf16.msra.mxu1 %v8495_v29 }
 0x140   : > { %v7740_v2 = vpop.f32.mrb[19].mxu1  ;;  %3061 = vmatprep.subr.bf16.mxu1 %v11909_v21  ;;  %v9610_v23 = vld [vmem:[%s11736_s1 + $0x210] sm:$0xff]  }
 0x141   : > { %7846 = vmatmul.mubr.bf16.vlgmr.msra.gmra.mrb[108].mxu0 %v891_v38  ;;  %v8502_v2 = vld [vmem:[%s11736_s1 + $0x1d0] sm:$0xff]  }
 0x142   : > { %2392 = vmatmul.mubr.bf16.gmra.mrb[124].mxu1 %v9565_v10  ;;  %7849 = vmatprep.mubr.msk.bf16.mxu0 %vm8645_vm0, %v11885_v26 }
 0x143   : > { %2399 = vmatprep.mubr.bf16.mxu1 %v9570_v44  ;;  %7954 = vmatpush3.bf16.msra.mxu0 %v9575_v47 }
 0x144   : > { %v1565_v48 = vpop.f32.mrb[4].mxu0  ;;  %7955 = vmatprep.subr.bf16.mxu0 %v11885_v26  ;;  %3062 = vmatpush1.bf16.msra.mxu1 %v8498_v53  ;;  %v966_v53 = vunpack.c.l.b16 %v8822_v3  ;;  %v8503_v3 = vld [vmem:[%s11736_s1 + $0x1d8] sm:$0xff]  }
 0x145   : > { %v9595_v7 = vpop.f32.mrb[20].mxu1  ;;  %v1567_v29 = vpop.f32.mrb[5].mxu0  ;;  %3063 = vmatprep.subr.bf16.mxu1 %v11909_v21  ;;  %v9627_v48 = vld [vmem:[%s11736_s1 + $0x218] sm:$0xff]  }
 0x146   : > { %v7743_v28 = vpop.f32.mrb[21].mxu1  ;;  %v1568_v25 = vpop.f32.mrb[6].mxu0 }
 0x147   : > { %v9602_v41 = vadd.f32 %v9509_v59, %v1568_v25  ;;  %v9604_v38 = vpop.f32.mrb[22].mxu1  ;;  %v1570_v14 = vpop.f32.mrb[7].mxu0  ;;  %7956 = vmatpush3.bf16.msra.mxu0 %v9589_v5  ;;  %v963_v59 = vunpack.c.h.b16 %v8840_v8 }
 0x148   : > { %v7744_v56 = vpop.f32.mrb[23].mxu1  ;;  %3064 = vmatpush1.bf16.msra.mxu1 %v8499_v1  ;;  %7957 = vmatprep.subr.bf16.mxu0 %v11885_v26 }
 0x149   : > { %7850 = vmatmul.mubr.bf16.gmra.mrb[112].mxu0 %v6462_v6  ;;  %3065 = vmatprep.subr.bf16.mxu1 %v11909_v21  ;;  %v2029_v28 = vpack.c.b16 %v966_v53, %v963_v59  ;;  %v8506_v59 = vld [vmem:[%s11736_s1 + $0x1e0] sm:$0xff]  }
 0x14a   : > { %2400 = vmatmul.mubr.bf16.gmra.mrb[128].mxu1 %v9599_v4  ;;  %7853 = vmatprep.mubr.msk.bf16.mxu0 %vm8645_vm0, %v11885_v26 }
 0x14b   : > { %2407 = vmatprep.mubr.bf16.mxu1 %v9055_v52  ;;  %7958 = vmatpush3.bf16.msra.mxu0 %v9610_v23 }
 0x14c   : > { %v1573_v8 = vpop.f32.mrb[8].mxu0  ;;  %3066 = vmatpush1.bf16.msra.mxu1 %v8502_v2  ;;  %7959 = vmatprep.subr.bf16.mxu0 %v11885_v26 }
 0x14d   : > { %v9634_v1 = vadd.f32 %v9522_v34, %v1573_v8  ;;  %v9636_v29 = vpop.f32.mrb[24].mxu1  ;;  %v1575_v6 = vpop.f32.mrb[9].mxu0  ;;  %3067 = vmatprep.subr.bf16.mxu1 %v11909_v21  ;;  %v8508_v8 = vld [vmem:[%s11736_s1 + $0x1e8] sm:$0xff]  }
 0x14e   : > { %v7747_v25 = vpop.f32.mrb[25].mxu1  ;;  %v1576_v14 = vpop.f32.mrb[10].mxu0 }
 0x14f   : > { %v9640_v56 = vadd.f32 %v9526_v32, %v1576_v14  ;;  %v9642_v2 = vpop.f32.mrb[26].mxu1  ;;  %v1578_v58 = vpop.f32.mrb[11].mxu0  ;;  %7960 = vmatpush3.bf16.msra.mxu0 %v9627_v48  ;;  %v9654_v32 = vld [vmem:[#allocation2 + $0x40] sm:$0xff]  ;;  %v8594_v14 = vld [vmem:[#allocation2 + $0x48] sm:$0xff] }
 0x150   : > { %v7748_v34 = vpop.f32.mrb[27].mxu1  ;;  %3068 = vmatpush1.bf16.msra.mxu1 %v8503_v3  ;;  %7961 = vmatprep.subr.bf16.mxu0 %v11885_v26  ;;  %11912 = vst [vmem:[#allocation48_spill] sm:$0xff] %v9654_v32  ;;  %v1001_v58 = vunpack.c.l.b16 %v9119_v45 }
 0x151   : > { %7854 = vmatmul.mubr.bf16.gmra.mrb[116].mxu0 %v2029_v28  ;;  %3069 = vmatprep.subr.bf16.mxu1 %v11909_v21  ;;  %v8595_v34 = vld [vmem:[#allocation2 + $0x50] sm:$0xff] }
 0x152   : > { %2408 = vmatmul.mubr.bf16.gmra.mrb[132].mxu1 %v9654_v32  ;;  %7857 = vmatprep.mubr.msk.bf16.mxu0 %vm8645_vm0, %v11885_v26  ;;  %v9678_v52 = vpack.c.b16 %v1001_v58, %v998_v57 }
 0x153   : > { %2415 = vmatprep.mubr.bf16.mxu1 %v9646_v63  ;;  %v9671_v63 = vcombine.low %v8594_v14, %v8595_v34 }
 0x154   : > { %v1581_v53 = vpop.f32.mrb[12].mxu0  ;;  %3070 = vmatpush1.bf16.msra.mxu1 %v8506_v59 }
 0x155   : > { %v9666_v3 = vadd.f32 %v9537_v15, %v1581_v53  ;;  %v9668_v6 = vpop.f32.mrb[28].mxu1  ;;  %v1583_v28 = vpop.f32.mrb[13].mxu0  ;;  %3071 = vmatprep.subr.bf16.mxu1 %v11909_v21 }
 0x156   : > { %v7751_v25 = vpop.f32.mrb[29].mxu1  ;;  %v1584_v39 = vpop.f32.mrb[14].mxu0 }
 0x157   : > { %v9674_v45 = vadd.f32 %v9539_v17, %v1584_v39  ;;  %v9676_v59 = vpop.f32.mrb[30].mxu1  ;;  %v1586_v32 = vpop.f32.mrb[15].mxu0  ;;  %v9688_v17 = vld [vmem:[%s11736_s1 + $0x220] sm:$0xff]   ;;  %v9702_v39 = vld [vmem:[#allocation2 + $0x54] sm:$0xff] }
 0x158   : > { %v7752_v15 = vpop.f32.mrb[31].mxu1  ;;  %3072 = vmatpush1.bf16.msra.mxu1 %v8508_v8  ;;  %7962 = vmatpush3.bf16.msra.mxu0 %v9688_v17  ;;  %v9699_v8 = vcombine.low %v8847_v11, %v8931_v43  ;;  %11914 = vst [vmem:[#allocation50_spill] sm:$0xff] %v9702_v39  ;;  %v981_v11 = vunpack.c.h.b16 %v8931_v43 }
 0x159   : > { %7858 = vmatmul.mubr.bf16.gmra.mrb[120].mxu0 %v8857_v13  ;;  %3073 = vmatprep.subr.bf16.mxu1 %v11909_v21 }
 0x15a   : > { %2416 = vmatmul.mubr.bf16.gmra.mrb[136].mxu1 %v9671_v63  ;;  %7861 = vmatprep.mubr.msk.bf16.mxu0 %vm8645_vm0, %v11885_v26  ;;  %11913 = vst [vmem:[#allocation49_spill] sm:$0xff] %v9699_v8 }
 0x15b   : > { %2423 = vmatprep.mubr.bf16.mxu1 %v9678_v52  ;;  %7963 = vmatprep.subr.bf16.mxu0 %v11885_v26 }
 0x15c   : > { %v1589_v32 = vpop.f32.mrb[16].mxu0 }
 0x15d   : > { %v9693_v57 = vadd.f32 %v9563_v33, %v1589_v32  ;;  %v9695_v58 = vpop.f32.mrb[32].mxu1  ;;  %v1591_v53 = vpop.f32.mrb[17].mxu0  ;;  %v8510_v32 = vld [vmem:[%s11736_s1 + $0x1f0] sm:$0xff]  }
 0x15e   : > { %v7755_v28 = vpop.f32.mrb[33].mxu1  ;;  %v1592_v25 = vpop.f32.mrb[18].mxu0  ;;  %v984_v53 = vunpack.c.l.b16 %v8905_v30  ;;  %3074 = vmatpush1.bf16.msra.mxu1 %v8510_v32  ;;  %v9734_v32 = vcombine.low %v9139_v61, %v9184_v62 }
 0x15f   : > { %v9705_v14 = vadd.f32 %v9568_v46, %v1592_v25  ;;  %v9707_v34 = vpop.f32.mrb[34].mxu1  ;;  %v1594_v33 = vpop.f32.mrb[19].mxu0  ;;  %3075 = vmatprep.subr.bf16.mxu1 %v11909_v21 }
 0x160   : > { %v7756_v15 = vpop.f32.mrb[35].mxu1  ;;  %v9725_v33 = vpack.c.b16 %v984_v53, %v981_v11  ;;  %11916 = vst [vmem:[#allocation52_spill] sm:$0xff] %v9734_v32 }
 0x161   : > { %7862 = vmatmul.mubr.bf16.gmra.mrb[124].mxu0 %v9699_v8 }
 0x162   : > { %2424 = vmatmul.mubr.bf16.gmra.mrb[140].mxu1 %v9702_v39  ;;  %7865 = vmatprep.mubr.msk.bf16.mxu0 %vm8645_vm0, %v11885_v26  ;;  %11915 = vst [vmem:[#allocation51_spill] sm:$0xff] %v9725_v33 }
 0x163   : > { %2431 = vmatprep.mubr.bf16.mxu1 %v9132_v55 }
 0x164   : > { %v1597_v46 = vpop.f32.mrb[20].mxu0 }
 0x165   : > { %v9721_v28 = vadd.f32 %v9595_v7, %v1597_v46  ;;  %v9723_v25 = vpop.f32.mrb[36].mxu1  ;;  %v1599_v43 = vpop.f32.mrb[21].mxu0  ;;  %v9737_v7 = vld [vmem:[#allocation2 + $0x60] sm:$0xff] }
 0x166   : > { %v7759_v30 = vpop.f32.mrb[37].mxu1  ;;  %v1600_v15 = vpop.f32.mrb[22].mxu0  ;;  %11917 = vst [vmem:[#allocation53_spill] sm:$0xff] %v9737_v7 }
 0x167   : > { %v9728_v39 = vadd.f32 %v9604_v38, %v1600_v15  ;;  %v9730_v8 = vpop.f32.mrb[38].mxu1  ;;  %v1602_v55 = vpop.f32.mrb[23].mxu0  ;;  %v1016_v38 = vunpack.c.h.b16 %v9184_v62  ;;  %v8597_v30 = vld [vmem:[#allocation2 + $0x68] sm:$0xff]  ;;  %v8598_v15 = vld [vmem:[#allocation2 + $0x70] sm:$0xff]  ;;  %v8512_v62 = vld [vmem:[%s11736_s1 + $0x1f8] sm:$0xff]  }
 0x168   : > { %v7760_v21 = vpop.f32.mrb[39].mxu1  ;;  %v1019_v55 = vunpack.c.l.b16 %v9188_v0  ;;  %3076 = vmatpush1.bf16.msra.mxu1 %v8512_v62 }
 0x169   : > { %7866 = vmatmul.mubr.bf16.gmra.mrb[128].mxu0 %v9725_v33  ;;  %8221 = vmatprep.subr.bf16.mxu1 %v11885_v26 }
 0x16a   : > { %2432 = vmatmul.mubr.bf16.gmra.mrb[144].mxu1 %v9737_v7  ;;  %7869 = vmatprep.mubr.msk.bf16.mxu0 %vm8645_vm0, %v11885_v26  ;;  %v9750_v7 = vcombine.low %v8597_v30, %v8598_v15  ;;  %v9777_v30 = vld [vmem:[#allocation2 + $0x74] sm:$0xff] }
 0x16b   : > { %2439 = vmatprep.mubr.bf16.mxu1 %v9734_v32  ;;  %11921 = vst [vmem:[#allocation57_spill] sm:$0xff] %v9777_v30 }
 0x16c   : > { %v1605_v11 = vpop.f32.mrb[24].mxu0  ;;  %11918 = vst [vmem:[#allocation54_spill] sm:$0xff] %v9750_v7 }
 0x16d   : > { %v9746_v61 = vadd.f32 %v9636_v29, %v1605_v11  ;;  %v9748_v21 = vpop.f32.mrb[40].mxu1  ;;  %v1607_v53 = vpop.f32.mrb[25].mxu0  ;;  %v9760_v11 = vpack.c.b16 %v1019_v55, %v1016_v38 }
 0x16e   : > { %v7763_v46 = vpop.f32.mrb[41].mxu1  ;;  %v1608_v43 = vpop.f32.mrb[26].mxu0 }
 0x16f   : > { %v9756_v32 = vadd.f32 %v9642_v2, %v1608_v43  ;;  %v9758_v0 = vpop.f32.mrb[42].mxu1  ;;  %v1610_v29 = vpop.f32.mrb[27].mxu0  ;;  %11919 = vst [vmem:[#allocation55_spill] sm:$0xff] %v9760_v11 }
 0x170   : > { %v7764_v33 = vpop.f32.mrb[43].mxu1 }
 0x171   : > { %7870 = vmatmul.mubr.bf16.gmra.mrb[132].mxu0 %v8950_v50  ;;  %v9775_v33 = vcombine.low %v8926_v42, %v9033_v37  ;;  %v1002_v42 = vunpack.c.l.b16 %v9010_v19 }
 0x172   : > { %2440 = vmatmul.mubr.bf16.gmra.mrb[148].mxu1 %v9750_v7  ;;  %7873 = vmatprep.mubr.msk.bf16.mxu0 %vm8645_vm0, %v11885_v26 }
 0x173   : > { %2447 = vmatprep.mubr.bf16.mxu1 %v9760_v11  ;;  %11920 = vst [vmem:[#allocation56_spill] sm:$0xff] %v9775_v33  ;;  %v9812_v11 = vcombine.low %v9210_v20, %v9249_v54 }
 0x174   : > { %v1613_v2 = vpop.f32.mrb[28].mxu0 }
 0x175   : > { %v9769_v53 = vadd.f32 %v9668_v6, %v1613_v2  ;;  %v9771_v46 = vpop.f32.mrb[44].mxu1  ;;  %v1615_v38 = vpop.f32.mrb[29].mxu0  ;;  %v9787_v6 = vld [vmem:[%s11736_s1 + $0x228] sm:$0xff]   ;;  %11924 = vst [vmem:[#allocation60_spill] sm:$0xff] %v9812_v11 }
 0x176   : > { %v7767_v55 = vpop.f32.mrb[45].mxu1  ;;  %v1616_v43 = vpop.f32.mrb[30].mxu0  ;;  %v999_v38 = vunpack.c.h.b16 %v9033_v37  ;;  %7964 = vmatpush3.bf16.msra.mxu0 %v9787_v6 }
 0x177   : > { %v9780_v15 = vadd.f32 %v9676_v59, %v1616_v43  ;;  %v9782_v62 = vpop.f32.mrb[46].mxu1  ;;  %v1618_v29 = vpop.f32.mrb[31].mxu0  ;;  %7965 = vmatprep.subr.bf16.mxu0 %v11885_v26 }
 0x178   : > { %v7768_v2 = vpop.f32.mrb[47].mxu1  ;;  %v9803_v29 = vpack.c.b16 %v1002_v42, %v999_v38 }
 0x179   : > { %7874 = vmatmul.mubr.bf16.gmra.mrb[136].mxu0 %v9775_v33 }
 0x17a   : > { %2448 = vmatmul.mubr.bf16.gmra.mrb[152].mxu1 %v9777_v30  ;;  %7877 = vmatprep.mubr.msk.bf16.mxu0 %vm8645_vm0, %v11885_v26  ;;  %11922 = vst [vmem:[#allocation58_spill] sm:$0xff] %v9803_v29 }
 0x17b   : > { %2455 = vmatprep.mubr.bf16.mxu1 %v9198_v9 }
 0x17c   : > { %v1621_v59 = vpop.f32.mrb[32].mxu0 }
 0x17d   : > { %v9799_v55 = vadd.f32 %v9695_v58, %v1621_v59  ;;  %v9801_v37 = vpop.f32.mrb[48].mxu1  ;;  %v1623_v43 = vpop.f32.mrb[33].mxu0  ;;  %v9815_v58 = vld [vmem:[#allocation2 + $0x80] sm:$0xff] }
 0x17e   : > { %v7771_v19 = vpop.f32.mrb[49].mxu1  ;;  %v1624_v2 = vpop.f32.mrb[34].mxu0  ;;  %11925 = vst [vmem:[#allocation61_spill] sm:$0xff] %v9815_v58 }
 0x17f   : > { %v9806_v30 = vadd.f32 %v9707_v34, %v1624_v2  ;;  %v9808_v33 = vpop.f32.mrb[50].mxu1  ;;  %v1626_v9 = vpop.f32.mrb[35].mxu0  ;;  %v1034_v34 = vunpack.c.h.b16 %v9249_v54  ;;  %v8600_v19 = vld [vmem:[#allocation2 + $0x88] sm:$0xff]  ;;  %v8601_v2 = vld [vmem:[#allocation2 + $0x90] sm:$0xff] }
 0x180   : > { %v7772_v7 = vpop.f32.mrb[51].mxu1  ;;  %v1037_v9 = vunpack.c.l.b16 %v9257_v22 }
 0x181   : > { %11923 = vst [vmem:[#allocation59_spill] sm:$0xff] %v9806_v30  ;;  %7878 = vmatmul.mubr.bf16.gmra.mrb[140].mxu0 %v9803_v29 }
 0x182   : > { %2456 = vmatmul.mubr.bf16.gmra.mrb[156].mxu1 %v9815_v58  ;;  %7881 = vmatprep.mubr.msk.bf16.mxu0 %vm8645_vm0, %v11885_v26  ;;  %v9828_v58 = vcombine.low %v8600_v19, %v8601_v2  ;;  %v9835_v22 = vpack.c.b16 %v1037_v9, %v1034_v34  ;;  %v9851_v9 = vld [vmem:[#allocation2 + $0x94] sm:$0xff] }
 0x183   : > { %2463 = vmatprep.mubr.bf16.mxu1 %v9812_v11  ;;  %11929 = vst [vmem:[#allocation65_spill] sm:$0xff] %v9851_v9 }
 0x184   : > { %v1629_v38 = vpop.f32.mrb[36].mxu0  ;;  %11926 = vst [vmem:[#allocation62_spill] sm:$0xff] %v9828_v58  ;;  %11927 = vst [vmem:[#allocation63_spill] sm:$0xff] %v9835_v22 }
 0x185   : > { %v9824_v20 = vadd.f32 %v9723_v25, %v1629_v38  ;;  %v9826_v7 = vpop.f32.mrb[52].mxu1  ;;  %v1631_v42 = vpop.f32.mrb[37].mxu0 }
 0x186   : > { %v7775_v59 = vpop.f32.mrb[53].mxu1  ;;  %v1632_v43 = vpop.f32.mrb[38].mxu0 }
 0x187   : > { %v9831_v29 = vadd.f32 %v9730_v8, %v1632_v43  ;;  %v9833_v54 = vpop.f32.mrb[54].mxu1  ;;  %v1634_v11 = vpop.f32.mrb[39].mxu0 }
 0x188   : > { %v7776_v30 = vpop.f32.mrb[55].mxu1  ;;  %v9849_v11 = vcombine.low %v9028_v35, %v9112_v36  ;;  %v9864_v35 = vld [vmem:[%s11736_s1 + $0x230] sm:$0xff]  }
 0x189   : > { %7882 = vmatmul.mubr.bf16.gmra.mrb[144].mxu0 %v9052_v49  ;;  %v11940_v49 = vld [vmem:[#allocation10_spill] sm:$0xff] }
 0x18a   : > { %2464 = vmatmul.mubr.bf16.gmra.mrb[160].mxu1 %v9828_v58  ;;  %7885 = vmatprep.mubr.msk.bf16.mxu0 %vm8645_vm0, %v11885_v26  ;;  %11928 = vst [vmem:[#allocation64_spill] sm:$0xff] %v9849_v11 }
 0x18b   : > { %2471 = vmatprep.mubr.bf16.mxu1 %v9835_v22  ;;  %7966 = vmatpush3.bf16.msra.mxu0 %v9864_v35 }
 0x18c   : > { %v1637_v25 = vpop.f32.mrb[40].mxu0  ;;  %7967 = vmatprep.subr.bf16.mxu0 %v11885_v26 }
 0x18d   : > { %v9843_v38 = vadd.f32 %v9748_v21, %v1637_v25  ;;  %v9845_v8 = vpop.f32.mrb[56].mxu1  ;;  %v1639_v42 = vpop.f32.mrb[41].mxu0  ;;  %v1017_v21 = vunpack.c.h.b16 %v9112_v36  ;;  %v1020_v25 = vunpack.c.l.b16 %v9100_v31 }
 0x18e   : > { %v7779_v30 = vpop.f32.mrb[57].mxu1  ;;  %v1640_v34 = vpop.f32.mrb[42].mxu0 }
 0x18f   : > { %v9854_v59 = vadd.f32 %v9758_v0, %v1640_v34  ;;  %v9856_v43 = vpop.f32.mrb[58].mxu1  ;;  %v1642_v19 = vpop.f32.mrb[43].mxu0  ;;  %v9874_v42 = vpack.c.b16 %v1020_v25, %v1017_v21  ;;  %v9879_v30 = vld [vmem:[%s11736_s1 + $0x238] sm:$0xff]  }
 0x190   : > { %v7780_v2 = vpop.f32.mrb[59].mxu1  ;;  %7968 = vmatpush3.bf16.msra.mxu0 %v9879_v30 }
 0x191   : > { %7886 = vmatmul.mubr.bf16.gmra.mrb[148].mxu0 %v9849_v11  ;;  %11930 = vst [vmem:[#allocation66_spill] sm:$0xff] %v9874_v42  ;;  %v9888_v11 = vcombine.low %v9273_v27, %v9311_v12  ;;  %v11935_v27 = vld [vmem:[#allocation25_spill] sm:$0xff] }
 0x192   : > { %2472 = vmatmul.mubr.bf16.gmra.mrb[164].mxu1 %v9851_v9  ;;  %7889 = vmatprep.mubr.msk.bf16.mxu0 %vm8645_vm0, %v11885_v26 }
 0x193   : > { %2479 = vmatprep.mubr.bf16.mxu1 %v9267_v24  ;;  %11932 = vst [vmem:[#allocation68_spill] sm:$0xff] %v9888_v11 }
 0x194   : > { %v1645_v0 = vpop.f32.mrb[44].mxu0 }
 0x195   : > { %v9872_v36 = vpop.f32.mrb[60].mxu1  ;;  %v1647_v31 = vpop.f32.mrb[45].mxu0  ;;  %v9882_v34 = vadd.f32 %v9771_v46, %v1645_v0  ;;  %v1052_v46 = vunpack.c.h.b16 %v9311_v12 }
 0x196   : > { %v7783_v19 = vpop.f32.mrb[61].mxu1  ;;  %v1648_v2 = vpop.f32.mrb[46].mxu0  ;;  %v9895_v31 = vld [vmem:[#allocation2 + $0xa0] sm:$0xff] }
 0x197   : > { %11931 = vst [vmem:[#allocation67_spill] sm:$0xff] %v9882_v34  ;;  %v9884_v24 = vpop.f32.mrb[62].mxu1  ;;  %v1650_v9 = vpop.f32.mrb[47].mxu0  ;;  %v9892_v21 = vadd.f32 %v9782_v62, %v1648_v2  ;;  %11934 = vst [vmem:[#allocation70_spill] sm:$0xff] %v9895_v31 }
 0x198   : > { %v7784_v25 = vpop.f32.mrb[63].mxu1  ;;  %v1055_v9 = vunpack.c.l.b16 %v11935_v27 }
 0x199   : > { %11933 = vst [vmem:[#allocation69_spill] sm:$0xff] %v9892_v21  ;;  %7890 = vmatmul.mubr.bf16.gmra.mrb[152].mxu0 %v9874_v42  ;;  %v8603_v21 = vld [vmem:[#allocation2 + $0xa8] sm:$0xff] }
 0x19a   : > { %2480 = vmatmul.mubr.bf16.gmra.mrb[168].mxu1 %v9895_v31  ;;  %7893 = vmatprep.mubr.msk.bf16.mxu0 %vm8645_vm0, %v11885_v26  ;;  %v8604_v31 = vld [vmem:[#allocation2 + $0xb0] sm:$0xff]  ;;  %v9912_v58 = vpack.c.b16 %v1055_v9, %v1052_v46 }
 0x19b   : > { %2487 = vmatprep.mubr.bf16.mxu1 %v9888_v11  ;;  %v9908_v34 = vcombine.low %v8603_v21, %v8604_v31  ;;  %v11942_v46 = vld [vmem:[#allocation9_spill] sm:$0xff] }
 0x19c   : > { %v1653_v0 = vpop.f32.mrb[48].mxu0  ;;  %11938 = vst [vmem:[#allocation72_spill] sm:$0xff] %v9912_v58 }
 0x19d   : > { %v9903_v19 = vpop.f32.mrb[64].mxu1  ;;  %v1655_v62 = vpop.f32.mrb[49].mxu0  ;;  %v9906_v2 = vadd.f32 %v9801_v37, %v1653_v0  ;;  %11937 = vst [vmem:[#allocation71_spill] sm:$0xff] %v9908_v34  ;;  %v11941_v0 = vld [vmem:[#allocation14_spill] sm:$0xff] }
 0x19e   : > { %v7787_v25 = vpop.f32.mrb[65].mxu1  ;;  %v1656_v42 = vpop.f32.mrb[50].mxu0  ;;  %v9926_v9 = vcombine.low %v11942_v46, %v11941_v0  ;;  %v9931_v62 = vld [vmem:[#allocation2 + $0xb4] sm:$0xff]  ;;  %v11947_v46 = vld [vmem:[#allocation12_spill] sm:$0xff] }
 0x19f   : > { %11936 = vst [vmem:[#allocation25_spill] sm:$0xff] %v9906_v2  ;;  %v9910_v22 = vpop.f32.mrb[66].mxu1  ;;  %v1658_v12 = vpop.f32.mrb[51].mxu0  ;;  %v9915_v27 = vadd.f32 %v9808_v33, %v1656_v42  ;;  %11945 = vst [vmem:[#allocation74_spill] sm:$0xff] %v9931_v62  ;;  %v11961_v2 = vld [vmem:[#allocation15_spill] sm:$0xff] }
 0x1a0   : > { %v7788_v11 = vpop.f32.mrb[67].mxu1  ;;  %11943 = vst [vmem:[#allocation14_spill] sm:$0xff] %v9926_v9 }
 0x1a1   : > { %11939 = vst [vmem:[#allocation73_spill] sm:$0xff] %v9915_v27  ;;  %7894 = vmatmul.mubr.bf16.gmra.mrb[156].mxu0 %v11940_v49  ;;  %v1038_v49 = vunpack.c.l.b16 %v11947_v46 }
 0x1a2   : > { %2488 = vmatmul.mubr.bf16.gmra.mrb[172].mxu1 %v9908_v34  ;;  %7897 = vmatprep.mubr.msk.bf16.mxu0 %vm8645_vm0, %v11885_v26 }
 0x1a3   : > { %2495 = vmatprep.mubr.bf16.mxu1 %v9912_v58 }
 0x1a4   : > { %v1661_v37 = vpop.f32.mrb[52].mxu0 }
 0x1a5   : > { %v9922_v21 = vpop.f32.mrb[68].mxu1  ;;  %v1663_v31 = vpop.f32.mrb[53].mxu0  ;;  %v9929_v33 = vadd.f32 %v9826_v7, %v1661_v37  ;;  %v11948_v7 = vld [vmem:[#allocation27_spill] sm:$0xff] }
 0x1a6   : > { %v7791_v11 = vpop.f32.mrb[69].mxu1  ;;  %v1664_v42 = vpop.f32.mrb[54].mxu0  ;;  %v1035_v31 = vunpack.c.h.b16 %v11941_v0 }
 0x1a7   : > { %11944 = vst [vmem:[#allocation9_spill] sm:$0xff] %v9929_v33  ;;  %v9933_v25 = vpop.f32.mrb[70].mxu1  ;;  %v1666_v12 = vpop.f32.mrb[55].mxu0  ;;  %v9936_v58 = vadd.f32 %v9833_v54, %v1664_v42 }
 0x1a8   : > { %v7792_v34 = vpop.f32.mrb[71].mxu1  ;;  %v9947_v54 = vpack.c.b16 %v1038_v49, %v1035_v31  ;;  %v9962_v49 = vld [vmem:[#allocation2 + $0xc0] sm:$0xff]  ;;  %v11956_v31 = vld [vmem:[#allocation33_spill] sm:$0xff] }
 0x1a9   : > { %11946 = vst [vmem:[#allocation75_spill] sm:$0xff] %v9936_v58  ;;  %7898 = vmatmul.mubr.bf16.gmra.mrb[160].mxu0 %v9926_v9  ;;  %v11952_v58 = vld [vmem:[#allocation28_spill] sm:$0xff]  ;;  %11955 = vst [vmem:[#allocation77_spill] sm:$0xff] %v9962_v49 }
 0x1aa   : > { %2496 = vmatmul.mubr.bf16.gmra.mrb[176].mxu1 %v9931_v62  ;;  %7901 = vmatprep.mubr.msk.bf16.mxu0 %vm8645_vm0, %v11885_v26  ;;  %11949 = vst [vmem:[#allocation12_spill] sm:$0xff] %v9947_v54  ;;  %v11951_v62 = vld [vmem:[#allocation31_spill] sm:$0xff] }
 0x1ab   : > { %2503 = vmatprep.mubr.bf16.mxu1 %v11948_v7  ;;  %v9956_v33 = vcombine.low %v11952_v58, %v11951_v62  ;;  %v1073_v58 = vunpack.c.l.b16 %v11956_v31 }
 0x1ac   : > { %v1669_v37 = vpop.f32.mrb[56].mxu0 }
 0x1ad   : > { %v9945_v11 = vpop.f32.mrb[72].mxu1  ;;  %v1671_v12 = vpop.f32.mrb[57].mxu0  ;;  %v9950_v34 = vadd.f32 %v9845_v8, %v1669_v37  ;;  %11953 = vst [vmem:[#allocation31_spill] sm:$0xff] %v9956_v33  ;;  %v1070_v8 = vunpack.c.h.b16 %v11951_v62 }
 0x1ae   : > { %v7795_v0 = vpop.f32.mrb[73].mxu1  ;;  %v1672_v42 = vpop.f32.mrb[58].mxu0 }
 0x1af   : > { %11950 = vst [vmem:[#allocation76_spill] sm:$0xff] %v9950_v34  ;;  %v9952_v9 = vpop.f32.mrb[74].mxu1  ;;  %v1674_v46 = vpop.f32.mrb[59].mxu0  ;;  %v9959_v7 = vadd.f32 %v9856_v43, %v1672_v42  ;;  %v9979_v34 = vpack.c.b16 %v1073_v58, %v1070_v8  ;;  %v11963_v8 = vld [vmem:[#allocation13_spill] sm:$0xff] }
 0x1b0   : > { %v7796_v27 = vpop.f32.mrb[75].mxu1  ;;  %v8606_v46 = vld [vmem:[#allocation2 + $0xc8] sm:$0xff] }
 0x1b1   : > { %11954 = vst [vmem:[#allocation28_spill] sm:$0xff] %v9959_v7  ;;  %7902 = vmatmul.mubr.bf16.gmra.mrb[164].mxu0 %v9947_v54  ;;  %11959 = vst [vmem:[#allocation79_spill] sm:$0xff] %v9979_v34 }
 0x1b2   : > { %2504 = vmatmul.mubr.bf16.gmra.mrb[180].mxu1 %v9962_v49  ;;  %7905 = vmatprep.mubr.msk.bf16.mxu0 %vm8645_vm0, %v11885_v26  ;;  %v8607_v49 = vld [vmem:[#allocation2 + $0xd0] sm:$0xff] }
 0x1b3   : > { %2511 = vmatprep.mubr.bf16.mxu1 %v9956_v33  ;;  %v9975_v54 = vcombine.low %v8606_v46, %v8607_v49 }
 0x1b4   : > { %v1677_v37 = vpop.f32.mrb[60].mxu0 }
 0x1b5   : > { %v9970_v12 = vpop.f32.mrb[76].mxu1  ;;  %v1679_v43 = vpop.f32.mrb[61].mxu0  ;;  %v9973_v27 = vadd.f32 %v9872_v36, %v1677_v37  ;;  %11958 = vst [vmem:[#allocation78_spill] sm:$0xff] %v9975_v54 }
 0x1b6   : > { %v7799_v0 = vpop.f32.mrb[77].mxu1  ;;  %v1680_v42 = vpop.f32.mrb[62].mxu0  ;;  %v11962_v43 = vld [vmem:[#allocation18_spill] sm:$0xff] }
 0x1b7   : > { %11957 = vst [vmem:[#allocation33_spill] sm:$0xff] %v9973_v27  ;;  %v9977_v7 = vpop.f32.mrb[78].mxu1  ;;  %v1682_v62 = vpop.f32.mrb[63].mxu0  ;;  %v9982_v31 = vadd.f32 %v9884_v24, %v1680_v42  ;;  %v9993_v58 = vcombine.low %v11963_v8, %v11962_v43  ;;  %v9998_v42 = vld [vmem:[#allocation2 + $0xd4] sm:$0xff]  ;;  %v11980_v27 = vld [vmem:[#allocation20_spill] sm:$0xff] }
 0x1b8   : > { %v7800_v33 = vpop.f32.mrb[79].mxu1  ;;  %11966 = vst [vmem:[#allocation81_spill] sm:$0xff] %v9998_v42  ;;  %v11968_v8 = vld [vmem:[#allocation17_spill] sm:$0xff] }
 0x1b9   : > { %11960 = vst [vmem:[#allocation80_spill] sm:$0xff] %v9982_v31  ;;  %7906 = vmatmul.mubr.bf16.gmra.mrb[168].mxu0 %v11961_v2  ;;  %11964 = vst [vmem:[#allocation18_spill] sm:$0xff] %v9993_v58  ;;  %v1056_v2 = vunpack.c.l.b16 %v11968_v8 }
 0x1ba   : > { %2512 = vmatmul.mubr.bf16.gmra.mrb[184].mxu1 %v9975_v54  ;;  %7909 = vmatprep.mubr.msk.bf16.mxu0 %vm8645_vm0, %v11885_v26 }
 0x1bb   : > { %2519 = vmatprep.mubr.bf16.mxu1 %v9979_v34 }
 0x1bc   : > { %v1685_v36 = vpop.f32.mrb[64].mxu0 }
 0x1bd   : > { %v9989_v49 = vpop.f32.mrb[80].mxu1  ;;  %v1687_v37 = vpop.f32.mrb[65].mxu0  ;;  %v9996_v24 = vadd.f32 %v9903_v19, %v1685_v36  ;;  %v11969_v19 = vld [vmem:[#allocation35_spill] sm:$0xff] }
 0x1be   : > { %v7803_v33 = vpop.f32.mrb[81].mxu1  ;;  %v1688_v0 = vpop.f32.mrb[66].mxu0  ;;  %v1053_v37 = vunpack.c.h.b16 %v11962_v43 }
 0x1bf   : > { %11965 = vst [vmem:[#allocation13_spill] sm:$0xff] %v9996_v24  ;;  %v10000_v46 = vpop.f32.mrb[82].mxu1  ;;  %v1690_v62 = vpop.f32.mrb[67].mxu0  ;;  %v10003_v34 = vadd.f32 %v9910_v22, %v1688_v0 }
 0x1c0   : > { %v7804_v54 = vpop.f32.mrb[83].mxu1  ;;  %v10014_v22 = vpack.c.b16 %v1056_v2, %v1053_v37  ;;  %v10029_v2 = vld [vmem:[#allocation2 + $0xe0] sm:$0xff]  ;;  %v11977_v37 = vld [vmem:[#allocation41_spill] sm:$0xff] }
 0x1c1   : > { %11967 = vst [vmem:[#allocation82_spill] sm:$0xff] %v10003_v34  ;;  %7910 = vmatmul.mubr.bf16.gmra.mrb[172].mxu0 %v9993_v58  ;;  %v11973_v34 = vld [vmem:[#allocation36_spill] sm:$0xff]  ;;  %11976 = vst [vmem:[#allocation84_spill] sm:$0xff] %v10029_v2 }
 0x1c2   : > { %2520 = vmatmul.mubr.bf16.gmra.mrb[188].mxu1 %v9998_v42  ;;  %7913 = vmatprep.mubr.msk.bf16.mxu0 %vm8645_vm0, %v11885_v26  ;;  %11970 = vst [vmem:[#allocation17_spill] sm:$0xff] %v10014_v22  ;;  %v11972_v42 = vld [vmem:[#allocation39_spill] sm:$0xff] }
 0x1c3   : > { %2527 = vmatprep.mubr.bf16.mxu1 %v11969_v19  ;;  %v10023_v24 = vcombine.low %v11973_v34, %v11972_v42  ;;  %v1091_v34 = vunpack.c.l.b16 %v11977_v37 }
 0x1c4   : > { %v1693_v36 = vpop.f32.mrb[68].mxu0 }
 0x1c5   : > { %v10012_v33 = vpop.f32.mrb[84].mxu1  ;;  %v1695_v62 = vpop.f32.mrb[69].mxu0  ;;  %v10017_v54 = vadd.f32 %v9922_v21, %v1693_v36  ;;  %11974 = vst [vmem:[#allocation39_spill] sm:$0xff] %v10023_v24  ;;  %v1088_v21 = vunpack.c.h.b16 %v11972_v42 }
 0x1c6   : > { %v7807_v43 = vpop.f32.mrb[85].mxu1  ;;  %v1696_v0 = vpop.f32.mrb[70].mxu0 }
 0x1c7   : > { %11971 = vst [vmem:[#allocation83_spill] sm:$0xff] %v10017_v54  ;;  %v10019_v58 = vpop.f32.mrb[86].mxu1  ;;  %v1698_v8 = vpop.f32.mrb[71].mxu0  ;;  %v10026_v19 = vadd.f32 %v9933_v25, %v1696_v0  ;;  %v10046_v54 = vpack.c.b16 %v1091_v34, %v1088_v21  ;;  %v11982_v34 = vld [vmem:[#allocation23_spill] sm:$0xff] }
 0x1c8   : > { %v7808_v31 = vpop.f32.mrb[87].mxu1  ;;  %v8609_v8 = vld [vmem:[#allocation2 + $0xe8] sm:$0xff] }
 0x1c9   : > { %11975 = vst [vmem:[#allocation36_spill] sm:$0xff] %v10026_v19  ;;  %7914 = vmatmul.mubr.bf16.gmra.mrb[176].mxu0 %v10014_v22  ;;  %11979 = vst [vmem:[#allocation85_spill] sm:$0xff] %v10046_v54 }
 0x1ca   : > { %2528 = vmatmul.mubr.bf16.gmra.mrb[192].mxu1 %v10029_v2  ;;  %7917 = vmatprep.mubr.msk.bf16.mxu0 %vm8645_vm0, %v11885_v26  ;;  %v8610_v2 = vld [vmem:[#allocation2 + $0xf0] sm:$0xff] }
 0x1cb   : > { %2535 = vmatprep.mubr.bf16.mxu1 %v10023_v24  ;;  %v10042_v22 = vcombine.low %v8609_v8, %v8610_v2 }
 0x1cc   : > { %v1701_v36 = vpop.f32.mrb[72].mxu0 }
 0x1cd   : > { %v10037_v62 = vpop.f32.mrb[88].mxu1  ;;  %v1703_v25 = vpop.f32.mrb[73].mxu0  ;;  %v10040_v31 = vadd.f32 %v9945_v11, %v1701_v36  ;;  %11978 = vst [vmem:[#allocation41_spill] sm:$0xff] %v10042_v22 }
 0x1ce   : > { %v7811_v43 = vpop.f32.mrb[89].mxu1  ;;  %v1704_v0 = vpop.f32.mrb[74].mxu0 }
 0x1cf   : > { %v10044_v19 = vpop.f32.mrb[90].mxu1  ;;  %v1706_v42 = vpop.f32.mrb[75].mxu0  ;;  %v10049_v37 = vadd.f32 %v9952_v9, %v1704_v0  ;;  %v11983_v9 = vld [vmem:[#allocation19_spill] sm:$0xff]  ;;  %v10065_v0 = vld [vmem:[#allocation2 + $0xf4] sm:$0xff] }
 0x1d0   : > { %v7812_v24 = vpop.f32.mrb[91].mxu1  ;;  %v10063_v25 = vcombine.low %v11983_v9, %v11982_v34  ;;  %11985 = vst [vmem:[#allocation19_spill] sm:$0xff] %v10065_v0  ;;  %v11988_v9 = vld [vmem:[#allocation43_spill] sm:$0xff] }
 0x1d1   : > { %7918 = vmatmul.mubr.bf16.gmra.mrb[180].mxu0 %v11980_v27 }
 0x1d2   : > { %2536 = vmatmul.mubr.bf16.gmra.mrb[196].mxu1 %v10042_v22  ;;  %7921 = vmatprep.mubr.msk.bf16.mxu0 %vm8645_vm0, %v11885_v26  ;;  %11984 = vst [vmem:[#allocation23_spill] sm:$0xff] %v10063_v25 }
 0x1d3   : > { %2543 = vmatprep.mubr.bf16.mxu1 %v10046_v54 }
 0x1d4   : > { %v1709_v11 = vpop.f32.mrb[76].mxu0 }
 0x1d5   : > { %v10057_v2 = vadd.f32 %v9970_v12, %v1709_v11  ;;  %v10059_v36 = vpop.f32.mrb[92].mxu1  ;;  %v1711_v21 = vpop.f32.mrb[77].mxu0  ;;  %v1071_v12 = vunpack.c.h.b16 %v11982_v34  ;;  %v11987_v11 = vld [vmem:[#allocation22_spill] sm:$0xff] }
 0x1d6   : > { %v7815_v24 = vpop.f32.mrb[93].mxu1  ;;  %v1712_v43 = vpop.f32.mrb[78].mxu0  ;;  %v1074_v21 = vunpack.c.l.b16 %v11987_v11 }
 0x1d7   : > { %11981 = vst [vmem:[#allocation86_spill] sm:$0xff] %v10057_v2  ;;  %v10068_v8 = vadd.f32 %v9977_v7, %v1712_v43  ;;  %v10070_v42 = vpop.f32.mrb[94].mxu1  ;;  %v1714_v54 = vpop.f32.mrb[79].mxu0 }
 0x1d8   : > { %v7816_v22 = vpop.f32.mrb[95].mxu1  ;;  %v10084_v54 = vpack.c.b16 %v1074_v21, %v1071_v12 }
 0x1d9   : > { %11986 = vst [vmem:[#allocation87_spill] sm:$0xff] %v10068_v8  ;;  %7922 = vmatmul.mubr.bf16.gmra.mrb[184].mxu0 %v10063_v25  ;;  %v11992_v8 = vld [vmem:[#allocation44_spill] sm:$0xff] }
 0x1da   : > { %2544 = vmatmul.mubr.bf16.gmra.mrb[200].mxu1 %v10065_v0  ;;  %7925 = vmatprep.mubr.msk.bf16.mxu0 %vm8645_vm0, %v11885_v26  ;;  %11990 = vst [vmem:[#allocation88_spill] sm:$0xff] %v10084_v54 }
 0x1db   : > { %2551 = vmatprep.mubr.bf16.mxu1 %v11988_v9  ;;  %v10093_v9 = vcombine.low %v11992_v8, %v9487_v40 }
 0x1dc   : > { %v1717_v24 = vpop.f32.mrb[80].mxu0 }
 0x1dd   : > { %v10080_v7 = vadd.f32 %v9989_v49, %v1717_v24  ;;  %v10082_v43 = vpop.f32.mrb[96].mxu1  ;;  %v1719_v22 = vpop.f32.mrb[81].mxu0  ;;  %11993 = vst [vmem:[#allocation44_spill] sm:$0xff] %v10093_v9  ;;  %v10096_v49 = vld [vmem:[#allocation2 + $0x100] sm:$0xff] }
 0x1de   : > { %v7819_v34 = vpop.f32.mrb[97].mxu1  ;;  %v1720_v25 = vpop.f32.mrb[82].mxu0  ;;  %11994 = vst [vmem:[#allocation90_spill] sm:$0xff] %v10096_v49  ;;  %v8612_v22 = vld [vmem:[#allocation2 + $0x108] sm:$0xff] }
 0x1df   : > { %11989 = vst [vmem:[#allocation22_spill] sm:$0xff] %v10080_v7  ;;  %v10087_v11 = vadd.f32 %v10000_v46, %v1720_v25  ;;  %v10089_v0 = vpop.f32.mrb[98].mxu1  ;;  %v1722_v27 = vpop.f32.mrb[83].mxu0  ;;  %v1106_v46 = vunpack.c.h.b16 %v9487_v40  ;;  %v8613_v34 = vld [vmem:[#allocation2 + $0x110] sm:$0xff]  ;;  %v11997_v7 = vld [vmem:[#allocation26_spill] sm:$0xff] }
 0x1e0   : > { %v7820_v2 = vpop.f32.mrb[99].mxu1  ;;  %v1109_v27 = vunpack.c.l.b16 %v9492_v18 }
 0x1e1   : > { %11991 = vst [vmem:[#allocation89_spill] sm:$0xff] %v10087_v11  ;;  %7926 = vmatmul.mubr.bf16.gmra.mrb[188].mxu0 %v10084_v54 }
 0x1e2   : > { %2552 = vmatmul.mubr.bf16.gmra.mrb[204].mxu1 %v10096_v49  ;;  %7929 = vmatprep.mubr.msk.bf16.mxu0 %vm8645_vm0, %v11885_v26  ;;  %v10109_v49 = vcombine.low %v8612_v22, %v8613_v34  ;;  %v10114_v11 = vpack.c.b16 %v1109_v27, %v1106_v46  ;;  %v10128_v22 = vld [vmem:[#allocation2 + $0x114] sm:$0xff] }
 0x1e3   : > { %2559 = vmatprep.mubr.bf16.mxu1 %v10093_v9 }
 0x1e4   : > { %v1725_v25 = vpop.f32.mrb[84].mxu0  ;;  %11995 = vst [vmem:[#allocation91_spill] sm:$0xff] %v10109_v49  ;;  %11996 = vst [vmem:[#allocation92_spill] sm:$0xff] %v10114_v11 }
 0x1e5   : > { %v10105_v8 = vadd.f32 %v10012_v33, %v1725_v25  ;;  %v10107_v2 = vpop.f32.mrb[100].mxu1  ;;  %v1727_v12 = vpop.f32.mrb[85].mxu0 }
 0x1e6   : > { %v7823_v21 = vpop.f32.mrb[101].mxu1  ;;  %v1728_v24 = vpop.f32.mrb[86].mxu0 }
 0x1e7   : > { %v10112_v54 = vadd.f32 %v10019_v58, %v1728_v24  ;;  %v2009_v40 = vpop.f32.mrb[102].mxu1  ;;  %v1730_v9 = vpop.f32.mrb[87].mxu0  ;;  %v11998_v21 = vld [vmem:[#allocation30_spill] sm:$0xff] }
 0x1e8   : > { %v7824_v18 = vpop.f32.mrb[103].mxu1  ;;  %v11999_v9 = vld [vmem:[#allocation24_spill] sm:$0xff] }
 0x1e9   : > { %7930 = vmatmul.mubr.bf16.gmra.mrb[192].mxu0 %v11997_v7  ;;  %v10126_v46 = vcombine.low %v11999_v9, %v11998_v21 }
 0x1ea   : > { %2560 = vmatmul.mubr.bf16.gmra.mrb[208].mxu1 %v10109_v49  ;;  %7933 = vmatprep.mubr.msk.bf16.mxu0 %vm8645_vm0, %v11885_v26  ;;  %v1089_v49 = vunpack.c.h.b16 %v11998_v21 }
 0x1eb   : > { %2567 = vmatprep.mubr.bf16.mxu1 %v10114_v11 }
 0x1ec   : > { %v1733_v33 = vpop.f32.mrb[88].mxu0 }
 0x1ed   : > { %v10122_v25 = vadd.f32 %v10037_v62, %v1733_v33  ;;  %v2014_v58 = vpop.f32.mrb[104].mxu1  ;;  %v1735_v12 = vpop.f32.mrb[89].mxu0  ;;  %v12000_v62 = vld [vmem:[#allocation29_spill] sm:$0xff] }
 0x1ee   : > { %v7827_v27 = vpop.f32.mrb[105].mxu1  ;;  %v1736_v24 = vpop.f32.mrb[90].mxu0  ;;  %v1092_v33 = vunpack.c.l.b16 %v12000_v62 }
 0x1ef   : > { %v10131_v34 = vadd.f32 %v10044_v19, %v1736_v24  ;;  %v2017_v40 = vpop.f32.mrb[106].mxu1  ;;  %v1738_v18 = vpop.f32.mrb[91].mxu0 }
 0x1f0   : > { %v7828_v11 = vpop.f32.mrb[107].mxu1 }
 0x1f1   : > { %7934 = vmatmul.mubr.bf16.gmra.mrb[196].mxu0 %v10126_v46  ;;  %v10143_v11 = vpack.c.b16 %v1092_v33, %v1089_v49 }
 0x1f2   : > { %2568 = vmatmul.mubr.bf16.gmra.mrb[212].mxu1 %v10128_v22  ;;  %7937 = vmatprep.mubr.msk.bf16.mxu0 %vm8645_vm0, %v11885_v26 }
 0x1f3   : > { %3077 = vmatprep.mubr.bf16.mxu1 %v8953_v51 }
 0x1f4   : > { %v1741_v58 = vpop.f32.mrb[92].mxu0 }
 0x1f5   : > { %v10141_v19 = vadd.f32 %v10059_v36, %v1741_v58  ;;  %v2361_v12 = vpop.f32.mrb[108].mxu1  ;;  %v1743_v9 = vpop.f32.mrb[93].mxu0 }
 0x1f6   : > { %v2363_v21 = vpop.f32.mrb[109].mxu1  ;;  %v1744_v27 = vpop.f32.mrb[94].mxu0 }
 0x1f7   : > { %v10146_v24 = vadd.f32 %v10070_v42, %v1744_v27  ;;  %v2364_v40 = vpop.f32.mrb[110].mxu1  ;;  %v1746_v18 = vpop.f32.mrb[95].mxu0  ;;  %v12001_v21 = vld [vmem:[#allocation34_spill] sm:$0xff]  ;;  %v12003_v27 = vld [vmem:[#allocation32_spill] sm:$0xff] }
 0x1f8   : > { %v2366_v62 = vpop.f32.mrb[111].mxu1 }
 0x1f9   : > { %7938 = vmatmul.mubr.bf16.gmra.mrb[200].mxu0 %v10143_v11 }
 0x1fa   : > { %3078 = vmatmul.mubr.bf16.vlgmr.msra.gmra.mrb[216].mxu1 %v9549_v16  ;;  %7941 = vmatprep.mubr.msk.bf16.mxu0 %vm8645_vm0, %v11885_v26 }
 0x1fb   : > { %8229 = vmatpush3.bf16.msra.mxu1 %v9575_v47  ;;  %3085 = vmatprep.mubr.bf16.mxu1 %v9543_v60 }
 0x1fc   : > { %v1749_v51 = vpop.f32.mrb[96].mxu0  ;;  %8222 = vmatprep.subr.bf16.mxu1 %v11885_v26 }
 0x1fd   : > { %v10156_v36 = vadd.f32 %v10082_v43, %v1749_v51  ;;  %v2369_v42 = vpop.f32.mrb[112].mxu1  ;;  %v1751_v49 = vpop.f32.mrb[97].mxu0  ;;  %v12002_v43 = vld [vmem:[#allocation38_spill] sm:$0xff] }
 0x1fe   : > { %v2371_v33 = vpop.f32.mrb[113].mxu1  ;;  %v1752_v58 = vpop.f32.mrb[98].mxu0  ;;  %v10178_v40 = vcombine.low %v12003_v27, %v12002_v43  ;;  %v1107_v49 = vunpack.c.h.b16 %v12002_v43 }
 0x1ff   : > { %v10159_v12 = vadd.f32 %v10089_v0, %v1752_v58  ;;  %v2372_v16 = vpop.f32.mrb[114].mxu1  ;;  %v1754_v9 = vpop.f32.mrb[99].mxu0  ;;  %8230 = vmatpush3.bf16.msra.mxu1 %v9589_v5  ;;  %v12004_v33 = vld [vmem:[#allocation37_spill] sm:$0xff] }
 0x200   : > { %v10163_v47 = vadd.f32 %v2372_v16, %v9602_v41  ;;  %v2374_v60 = vpop.f32.mrb[115].mxu1  ;;  %8223 = vmatprep.subr.bf16.mxu1 %v11885_v26  ;;  %v1110_v58 = vunpack.c.l.b16 %v12004_v33 }
 0x201   : > { %7942 = vmatmul.mubr.bf16.gmra.mrb[204].mxu0 %v12001_v21 }
 0x202   : > { %3086 = vmatmul.mubr.bf16.gmra.mrb[220].mxu1 %v9565_v10  ;;  %7945 = vmatprep.mubr.msk.bf16.mxu0 %vm8645_vm0, %v11885_v26  ;;  %v10197_v16 = vpack.c.b16 %v1110_v58, %v1107_v49 }
 0x203   : > { %3093 = vmatprep.mubr.bf16.mxu1 %v9570_v44  ;;  %8231 = vmatpush3.bf16.msra.mxu1 %v9610_v23 }
 0x204   : > { %v1757_v0 = vpop.f32.mrb[100].mxu0  ;;  %8224 = vmatprep.subr.bf16.mxu1 %v11885_v26 }
 0x205   : > { %v10174_v5 = vadd.f32 %v10107_v2, %v1757_v0  ;;  %v2377_v41 = vpop.f32.mrb[116].mxu1  ;;  %v1759_v18 = vpop.f32.mrb[101].mxu0 }
 0x206   : > { %v10181_v10 = vadd.f32 %v2377_v41, %v9634_v1  ;;  %v2379_v62 = vpop.f32.mrb[117].mxu1  ;;  %v1760_v51 = vpop.f32.mrb[102].mxu0  ;;  %v12005_v1 = vld [vmem:[#allocation8_spill] sm:$0xff] }
 0x207   : > { %v2380_v44 = vpop.f32.mrb[118].mxu1  ;;  %v1762_v42 = vpop.f32.mrb[103].mxu0  ;;  %8232 = vmatpush3.bf16.msra.mxu1 %v9627_v48  ;;  %v12006_v18 = vld [vmem:[#allocation48_spill] sm:$0xff] }
 0x208   : > { %v10185_v23 = vadd.f32 %v2380_v44, %v9640_v56  ;;  %v2382_v2 = vpop.f32.mrb[119].mxu1  ;;  %8225 = vmatprep.subr.bf16.mxu1 %v11885_v26 }
 0x209   : > { %7946 = vmatmul.mubr.bf16.gmra.mrb[208].mxu0 %v10178_v40 }
 0x20a   : > { %3094 = vmatmul.mubr.bf16.gmra.mrb[224].mxu1 %v9599_v4  ;;  %7949 = vmatprep.mubr.msk.bf16.mxu0 %vm8645_vm0, %v11885_v26 }
 0x20b   : > { %3101 = vmatprep.mubr.bf16.mxu1 %v12005_v1  ;;  %8233 = vmatpush3.bf16.msra.mxu1 %v9688_v17 }
 0x20c   : > { %v1765_v48 = vpop.f32.mrb[104].mxu0  ;;  %8226 = vmatprep.subr.bf16.mxu1 %v11885_v26 }
 0x20d   : > { %v2385_v56 = vpop.f32.mrb[120].mxu1  ;;  %v1767_v9 = vpop.f32.mrb[105].mxu0 }
 0x20e   : > { %v10200_v60 = vadd.f32 %v2385_v56, %v9666_v3  ;;  %v2387_v0 = vpop.f32.mrb[121].mxu1  ;;  %v1768_v41 = vpop.f32.mrb[106].mxu0  ;;  %v12007_v3 = vld [vmem:[#allocation47_spill] sm:$0xff] }
 0x20f   : > { %v2388_v4 = vpop.f32.mrb[122].mxu1  ;;  %v1770_v43 = vpop.f32.mrb[107].mxu0  ;;  %8234 = vmatpush3.bf16.msra.mxu1 %v9787_v6  ;;  %v12008_v41 = vld [vmem:[#allocation49_spill] sm:$0xff] }
 0x210   : > { %v10204_v27 = vadd.f32 %v2388_v4, %v9674_v45  ;;  %v2390_v17 = vpop.f32.mrb[123].mxu1  ;;  %8227 = vmatprep.subr.bf16.mxu1 %v11885_v26  ;;  %v12009_v4 = vld [vmem:[#allocation50_spill] sm:$0xff] }
 0x211   : > { %7950 = vmatmul.mubr.bf16.gmra.mrb[212].mxu0 %v10197_v16 }
 0x212   : > { %3102 = vmatmul.mubr.bf16.gmra.mrb[228].mxu1 %v12006_v18  ;;  %7969 = vmatprep.mubr.msk.bf16.mxu0 %vm8645_vm0, %v11885_v26 }
 0x213   : > { %3109 = vmatprep.mubr.bf16.mxu1 %v12007_v3  ;;  %8235 = vmatpush3.bf16.msra.mxu1 %v9864_v35 }
 0x214   : > { %v2610_v62 = vpop.f32.mrb[108].mxu0  ;;  %8228 = vmatprep.subr.bf16.mxu1 %v11885_v26 }
 0x215   : > { %v2393_v6 = vpop.f32.mrb[124].mxu1  ;;  %v7847_v45 = vpop.f32.mrb[109].mxu0 }
 0x216   : > { %v2394_v51 = vadd.f32 %v2393_v6, %v9693_v57  ;;  %v2395_v44 = vpop.f32.mrb[125].mxu1  ;;  %v2613_v42 = vpop.f32.mrb[110].mxu0 }
 0x217   : > { %v2396_v2 = vpop.f32.mrb[126].mxu1  ;;  %v7848_v49 = vpop.f32.mrb[111].mxu0  ;;  %8236 = vmatpush3.bf16.msra.mxu1 %v9879_v30 }
 0x218   : > { %v2397_v33 = vadd.f32 %v2396_v2, %v9705_v14  ;;  %v2398_v58 = vpop.f32.mrb[127].mxu1  ;;  %v12011_v2 = vld [vmem:[#allocation51_spill] sm:$0xff]  ;;  %v12012_v49 = vld [vmem:[#allocation53_spill] sm:$0xff] }
 0x219   : > { %7970 = vmatmul.mubr.bf16.vlgmr.msra.gmra.mrb[216].mxu0 %v8857_v13 }
 0x21a   : > { %3110 = vmatmul.mubr.bf16.gmra.mrb[232].mxu1 %v9671_v63  ;;  %7973 = vmatprep.mubr.msk.bf16.mxu0 %vm8645_vm0, %v11885_v26 }
 0x21b   : > { %3117 = vmatprep.mubr.bf16.mxu1 %v9678_v52  ;;  %v12010_v52 = vld [vmem:[#allocation11_spill] sm:$0xff] }
 0x21c   : > { %v2618_v35 = vpop.f32.mrb[112].mxu0 }
 0x21d   : > { %v2401_v57 = vpop.f32.mrb[128].mxu1  ;;  %v7851_v1 = vpop.f32.mrb[113].mxu0 }
 0x21e   : > { %v2402_v48 = vadd.f32 %v2401_v57, %v9721_v28  ;;  %v2403_v56 = vpop.f32.mrb[129].mxu1  ;;  %v2621_v9 = vpop.f32.mrb[114].mxu0 }
 0x21f   : > { %v2404_v30 = vpop.f32.mrb[130].mxu1  ;;  %v10224_v14 = vadd.f32 %v2621_v9, %v10163_v47  ;;  %v7852_v0 = vpop.f32.mrb[115].mxu0 }
 0x220   : > { %v2405_v13 = vadd.f32 %v2404_v30, %v9728_v39  ;;  %v2406_v63 = vpop.f32.mrb[131].mxu1 }
 0x221   : > { %7974 = vmatmul.mubr.bf16.gmra.mrb[220].mxu0 %v12008_v41  ;;  %v12014_v41 = vld [vmem:[#allocation54_spill] sm:$0xff] }
 0x222   : > { %3118 = vmatmul.mubr.bf16.gmra.mrb[236].mxu1 %v12009_v4  ;;  %7977 = vmatprep.mubr.msk.bf16.mxu0 %vm8645_vm0, %v11885_v26 }
 0x223   : > { %3125 = vmatprep.mubr.bf16.mxu1 %v12010_v52 }
 0x224   : > { %v2626_v28 = vpop.f32.mrb[116].mxu0 }
 0x225   : > { %v2409_v43 = vpop.f32.mrb[132].mxu1  ;;  %v10233_v17 = vadd.f32 %v2626_v28, %v10181_v10  ;;  %v7855_v47 = vpop.f32.mrb[117].mxu0  ;;  %v12013_v10 = vld [vmem:[#allocation52_spill] sm:$0xff] }
 0x226   : > { %v2410_v18 = vadd.f32 %v2409_v43, %v9746_v61  ;;  %v2411_v3 = vpop.f32.mrb[133].mxu1  ;;  %v2629_v39 = vpop.f32.mrb[118].mxu0 }
 0x227   : > { %v2412_v62 = vpop.f32.mrb[134].mxu1  ;;  %v10237_v6 = vadd.f32 %v2629_v39, %v10185_v23  ;;  %v7856_v45 = vpop.f32.mrb[119].mxu0 }
 0x228   : > { %v2413_v44 = vadd.f32 %v2412_v62, %v9756_v32  ;;  %v2414_v42 = vpop.f32.mrb[135].mxu1  ;;  %v12016_v62 = vld [vmem:[#allocation59_spill] sm:$0xff] }
 0x229   : > { %7978 = vmatmul.mubr.bf16.gmra.mrb[224].mxu0 %v12011_v2  ;;  %v12017_v42 = vld [vmem:[#allocation56_spill] sm:$0xff]  ;;  %v12018_v2 = vld [vmem:[#allocation57_spill] sm:$0xff] }
 0x22a   : > { %3126 = vmatmul.mubr.bf16.gmra.mrb[240].mxu1 %v12012_v49  ;;  %7981 = vmatprep.mubr.msk.bf16.mxu0 %vm8645_vm0, %v11885_v26 }
 0x22b   : > { %3133 = vmatprep.mubr.bf16.mxu1 %v12013_v10 }
 0x22c   : > { %v2634_v61 = vpop.f32.mrb[120].mxu0 }
 0x22d   : > { %v2417_v58 = vpop.f32.mrb[136].mxu1  ;;  %v10246_v35 = vadd.f32 %v2634_v61, %v10200_v60  ;;  %v7859_v23 = vpop.f32.mrb[121].mxu0  ;;  %v12015_v60 = vld [vmem:[#allocation55_spill] sm:$0xff] }
 0x22e   : > { %v2418_v57 = vadd.f32 %v2417_v58, %v9769_v53  ;;  %v2419_v1 = vpop.f32.mrb[137].mxu1  ;;  %v2637_v32 = vpop.f32.mrb[122].mxu0 }
 0x22f   : > { %v2420_v56 = vpop.f32.mrb[138].mxu1  ;;  %v10250_v9 = vadd.f32 %v2637_v32, %v10204_v27  ;;  %v7860_v30 = vpop.f32.mrb[123].mxu0 }
 0x230   : > { %v2421_v0 = vadd.f32 %v2420_v56, %v9780_v15  ;;  %v2422_v63 = vpop.f32.mrb[139].mxu1 }
 0x231   : > { %7982 = vmatmul.mubr.bf16.gmra.mrb[228].mxu0 %v8950_v50 }
 0x232   : > { %3134 = vmatmul.mubr.bf16.gmra.mrb[244].mxu1 %v12014_v41  ;;  %7985 = vmatprep.mubr.msk.bf16.mxu0 %vm8645_vm0, %v11885_v26  ;;  %v12020_v41 = vld [vmem:[#allocation58_spill] sm:$0xff] }
 0x233   : > { %3141 = vmatprep.mubr.bf16.mxu1 %v12015_v60  ;;  %v12021_v60 = vld [vmem:[#allocation61_spill] sm:$0xff] }
 0x234   : > { %v2642_v53 = vpop.f32.mrb[124].mxu0 }
 0x235   : > { %v2425_v4 = vpop.f32.mrb[140].mxu1  ;;  %v10258_v52 = vadd.f32 %v2642_v53, %v2394_v51  ;;  %v7863_v28 = vpop.f32.mrb[125].mxu0  ;;  %v12019_v51 = vld [vmem:[#allocation16_spill] sm:$0xff] }
 0x236   : > { %v2427_v27 = vpop.f32.mrb[141].mxu1  ;;  %v2645_v43 = vpop.f32.mrb[126].mxu0  ;;  %v2426_v47 = vadd.f32 %v2425_v4, %v9799_v55 }
 0x237   : > { %v2428_v15 = vpop.f32.mrb[142].mxu1  ;;  %v10261_v3 = vadd.f32 %v2645_v43, %v2397_v33  ;;  %v7864_v50 = vpop.f32.mrb[127].mxu0 }
 0x238   : > { %v2430_v39 = vpop.f32.mrb[143].mxu1  ;;  %v2429_v45 = vadd.f32 %v2428_v15, %v12016_v62 }
 0x239   : > { %7986 = vmatmul.mubr.bf16.gmra.mrb[232].mxu0 %v12017_v42  ;;  %v12023_v42 = vld [vmem:[#allocation7_spill] sm:$0xff] }
 0x23a   : > { %3142 = vmatmul.mubr.bf16.gmra.mrb[248].mxu1 %v12018_v2  ;;  %7989 = vmatprep.mubr.msk.bf16.mxu0 %vm8645_vm0, %v11885_v26  ;;  %v12024_v2 = vld [vmem:[#allocation62_spill] sm:$0xff] }
 0x23b   : > { %3149 = vmatprep.mubr.bf16.mxu1 %v12019_v51 }
 0x23c   : > { %v2650_v49 = vpop.f32.mrb[128].mxu0 }
 0x23d   : > { %v2433_v10 = vpop.f32.mrb[144].mxu1  ;;  %v10269_v61 = vadd.f32 %v2650_v49, %v2402_v48  ;;  %v7867_v55 = vpop.f32.mrb[129].mxu0  ;;  %v12022_v48 = vld [vmem:[#allocation60_spill] sm:$0xff] }
 0x23e   : > { %v2435_v33 = vpop.f32.mrb[145].mxu1  ;;  %v2653_v58 = vpop.f32.mrb[130].mxu0  ;;  %v2434_v23 = vadd.f32 %v2433_v10, %v9824_v20 }
 0x23f   : > { %v2436_v1 = vpop.f32.mrb[146].mxu1  ;;  %v10272_v32 = vadd.f32 %v2653_v58, %v2405_v13  ;;  %v7868_v56 = vpop.f32.mrb[131].mxu0  ;;  %v12026_v33 = vld [vmem:[#allocation67_spill] sm:$0xff] }
 0x240   : > { %v2438_v30 = vpop.f32.mrb[147].mxu1  ;;  %v2437_v63 = vadd.f32 %v2436_v1, %v9831_v29 }
 0x241   : > { %7990 = vmatmul.mubr.bf16.gmra.mrb[236].mxu0 %v12020_v41  ;;  %v12027_v41 = vld [vmem:[#allocation69_spill] sm:$0xff] }
 0x242   : > { %3150 = vmatmul.mubr.bf16.gmra.mrb[252].mxu1 %v12021_v60  ;;  %7993 = vmatprep.mubr.msk.bf16.mxu0 %vm8645_vm0, %v11885_v26 }
 0x243   : > { %3157 = vmatprep.mubr.bf16.mxu1 %v12022_v48  ;;  %v12028_v48 = vld [vmem:[#allocation64_spill] sm:$0xff] }
 0x244   : > { %v2658_v53 = vpop.f32.mrb[132].mxu0 }
 0x245   : > { %v2441_v4 = vpop.f32.mrb[148].mxu1  ;;  %v10280_v28 = vadd.f32 %v2658_v53, %v2410_v18  ;;  %v7871_v20 = vpop.f32.mrb[133].mxu0  ;;  %v12025_v18 = vld [vmem:[#allocation63_spill] sm:$0xff]  ;;  %v12029_v53 = vld [vmem:[#allocation65_spill] sm:$0xff] }
 0x246   : > { %v2443_v13 = vpop.f32.mrb[149].mxu1  ;;  %v2661_v27 = vpop.f32.mrb[134].mxu0  ;;  %v2442_v43 = vadd.f32 %v2441_v4, %v9843_v38 }
 0x247   : > { %v2444_v15 = vpop.f32.mrb[150].mxu1  ;;  %v10283_v29 = vadd.f32 %v2661_v27, %v2413_v44  ;;  %v7872_v50 = vpop.f32.mrb[135].mxu0 }
 0x248   : > { %v2446_v39 = vpop.f32.mrb[151].mxu1  ;;  %v2445_v62 = vadd.f32 %v2444_v15, %v9854_v59  ;;  %v12031_v50 = vld [vmem:[#allocation25_spill] sm:$0xff] }
 0x249   : > { %7994 = vmatmul.mubr.bf16.gmra.mrb[240].mxu0 %v12023_v42 }
 0x24a   : > { %3158 = vmatmul.mubr.bf16.gmra.mrb[0].mxu1 %v12024_v2  ;;  %7997 = vmatprep.mubr.msk.bf16.mxu0 %vm8645_vm0, %v11885_v26 }
 0x24b   : > { %3165 = vmatprep.mubr.bf16.mxu1 %v12025_v18 }
 0x24c   : > { %v2666_v51 = vpop.f32.mrb[136].mxu0 }
 0x24d   : > { %v2449_v49 = vpop.f32.mrb[152].mxu1  ;;  %v10291_v10 = vadd.f32 %v2666_v51, %v2418_v57  ;;  %v7875_v38 = vpop.f32.mrb[137].mxu0  ;;  %v12030_v57 = vld [vmem:[#allocation21_spill] sm:$0xff] }
 0x24e   : > { %v2451_v44 = vpop.f32.mrb[153].mxu1  ;;  %v2669_v55 = vpop.f32.mrb[138].mxu0  ;;  %v2450_v58 = vadd.f32 %v2449_v49, %v12026_v33  ;;  %v12032_v49 = vld [vmem:[#allocation73_spill] sm:$0xff] }
 0x24f   : > { %v2452_v1 = vpop.f32.mrb[154].mxu1  ;;  %v10294_v59 = vadd.f32 %v2669_v55, %v2421_v0  ;;  %v7876_v56 = vpop.f32.mrb[139].mxu0  ;;  %v12033_v44 = vld [vmem:[#allocation66_spill] sm:$0xff] }
 0x250   : > { %v2454_v30 = vpop.f32.mrb[155].mxu1  ;;  %v2453_v60 = vadd.f32 %v2452_v1, %v12027_v41  ;;  %v12034_v55 = vld [vmem:[#allocation70_spill] sm:$0xff] }
 0x251   : > { %7998 = vmatmul.mubr.bf16.gmra.mrb[244].mxu0 %v12028_v48  ;;  %v12036_v48 = vld [vmem:[#allocation9_spill] sm:$0xff] }
 0x252   : > { %3166 = vmatmul.mubr.bf16.gmra.mrb[4].mxu1 %v12029_v53  ;;  %8001 = vmatprep.mubr.msk.bf16.mxu0 %vm8645_vm0, %v11885_v26 }
 0x253   : > { %3173 = vmatprep.mubr.bf16.mxu1 %v12030_v57 }
 0x254   : > { %v2674_v4 = vpop.f32.mrb[140].mxu0 }
 0x255   : > { %v2457_v20 = vpop.f32.mrb[156].mxu1  ;;  %v10302_v13 = vadd.f32 %v2674_v4, %v2426_v47  ;;  %v7879_v27 = vpop.f32.mrb[141].mxu0  ;;  %v12035_v47 = vld [vmem:[#allocation68_spill] sm:$0xff] }
 0x256   : > { %v2459_v0 = vpop.f32.mrb[157].mxu1  ;;  %v2677_v15 = vpop.f32.mrb[142].mxu0  ;;  %v10305_v39 = vadd.f32 %v2457_v20, %v12031_v50  ;;  %v12038_v50 = vld [vmem:[#allocation10_spill] sm:$0xff] }
 0x257   : > { %v2460_v42 = vpop.f32.mrb[158].mxu1  ;;  %v10307_v2 = vadd.f32 %v2677_v15, %v2429_v45  ;;  %v7880_v18 = vpop.f32.mrb[143].mxu0  ;;  %v12037_v0 = vld [vmem:[#allocation75_spill] sm:$0xff] }
 0x258   : > { %v2462_v51 = vpop.f32.mrb[159].mxu1  ;;  %v10310_v38 = vadd.f32 %v2460_v42, %v12032_v49  ;;  %v12039_v42 = vld [vmem:[#allocation71_spill] sm:$0xff] }
 0x259   : > { %8002 = vmatmul.mubr.bf16.gmra.mrb[248].mxu0 %v12033_v44 }
 0x25a   : > { %3174 = vmatmul.mubr.bf16.gmra.mrb[8].mxu1 %v12034_v55  ;;  %8005 = vmatprep.mubr.msk.bf16.mxu0 %vm8645_vm0, %v11885_v26 }
 0x25b   : > { %3181 = vmatprep.mubr.bf16.mxu1 %v12035_v47  ;;  %v12041_v47 = vld [vmem:[#allocation76_spill] sm:$0xff] }
 0x25c   : > { %v2682_v33 = vpop.f32.mrb[144].mxu0 }
 0x25d   : > { %v2465_v1 = vpop.f32.mrb[160].mxu1  ;;  %v10317_v56 = vadd.f32 %v2682_v33, %v2434_v23  ;;  %v7883_v45 = vpop.f32.mrb[145].mxu0  ;;  %v12040_v23 = vld [vmem:[#allocation72_spill] sm:$0xff] }
 0x25e   : > { %v2467_v30 = vpop.f32.mrb[161].mxu1  ;;  %v2685_v41 = vpop.f32.mrb[146].mxu0  ;;  %v10320_v53 = vadd.f32 %v2465_v1, %v12036_v48  ;;  %v12042_v48 = vld [vmem:[#allocation28_spill] sm:$0xff] }
 0x25f   : > { %v2468_v57 = vpop.f32.mrb[162].mxu1  ;;  %v10322_v4 = vadd.f32 %v2685_v41, %v2437_v63  ;;  %v7884_v20 = vpop.f32.mrb[147].mxu0 }
 0x260   : > { %v2470_v27 = vpop.f32.mrb[163].mxu1  ;;  %v10325_v15 = vadd.f32 %v2468_v57, %v12037_v0  ;;  %v12043_v20 = vld [vmem:[#allocation14_spill] sm:$0xff] }
 0x261   : > { %8006 = vmatmul.mubr.bf16.gmra.mrb[252].mxu0 %v12038_v50  ;;  %v12044_v27 = vld [vmem:[#allocation74_spill] sm:$0xff] }
 0x262   : > { %3182 = vmatmul.mubr.bf16.gmra.mrb[12].mxu1 %v12039_v42  ;;  %8009 = vmatprep.mubr.msk.bf16.mxu0 %vm8645_vm0, %v11885_v26 }
 0x263   : > { %3189 = vmatprep.mubr.bf16.mxu1 %v12040_v23 }
 0x264   : > { %v2690_v18 = vpop.f32.mrb[148].mxu0 }
 0x265   : > { %v2473_v51 = vpop.f32.mrb[164].mxu1  ;;  %v10332_v49 = vadd.f32 %v2690_v18, %v2442_v43  ;;  %v7887_v63 = vpop.f32.mrb[149].mxu0  ;;  %v12045_v43 = vld [vmem:[#allocation27_spill] sm:$0xff] }
 0x266   : > { %v2475_v44 = vpop.f32.mrb[165].mxu1  ;;  %v2693_v55 = vpop.f32.mrb[150].mxu0  ;;  %v10335_v33 = vadd.f32 %v2473_v51, %v12041_v47  ;;  %v12046_v51 = vld [vmem:[#allocation33_spill] sm:$0xff] }
 0x267   : > { %v2476_v1 = vpop.f32.mrb[166].mxu1  ;;  %v10337_v45 = vadd.f32 %v2693_v55, %v2445_v62  ;;  %v7888_v30 = vpop.f32.mrb[151].mxu0 }
 0x268   : > { %v2478_v41 = vpop.f32.mrb[167].mxu1  ;;  %v10340_v57 = vadd.f32 %v2476_v1, %v12042_v48  ;;  %v8517_v1 = vld [vmem:[%s11738_s3 + $0x100] sm:$0xff]  }
 0x269   : > { %8010 = vmatmul.mubr.bf16.gmra.mrb[0].mxu0 %v12043_v20  ;;  %v12047_v41 = vld [vmem:[#allocation80_spill] sm:$0xff]  ;;  %7297 = vmatprep.subr.bf16.mxu1 %v8517_v1  ;;  %v12049_v20 = vld [vmem:[#allocation77_spill] sm:$0xff] }
 0x26a   : > { %3190 = vmatmul.mubr.bf16.gmra.mrb[16].mxu1 %v12044_v27  ;;  %8013 = vmatprep.mubr.msk.bf16.mxu0 %vm8645_vm0, %v11885_v26  ;;  %v12050_v27 = vld [vmem:[#allocation31_spill] sm:$0xff] }
 0x26b   : > { %3197 = vmatprep.mubr.bf16.mxu1 %v12045_v43 }
 0x26c   : > { %v2698_v0 = vpop.f32.mrb[152].mxu0 }
 0x26d   : > { %v2481_v50 = vpop.f32.mrb[168].mxu1  ;;  %v10347_v42 = vadd.f32 %v2698_v0, %v2450_v58  ;;  %v7891_v62 = vpop.f32.mrb[153].mxu0  ;;  %v12048_v58 = vld [vmem:[#allocation12_spill] sm:$0xff] }
 0x26e   : > { %v2483_v23 = vpop.f32.mrb[169].mxu1  ;;  %v2701_v18 = vpop.f32.mrb[154].mxu0  ;;  %v10350_v63 = vadd.f32 %v2481_v50, %v12046_v51  ;;  %v12051_v51 = vld [vmem:[#allocation13_spill] sm:$0xff] }
 0x26f   : > { %v2484_v44 = vpop.f32.mrb[170].mxu1  ;;  %v10352_v55 = vadd.f32 %v2701_v18, %v2453_v60  ;;  %v7892_v47 = vpop.f32.mrb[155].mxu0  ;;  %v8519_v60 = vld [vmem:[%s11738_s3 + $0x140] sm:$0xff]  }
 0x270   : > { %v2486_v30 = vpop.f32.mrb[171].mxu1  ;;  %v10358_v48 = vadd.f32 %v2484_v44, %v12047_v41  ;;  %8077 = vmatprep.subr.bf16.mxu0 %v8519_v60 }
 0x271   : > { %8014 = vmatmul.mubr.bf16.gmra.mrb[4].mxu0 %v12048_v58  ;;  %v12053_v58 = vld [vmem:[#allocation82_spill] sm:$0xff] }
 0x272   : > { %3198 = vmatmul.mubr.bf16.gmra.mrb[20].mxu1 %v12049_v20  ;;  %8017 = vmatprep.mubr.msk.bf16.mxu0 %vm8645_vm0, %v11885_v26 }
 0x273   : > { %3205 = vmatprep.mubr.bf16.mxu1 %v12050_v27  ;;  %8078 = vmatpush3.bf16.msra.mxu0 %v8519_v60  ;;  %v12054_v27 = vld [vmem:[#allocation15_spill] sm:$0xff] }
 0x274   : > { %v2706_v43 = vpop.f32.mrb[156].mxu0  ;;  %v12056_v60 = vld [vmem:[#allocation79_spill] sm:$0xff] }
 0x275   : > { %v2489_v0 = vpop.f32.mrb[172].mxu1  ;;  %v10369_v50 = vadd.f32 %v2706_v43, %v10305_v39  ;;  %v7895_v62 = vpop.f32.mrb[157].mxu0  ;;  %v12055_v39 = vld [vmem:[#allocation78_spill] sm:$0xff] }
 0x276   : > { %v2491_v23 = vpop.f32.mrb[173].mxu1  ;;  %v2709_v18 = vpop.f32.mrb[158].mxu0  ;;  %v10372_v44 = vadd.f32 %v2489_v0, %v12051_v51  ;;  %v12057_v51 = vld [vmem:[#allocation83_spill] sm:$0xff] }
 0x277   : > { %v2492_v47 = vpop.f32.mrb[174].mxu1  ;;  %v10375_v1 = vadd.f32 %v2709_v18, %v10310_v38  ;;  %v7896_v30 = vpop.f32.mrb[159].mxu0 }
 0x278   : > { %v2494_v41 = vpop.f32.mrb[175].mxu1  ;;  %v10378_v20 = vadd.f32 %v2492_v47, %v12053_v58  ;;  %v8526_v30 = vld [vmem:[%s11738_s3 + $0x148] sm:$0xff]  }
 0x279   : > { %12052 = vst [vmem:[#allocation26_spill] sm:$0xff] %v10375_v1  ;;  %8018 = vmatmul.mubr.bf16.gmra.mrb[8].mxu0 %v12054_v27  ;;  %8079 = vmatprep.subr.bf16.mxu0 %v8526_v30 }
 0x27a   : > { %3206 = vmatmul.mubr.bf16.gmra.mrb[24].mxu1 %v12055_v39  ;;  %8021 = vmatprep.mubr.msk.bf16.mxu0 %vm8645_vm0, %v11885_v26 }
 0x27b   : > { %3213 = vmatprep.mubr.bf16.mxu1 %v12056_v60  ;;  %v12058_v60 = vld [vmem:[#allocation36_spill] sm:$0xff]  ;;  %8080 = vmatpush3.bf16.msra.mxu0 %v8526_v30 }
 0x27c   : > { %v2714_v43 = vpop.f32.mrb[160].mxu0 }
 0x27d   : > { %v2497_v0 = vpop.f32.mrb[176].mxu1  ;;  %v10386_v62 = vadd.f32 %v2714_v43, %v10320_v53  ;;  %v7899_v38 = vpop.f32.mrb[161].mxu0  ;;  %v12059_v53 = vld [vmem:[#allocation18_spill] sm:$0xff]  ;;  %v12060_v43 = vld [vmem:[#allocation81_spill] sm:$0xff] }
 0x27e   : > { %v2499_v23 = vpop.f32.mrb[177].mxu1  ;;  %v2717_v18 = vpop.f32.mrb[162].mxu0  ;;  %v10389_v47 = vadd.f32 %v2497_v0, %v12057_v51  ;;  %v8529_v0 = vld [vmem:[%s11738_s3 + $0x150] sm:$0xff]   ;;  %v12061_v38 = vld [vmem:[#allocation35_spill] sm:$0xff] }
 0x27f   : > { %v2500_v41 = vpop.f32.mrb[178].mxu1  ;;  %v10395_v58 = vadd.f32 %v2717_v18, %v10325_v15  ;;  %v7900_v27 = vpop.f32.mrb[163].mxu0  ;;  %8081 = vmatprep.subr.bf16.mxu0 %v8529_v0 }
 0x280   : > { %v2502_v39 = vpop.f32.mrb[179].mxu1  ;;  %v10398_v1 = vadd.f32 %v2500_v41, %v12058_v60  ;;  %v8532_v60 = vld [vmem:[%s11738_s3 + $0x158] sm:$0xff]   ;;  %8082 = vmatpush3.bf16.msra.mxu0 %v8529_v0 }
 0x281   : > { %8022 = vmatmul.mubr.bf16.gmra.mrb[12].mxu0 %v12059_v53  ;;  %8083 = vmatprep.subr.bf16.mxu0 %v8532_v60 }
 0x282   : > { %3214 = vmatmul.mubr.bf16.gmra.mrb[28].mxu1 %v12060_v43  ;;  %8025 = vmatprep.mubr.msk.bf16.mxu0 %vm8645_vm0, %v11885_v26 }
 0x283   : > { %3221 = vmatprep.mubr.bf16.mxu1 %v12061_v38 }
 0x284   : > { %v2722_v15 = vpop.f32.mrb[164].mxu0  ;;  %8084 = vmatpush3.bf16.msra.mxu0 %v8532_v60 }
 0x285   : > { %v2505_v23 = vpop.f32.mrb[180].mxu1  ;;  %v10409_v18 = vadd.f32 %v2722_v15, %v10335_v33  ;;  %v7903_v51 = vpop.f32.mrb[165].mxu0  ;;  %v12064_v15 = vld [vmem:[#allocation17_spill] sm:$0xff] }
 0x286   : > { %v2507_v41 = vpop.f32.mrb[181].mxu1  ;;  %v2725_v27 = vpop.f32.mrb[166].mxu0  ;;  %v10412_v39 = vadd.f32 %v2505_v23, %v10040_v31  ;;  %v12065_v51 = vld [vmem:[#allocation84_spill] sm:$0xff]  ;;  %v8535_v31 = vld [vmem:[%s11738_s3 + $0x160] sm:$0xff]  }
 0x287   : > { %12062 = vst [vmem:[#allocation30_spill] sm:$0xff] %v10409_v18  ;;  %v2508_v53 = vpop.f32.mrb[182].mxu1  ;;  %v10418_v43 = vadd.f32 %v2725_v27, %v10340_v57  ;;  %v7904_v30 = vpop.f32.mrb[167].mxu0  ;;  %v12066_v57 = vld [vmem:[#allocation39_spill] sm:$0xff]  ;;  %8085 = vmatprep.subr.bf16.mxu0 %v8535_v31 }
 0x288   : > { %v2510_v38 = vpop.f32.mrb[183].mxu1  ;;  %v10421_v33 = vadd.f32 %v2508_v53, %v10049_v37  ;;  %v12068_v30 = vld [vmem:[#allocation86_spill] sm:$0xff]  ;;  %8086 = vmatpush3.bf16.msra.mxu0 %v8535_v31  ;;  %v12070_v18 = vld [vmem:[#allocation87_spill] sm:$0xff] }
 0x289   : > { %12063 = vst [vmem:[#allocation24_spill] sm:$0xff] %v10418_v43  ;;  %8026 = vmatmul.mubr.bf16.gmra.mrb[16].mxu0 %v12064_v15  ;;  %v8538_v15 = vld [vmem:[%s11738_s3 + $0x168] sm:$0xff]  }
 0x28a   : > { %3222 = vmatmul.mubr.bf16.gmra.mrb[32].mxu1 %v12065_v51  ;;  %8029 = vmatprep.mubr.msk.bf16.mxu0 %vm8645_vm0, %v11885_v26 }
 0x28b   : > { %3229 = vmatprep.mubr.bf16.mxu1 %v12066_v57  ;;  %8087 = vmatprep.subr.bf16.mxu0 %v8538_v15 }
 0x28c   : > { %v2730_v0 = vpop.f32.mrb[168].mxu0  ;;  %8088 = vmatpush3.bf16.msra.mxu0 %v8538_v15 }
 0x28d   : > { %v2513_v23 = vpop.f32.mrb[184].mxu1  ;;  %v10432_v37 = vadd.f32 %v2730_v0, %v10350_v63  ;;  %v7907_v41 = vpop.f32.mrb[169].mxu0  ;;  %v12071_v0 = vld [vmem:[#allocation20_spill] sm:$0xff] }
 0x28e   : > { %v2515_v27 = vpop.f32.mrb[185].mxu1  ;;  %v2733_v53 = vpop.f32.mrb[170].mxu0  ;;  %v10435_v38 = vadd.f32 %v2513_v23, %v12068_v30  ;;  %v12072_v41 = vld [vmem:[#allocation41_spill] sm:$0xff] }
 0x28f   : > { %12067 = vst [vmem:[#allocation29_spill] sm:$0xff] %v10432_v37  ;;  %v2516_v51 = vpop.f32.mrb[186].mxu1  ;;  %v10441_v57 = vadd.f32 %v2733_v53, %v10358_v48  ;;  %v7908_v60 = vpop.f32.mrb[171].mxu0  ;;  %v8539_v23 = vld [vmem:[%s11738_s3 + $0x170] sm:$0xff]  }
 0x290   : > { %v2518_v43 = vpop.f32.mrb[187].mxu1  ;;  %v10444_v63 = vadd.f32 %v2516_v51, %v12070_v18  ;;  %v12073_v48 = vld [vmem:[#allocation85_spill] sm:$0xff]  ;;  %8089 = vmatprep.subr.bf16.mxu0 %v8539_v23  ;;  %v12074_v51 = vld [vmem:[#allocation22_spill] sm:$0xff] }
 0x291   : > { %12069 = vst [vmem:[#allocation34_spill] sm:$0xff] %v10441_v57  ;;  %8030 = vmatmul.mubr.bf16.gmra.mrb[20].mxu0 %v12071_v0  ;;  %v8540_v0 = vld [vmem:[%s11738_s3 + $0x178] sm:$0xff]   ;;  %v12076_v37 = vld [vmem:[#allocation89_spill] sm:$0xff] }
 0x292   : > { %3230 = vmatmul.mubr.bf16.gmra.mrb[36].mxu1 %v12072_v41  ;;  %8033 = vmatprep.mubr.msk.bf16.mxu0 %vm8645_vm0, %v11885_v26 }
 0x293   : > { %3237 = vmatprep.mubr.bf16.mxu1 %v12073_v48  ;;  %8090 = vmatpush3.bf16.msra.mxu0 %v8539_v23 }
 0x294   : > { %v2738_v31 = vpop.f32.mrb[172].mxu0  ;;  %8091 = vmatprep.subr.bf16.mxu0 %v8540_v0 }
 0x295   : > { %v2521_v43 = vpop.f32.mrb[188].mxu1  ;;  %v10455_v18 = vadd.f32 %v2738_v31, %v10372_v44  ;;  %v7911_v27 = vpop.f32.mrb[173].mxu0  ;;  %v12077_v31 = vld [vmem:[#allocation23_spill] sm:$0xff] }
 0x296   : > { %v2523_v53 = vpop.f32.mrb[189].mxu1  ;;  %v2741_v30 = vpop.f32.mrb[174].mxu0  ;;  %v10458_v60 = vadd.f32 %v2521_v43, %v12074_v51  ;;  %v12078_v27 = vld [vmem:[#allocation19_spill] sm:$0xff] }
 0x297   : > { %v2524_v41 = vpop.f32.mrb[190].mxu1  ;;  %v10464_v48 = vadd.f32 %v2741_v30, %v10378_v20  ;;  %v7912_v15 = vpop.f32.mrb[175].mxu0  ;;  %v12079_v43 = vld [vmem:[#allocation43_spill] sm:$0xff]  ;;  %8092 = vmatpush3.bf16.msra.mxu0 %v8540_v0  ;;  %v12082_v0 = vld [vmem:[#allocation88_spill] sm:$0xff] }
 0x298   : > { %v2526_v57 = vpop.f32.mrb[191].mxu1  ;;  %v10467_v44 = vadd.f32 %v2524_v41, %v12076_v37 }
 0x299   : > { %12075 = vst [vmem:[#allocation38_spill] sm:$0xff] %v10464_v48  ;;  %8034 = vmatmul.mubr.bf16.gmra.mrb[24].mxu0 %v12077_v31  ;;  %v12083_v48 = vld [vmem:[#allocation90_spill] sm:$0xff] }
 0x29a   : > { %3238 = vmatmul.mubr.bf16.gmra.mrb[40].mxu1 %v12078_v27  ;;  %8037 = vmatprep.mubr.msk.bf16.mxu0 %vm8645_vm0, %v11885_v26 }
 0x29b   : > { %3245 = vmatprep.mubr.bf16.mxu1 %v12079_v43 }
 0x29c   : > { %v2746_v53 = vpop.f32.mrb[176].mxu0 }
 0x29d   : > { %v2529_v20 = vpop.f32.mrb[192].mxu1  ;;  %v10475_v30 = vadd.f32 %v2746_v53, %v10389_v47  ;;  %v7915_v57 = vpop.f32.mrb[177].mxu0  ;;  %v12084_v47 = vld [vmem:[#allocation44_spill] sm:$0xff] }
 0x29e   : > { %v2531_v23 = vpop.f32.mrb[193].mxu1  ;;  %v2749_v37 = vpop.f32.mrb[178].mxu0  ;;  %v10478_v51 = vadd.f32 %v2529_v20, %v10105_v8  ;;  %v10494_v57 = vld [vmem:[#allocation2 + $0x130] sm:$0xff] }
 0x29f   : > { %12080 = vst [vmem:[#allocation32_spill] sm:$0xff] %v10475_v30  ;;  %v2532_v41 = vpop.f32.mrb[194].mxu1  ;;  %v10481_v15 = vadd.f32 %v2749_v37, %v10398_v1  ;;  %v7916_v31 = vpop.f32.mrb[179].mxu0 }
 0x2a0   : > { %v2534_v27 = vpop.f32.mrb[195].mxu1  ;;  %v10484_v43 = vadd.f32 %v2532_v41, %v10112_v54 }
 0x2a1   : > { %12081 = vst [vmem:[#allocation37_spill] sm:$0xff] %v10481_v15  ;;  %8038 = vmatmul.mubr.bf16.gmra.mrb[28].mxu0 %v12082_v0  ;;  %v836_v0 = vshll.u32 %v10494_v57, 16 }
 0x2a2   : > { %3246 = vmatmul.mubr.bf16.gmra.mrb[44].mxu1 %v12083_v48  ;;  %8041 = vmatprep.mubr.msk.bf16.mxu0 %vm8645_vm0, %v11885_v26 }
 0x2a3   : > { %3253 = vmatprep.mubr.bf16.mxu1 %v12084_v47 }
 0x2a4   : > { %v2754_v8 = vpop.f32.mrb[180].mxu0 }
 0x2a5   : > { %v2537_v53 = vpop.f32.mrb[196].mxu1  ;;  %v10492_v20 = vadd.f32 %v2754_v8, %v10412_v39  ;;  %v7919_v1 = vpop.f32.mrb[181].mxu0  ;;  %v10507_v39 = vld [vmem:[#allocation2 + $0x138] sm:$0xff]  ;;  %v12087_v8 = vld [vmem:[#allocation91_spill] sm:$0xff] }
 0x2a6   : > { %v2539_v23 = vpop.f32.mrb[197].mxu1  ;;  %v2757_v54 = vpop.f32.mrb[182].mxu0  ;;  %v10497_v37 = vadd.f32 %v2537_v53, %v10122_v25  ;;  %v12088_v25 = vld [vmem:[#allocation92_spill] sm:$0xff]  ;;  %v834_v53 = vshrl.u32 %v10494_v57, 16  ;;  %v838_v1 = vrot.slane %v836_v0, 1 }
 0x2a7   : > { %12085 = vst [vmem:[#allocation8_spill] sm:$0xff] %v10492_v20  ;;  %v2540_v41 = vpop.f32.mrb[198].mxu1  ;;  %v10500_v48 = vadd.f32 %v2757_v54, %v10421_v33  ;;  %v7920_v31 = vpop.f32.mrb[183].mxu0  ;;  %v841_v23 = vshll.u32 %v10507_v39, 16 }
 0x2a8   : > { %v2542_v27 = vpop.f32.mrb[199].mxu1  ;;  %v10504_v47 = vadd.f32 %v2540_v41, %v10131_v34  ;;  %v839_v15 = vor.u32 %v838_v1, %v834_v53 }
 0x2a9   : > { %12086 = vst [vmem:[#allocation48_spill] sm:$0xff] %v10500_v48  ;;  %8042 = vmatmul.mubr.bf16.gmra.mrb[32].mxu0 %v11997_v7  ;;  %v843_v0 = vrot.slane %v841_v23, 1 }
 0x2aa   : > { %3254 = vmatmul.mubr.bf16.gmra.mrb[48].mxu1 %v12087_v8  ;;  %8045 = vmatprep.mubr.msk.bf16.mxu0 %vm8645_vm0, %v11885_v26 }
 0x2ab   : > { %3261 = vmatprep.mubr.bf16.mxu1 %v12088_v25 }
 0x2ac   : > { %v2762_v33 = vpop.f32.mrb[184].mxu0 }
 0x2ad   : > { %v2545_v54 = vpop.f32.mrb[200].mxu1  ;;  %v10516_v34 = vadd.f32 %v2762_v33, %v10435_v38  ;;  %v7923_v7 = vpop.f32.mrb[185].mxu0  ;;  %v12089_v38 = vld [vmem:[#allocation45_spill] sm:$0xff] }
 0x2ae   : > { %v2547_v41 = vpop.f32.mrb[201].mxu1  ;;  %v2765_v31 = vpop.f32.mrb[186].mxu0  ;;  %v10519_v27 = vadd.f32 %v2545_v54, %v10141_v19  ;;  %v845_v19 = vshrl.u32 %v10507_v39, 16 }
 0x2af   : > { %v2548_v8 = vpop.f32.mrb[202].mxu1  ;;  %v10522_v48 = vadd.f32 %v2765_v31, %v10444_v63  ;;  %v7924_v25 = vpop.f32.mrb[187].mxu0  ;;  %v844_v63 = vsel %vm547_vm1, %v839_v15, %v843_v0  ;;  %v12090_v41 = vld [vmem:[#allocation46_spill] sm:$0xff] }
 0x2b0   : > { %v2550_v20 = vpop.f32.mrb[203].mxu1  ;;  %v2549_v30 = vadd.f32 %v2548_v8, %v10146_v24  ;;  %v6605_v31 = vcombine.low %v12090_v41, %v844_v63  ;;  %v847_v8 = vor.u32 %v845_v19, %v843_v0 }
 0x2b1   : > { %8046 = vmatmul.mubr.bf16.gmra.mrb[36].mxu0 %v10126_v46 }
 0x2b2   : > { %3262 = vmatmul.mubr.bf16.gmra.mrb[52].mxu1 %v10128_v22  ;;  %8049 = vmatprep.mubr.msk.bf16.mxu0 %vm8645_vm0, %v11885_v26 }
 0x2b3   : > { %3269 = vmatprep.mubr.bf16.mxu1 %v12089_v38  ;;  %v2829_v38 = vunpack.c.h.b16 %v844_v63 }
 0x2b4   : > { %v2770_v33 = vpop.f32.mrb[188].mxu0 }
 0x2b5   : > { %v2553_v54 = vpop.f32.mrb[204].mxu1  ;;  %v10533_v20 = vadd.f32 %v2770_v33, %v10458_v60  ;;  %v7927_v53 = vpop.f32.mrb[189].mxu0  ;;  %v8614_v60 = vld [vmem:[#allocation2 + $0x120] sm:$0xff]  ;;  %v2832_v33 = vunpack.c.l.b16 %v847_v8 }
 0x2b6   : > { %v2555_v24 = vpop.f32.mrb[205].mxu1  ;;  %v2773_v1 = vpop.f32.mrb[190].mxu0  ;;  %v2554_v46 = vadd.f32 %v2553_v54, %v10156_v36 }
 0x2b7   : > { %v2556_v22 = vpop.f32.mrb[206].mxu1  ;;  %v10537_v23 = vadd.f32 %v2773_v1, %v10467_v44  ;;  %v7928_v7 = vpop.f32.mrb[191].mxu0  ;;  %v2890_v63 = vpack.c.b16 %v2832_v33, %v2829_v38 }
 0x2b8   : > { %v2558_v25 = vpop.f32.mrb[207].mxu1  ;;  %v2557_v15 = vadd.f32 %v2556_v22, %v10159_v12  ;;  %v8615_v7 = vld [vmem:[#allocation2 + $0x128] sm:$0xff] }
 0x2b9   : > { %8050 = vmatmul.mubr.bf16.gmra.mrb[40].mxu0 %v10143_v11  ;;  %v6604_v0 = vcombine.low %v8615_v7, %v10494_v57 }
 0x2ba   : > { %3270 = vmatmul.mubr.bf16.gmra.mrb[56].mxu1 %v8614_v60 }
 0x2bb   : > { %3277 = vmatprep.mubr.bf16.mxu1 %v6605_v31 }
 0x2bc   : > { %v2778_v53 = vpop.f32.mrb[192].mxu0 }
 0x2bd   : > { %v2561_v36 = vpop.f32.mrb[208].mxu1  ;;  %v10543_v54 = vadd.f32 %v2778_v53, %v10478_v51  ;;  %v7931_v44 = vpop.f32.mrb[193].mxu0 }
 0x2be   : > { %v2563_v24 = vpop.f32.mrb[209].mxu1  ;;  %v2781_v1 = vpop.f32.mrb[194].mxu0  ;;  %v2562_v12 = vadd.f32 %v2561_v36, %v10174_v5  ;;  %v7001_v44 = vld [vmem:[#allocation2 + $0x134] sm:$0xff] }
 0x2bf   : > { %v2564_v19 = vpop.f32.mrb[210].mxu1  ;;  %v10548_v11 = vadd.f32 %v2781_v1, %v10484_v43  ;;  %v7932_v22 = vpop.f32.mrb[195].mxu0 }
 0x2c0   : > { %v2566_v41 = vpop.f32.mrb[211].mxu1 }
 0x2c2   : > { %3278 = vmatmul.mubr.bf16.gmra.mrb[60].mxu1 %v6604_v0 }
 0x2c3   : > { %3285 = vmatprep.mubr.bf16.mxu1 %v2890_v63 }
 0x2c4   : > { %v2786_v31 = vpop.f32.mrb[196].mxu0 }
 0x2c5   : > { %v2569_v51 = vpop.f32.mrb[212].mxu1  ;;  %v10551_v8 = vadd.f32 %v2786_v31, %v10497_v37  ;;  %v7935_v25 = vpop.f32.mrb[197].mxu0  ;;  %v8520_v31 = vld [vmem:[%s11738_s3 + $0x108] sm:$0xff]  }
 0x2c6   : > { %v2571_v60 = vpop.f32.mrb[213].mxu1  ;;  %v2789_v53 = vpop.f32.mrb[198].mxu0  ;;  %v8522_v51 = vld [vmem:[%s11738_s3 + $0x110] sm:$0xff]  }
 0x2c7   : > { %v2572_v24 = vpop.f32.mrb[214].mxu1  ;;  %v10554_v5 = vadd.f32 %v2789_v53, %v10504_v47  ;;  %v7936_v43 = vpop.f32.mrb[199].mxu0  ;;  %v8518_v47 = vld [vmem:[%s11738_s3 + $0xc0] sm:$0xff]  }
 0x2c8   : > { %v2574_v36 = vpop.f32.mrb[215].mxu1 }
 0x2ca   : > { %3286 = vmatmul.mubr.bf16.gmra.mrb[64].mxu1 %v7001_v44 }
 0x2cb   : > { %8053 = vmatprep.mubr.msk.bf16.mxu1 %vm8645_vm0, %v11885_v26 }
 0x2cc   : > { %v2794_v38 = vpop.f32.mrb[200].mxu0 }
 0x2cd   : > { %v10559_v33 = vadd.f32 %v2794_v38, %v10519_v27  ;;  %v3079_v37 = vpop.f32.mrb[216].mxu1  ;;  %v7939_v1 = vpop.f32.mrb[201].mxu0  ;;  %v8523_v38 = vld [vmem:[%s11738_s3 + $0xd0] sm:$0xff]  }
 0x2ce   : > { %v3081_v7 = vpop.f32.mrb[217].mxu1  ;;  %v2797_v0 = vpop.f32.mrb[202].mxu0 }
 0x2cf   : > { %v10561_v19 = vadd.f32 %v2797_v0, %v2549_v30  ;;  %v3082_v22 = vpop.f32.mrb[218].mxu1  ;;  %v7940_v63 = vpop.f32.mrb[203].mxu0  ;;  %v8521_v30 = vld [vmem:[%s11738_s3 + $0xc8] sm:$0xff]   ;;  %v8527_v7 = vld [vmem:[%s11738_s3 + $0x120] sm:$0xff]  }
 0x2d0   : > { %v3084_v41 = vpop.f32.mrb[219].mxu1 }
 0x2d2   : > { %8054 = vmatmul.mubr.bf16.vlgmr.msra.gmra.mrb[68].mxu1 %v12001_v21 }
 0x2d3   : > { %8057 = vmatprep.mubr.msk.bf16.mxu1 %vm8645_vm0, %v11885_v26  ;;  %7298 = vmatpush3.bf16.msra.mxu1 %v8518_v47 }
 0x2d4   : > { %v2802_v27 = vpop.f32.mrb[204].mxu0  ;;  %7299 = vmatprep.subr.bf16.mxu1 %v8520_v31 }
 0x2d5   : > { %v10578_v25 = vadd.f32 %v2802_v27, %v2554_v46  ;;  %v3087_v60 = vpop.f32.mrb[220].mxu1  ;;  %v7943_v53 = vpop.f32.mrb[205].mxu0  ;;  %v8524_v46 = vld [vmem:[%s11738_s3 + $0x118] sm:$0xff]  }
 0x2d6   : > { %v3089_v44 = vpop.f32.mrb[221].mxu1  ;;  %v2805_v21 = vpop.f32.mrb[206].mxu0  ;;  %v8533_v53 = vld [vmem:[%s11738_s3 + $0x130] sm:$0xff]  }
 0x2d7   : > { %12091 = vst [vmem:[#allocation47_spill] sm:$0xff] %v10578_v25  ;;  %v10580_v24 = vadd.f32 %v2805_v21, %v2557_v15  ;;  %v10582_v43 = vpop.f32.mrb[222].mxu1  ;;  %v7944_v36 = vpop.f32.mrb[207].mxu0  ;;  %7300 = vmatpush3.bf16.msra.mxu1 %v8521_v30  ;;  %v8525_v15 = vld [vmem:[%s11738_s3 + $0xd8] sm:$0xff]   ;;  %v8528_v30 = vld [vmem:[%s11738_s3 + $0xe0] sm:$0xff]  }
 0x2d8   : > { %v3092_v37 = vpop.f32.mrb[223].mxu1  ;;  %7301 = vmatprep.subr.bf16.mxu1 %v8522_v51  ;;  %v8531_v51 = vld [vmem:[%s11738_s3 + $0xe8] sm:$0xff]  }
 0x2d9   : > { %12092 = vst [vmem:[#allocation49_spill] sm:$0xff] %v10580_v24  ;;  %v947_v37 = vrot.slane %v10507_v39, 1  ;;  %v8537_v39 = vld [vmem:[%s11738_s3 + $0xf8] sm:$0xff]  }
 0x2da   : > { %8058 = vmatmul.mubr.bf16.gmra.mrb[72].mxu1 %v10178_v40 }
 0x2db   : > { %8061 = vmatprep.mubr.msk.bf16.mxu1 %vm8645_vm0, %v11885_v26  ;;  %7302 = vmatpush3.bf16.msra.mxu1 %v8523_v38 }
 0x2dc   : > { %v2810_v1 = vpop.f32.mrb[208].mxu0  ;;  %7303 = vmatprep.subr.bf16.mxu1 %v8524_v46 }
 0x2dd   : > { %v10599_v0 = vadd.f32 %v2810_v1, %v2562_v12  ;;  %v10601_v22 = vpop.f32.mrb[224].mxu1  ;;  %v7947_v63 = vpop.f32.mrb[209].mxu0  ;;  %v8530_v12 = vld [vmem:[%s11738_s3 + $0x128] sm:$0xff]   ;;  %v8534_v1 = vld [vmem:[%s11738_s3 + $0xf0] sm:$0xff]  }
 0x2de   : > { %v3097_v40 = vpop.f32.mrb[225].mxu1  ;;  %v2813_v47 = vpop.f32.mrb[210].mxu0  ;;  %v8536_v63 = vld [vmem:[%s11738_s3 + $0x138] sm:$0xff]  }
 0x2df   : > { %12093 = vst [vmem:[#allocation50_spill] sm:$0xff] %v10599_v0  ;;  %v10603_v41 = vpop.f32.mrb[226].mxu1  ;;  %v7948_v31 = vpop.f32.mrb[211].mxu0  ;;  %7304 = vmatpush3.bf16.msra.mxu1 %v8525_v15  ;;  %v12094_v40 = vld [vmem:[#allocation42_spill] sm:$0xff] }
 0x2e0   : > { %v3100_v27 = vpop.f32.mrb[227].mxu1  ;;  %7305 = vmatprep.subr.bf16.mxu1 %v8527_v7 }
 0x2e1   : > { %v12095_v27 = vld [vmem:[#allocation40_spill] sm:$0xff] }
 0x2e2   : > { %8062 = vmatmul.mubr.bf16.gmra.mrb[76].mxu1 %v10197_v16  ;;  %v946_v16 = vrot.slane %v10494_v57, 1 }
 0x2e3   : > { %8065 = vmatprep.mubr.msk.bf16.mxu1 %vm8645_vm0, %v11885_v26  ;;  %7306 = vmatpush3.bf16.msra.mxu1 %v8528_v30 }
 0x2e4   : > { %v2818_v60 = vpop.f32.mrb[212].mxu0  ;;  %7307 = vmatprep.subr.bf16.mxu1 %v8530_v12  ;;  %v948_v57 = vsel %vm888_vm2, %v946_v16, %v947_v37  ;;  %v2833_v16 = vunpack.c.l.b16 %v947_v37  ;;  %v10655_v37 = vld [vmem:[%s11737_s2] ss:$0 sm:$0xff] }
 0x2e5   : > { %v10620_v44 = vpop.f32.mrb[228].mxu1  ;;  %v7951_v21 = vpop.f32.mrb[213].mxu0  ;;  %v6606_v12 = vcombine.low %v12095_v27, %v948_v57 }
 0x2e6   : > { %v3105_v36 = vpop.f32.mrb[229].mxu1  ;;  %v2821_v38 = vpop.f32.mrb[214].mxu0 }
 0x2e7   : > { %v10624_v46 = vpop.f32.mrb[230].mxu1  ;;  %v7952_v15 = vpop.f32.mrb[215].mxu0  ;;  %7308 = vmatpush3.bf16.msra.mxu1 %v8531_v51  ;;  %v2830_v38 = vunpack.c.h.b16 %v948_v57 }
 0x2e8   : > { %v3108_v7 = vpop.f32.mrb[231].mxu1  ;;  %7309 = vmatprep.subr.bf16.mxu1 %v8533_v53 }
 0x2ea   : > { %8066 = vmatmul.mubr.bf16.gmra.mrb[80].mxu1 %v12094_v40 }
 0x2eb   : > { %8069 = vmatprep.mubr.msk.bf16.mxu1 %vm8645_vm0, %v11885_v26  ;;  %7310 = vmatpush3.bf16.msra.mxu1 %v8534_v1 }
 0x2ec   : > { %v3328_v47 = vpop.f32.mrb[216].mxu0  ;;  %7311 = vmatprep.subr.bf16.mxu1 %v8536_v63  ;;  %v2891_v63 = vpack.c.b16 %v2833_v16, %v2830_v38 }
 0x2ed   : > { %v10639_v31 = vpop.f32.mrb[232].mxu1  ;;  %v7971_v30 = vpop.f32.mrb[217].mxu0 }
 0x2ee   : > { %v3113_v51 = vpop.f32.mrb[233].mxu1  ;;  %v3331_v60 = vpop.f32.mrb[218].mxu0 }
 0x2ef   : > { %v10642_v53 = vpop.f32.mrb[234].mxu1  ;;  %v7972_v21 = vpop.f32.mrb[219].mxu0  ;;  %7312 = vmatpush3.bf16.msra.mxu1 %v8537_v39 }
 0x2f0   : > { %v3116_v36 = vpop.f32.mrb[235].mxu1 }
 0x2f2   : > { %8070 = vmatmul.mubr.bf16.gmra.mrb[84].mxu1 %v6606_v12 }
 0x2f3   : > { %8073 = vmatprep.mubr.msk.bf16.mxu1 %vm8645_vm0, %v11885_v26  ;;  %v3731_v26 = vlaneseq }
 0x2f4   : > { %v3336_v15 = vpop.f32.mrb[220].mxu0 }
 0x2f5   : > { %v10646_v1 = vpop.f32.mrb[236].mxu1  ;;  %v7975_v7 = vpop.f32.mrb[221].mxu0  ;;  %v10658_v21 = vshrl.u32 %v3731_v26, 7 }
 0x2f6   : > { %v3121_v40 = vpop.f32.mrb[237].mxu1  ;;  %v3339_v47 = vpop.f32.mrb[222].mxu0 }
 0x2f7   : > { %v10648_v30 = vpop.f32.mrb[238].mxu1  ;;  %v3340_v27 = vadd.f32 %v3339_v47, %v10582_v43  ;;  %v7976_v51 = vpop.f32.mrb[223].mxu0  ;;  %vm3789_vm3 = vcmp.ge.s32.totalorder %v10658_v21, 1 }
 0x2f8   : > { %v3124_v39 = vpop.f32.mrb[239].mxu1  ;;  %vm10702_vm6 = vmpackc.low %vm8646_vm5, %vm3789_vm3 }
 0x2f9   : > { %v3546_v57 = vadd.f32 %v3340_v27, %v10224_v14  ;;  %v10668_v27 = vadd.s32 16, %v10658_v21 }
 0x2fa   : > { %8074 = vmatmul.mubr.bf16.gmra.mrb[88].mxu1 %v2891_v63 }
 0x2fb   : > { %v3607_v12 = vadd.f32 %v10655_v37, %v3546_v57  ;;  %vm3848_vm4 = vcmp.le.s32.totalorder %v10668_v27, 16 }
 0x2fc   : > { %v3344_v60 = vpop.f32.mrb[224].mxu0 }
 0x2fd   : > { %v10660_v36 = vpop.f32.mrb[240].mxu1  ;;  %v3345_v43 = vadd.f32 %v3344_v60, %v10601_v22  ;;  %v7979_v38 = vpop.f32.mrb[225].mxu0  ;;  %v3661_v63 = vmax.f32 %v3607_v12, 0.0 }
 0x2fe   : > { %v3129_v16 = vpop.f32.mrb[241].mxu1  ;;  %v3347_v15 = vpop.f32.mrb[226].mxu0 }
 0x2ff   : > { %v3547_v14 = vadd.f32 %v3345_v43, %v10233_v17  ;;  %v10664_v7 = vpop.f32.mrb[242].mxu1  ;;  %v3348_v40 = vadd.f32 %v3347_v15, %v10603_v41  ;;  %v7980_v47 = vpop.f32.mrb[227].mxu0  ;;  %v3906_v17 = vsel %vm3789_vm3, %v3661_v63, 0.0 }
 0x300   : > { %v3132_v51 = vpop.f32.mrb[243].mxu1 }
 0x301   : > { %v3608_v39 = vadd.f32 %v10655_v37, %v3547_v14  ;;  %v3548_v22 = vadd.f32 %v3348_v40, %v10237_v6 }
 0x303   : > { %v3662_v57 = vmax.f32 %v3608_v39, 0.0  ;;  %v3609_v26 = vadd.f32 %v10655_v37, %v3548_v22 }
 0x304   : > { %v3352_v41 = vpop.f32.mrb[228].mxu0 }
 0x305   : > { %v3959_v12 = vpack.c.bf16 %v3662_v57, %v3906_v17  ;;  %v10677_v60 = vpack.c.bf16 %v3662_v57, %v3661_v63  ;;  %v3663_v43 = vmax.f32 %v3609_v26, 0.0  ;;  %v10679_v38 = vpop.f32.mrb[244].mxu1  ;;  %v3353_v16 = vadd.f32 %v3352_v41, %v10620_v44  ;;  %v7983_v15 = vpop.f32.mrb[229].mxu0 }
 0x306   : > { %v3137_v14 = vpop.f32.mrb[245].mxu1  ;;  %v3355_v6 = vpop.f32.mrb[230].mxu0 }
 0x307   : > { %12096 = vst [vmem:[#allocation11_spill] sm:$0xff] %v10677_v60  ;;  %v3908_v40 = vsel %vm3848_vm4, %v3663_v43, 0.0  ;;  %v3549_v47 = vadd.f32 %v3353_v16, %v10246_v35  ;;  %v10685_v51 = vpop.f32.mrb[246].mxu1  ;;  %v3356_v39 = vadd.f32 %v3355_v6, %v10624_v46  ;;  %v7984_v22 = vpop.f32.mrb[231].mxu0  ;;  %v4008_v26 = vshll.u32 %v3959_v12, 16 }
 0x308   : > { %v3960_v63 = vpack.c.bf16 %v3908_v40, %v3908_v40  ;;  %v3140_v57 = vpop.f32.mrb[247].mxu1  ;;  %v4266_v41 = vrot.slane %v3959_v12, 1  ;;  %v4006_v14 = vshrl.u32 %v3959_v12, 16 }
 0x309   : > { %v3610_v17 = vadd.f32 %v10655_v37, %v3549_v47  ;;  %v3550_v44 = vadd.f32 %v3356_v39, %v10250_v9  ;;  %v4010_v0 = vrot.slane %v4008_v26, 1 }
 0x30a   : > { %v4267_v15 = vrot.slane %v3960_v63, 1  ;;  %v4013_v24 = vshll.u32 %v3960_v63, 16 }
 0x30b   : > { %v3664_v43 = vmax.f32 %v3610_v17, 0.0  ;;  %v3611_v35 = vadd.f32 %v10655_v37, %v3550_v44  ;;  %v4011_v46 = vor.u32 %v4010_v0, %v4006_v14 }
 0x30c   : > { %v3360_v16 = vpop.f32.mrb[232].mxu0  ;;  %v10692_v25 = vsel %vm888_vm2, %v4266_v41, %v4267_v15  ;;  %v4015_v6 = vrot.slane %v4013_v24, 1 }
 0x30d   : > { %12097 = vst [vmem:[#allocation51_spill] sm:$0xff] %v10692_v25  ;;  %v3909_v40 = vsel %vm3789_vm3, %v3664_v43, 0.0  ;;  %v3665_v47 = vmax.f32 %v3611_v35, 0.0  ;;  %v10696_v22 = vpop.f32.mrb[248].mxu1  ;;  %v3361_v9 = vadd.f32 %v3360_v16, %v10639_v31  ;;  %v7987_v12 = vpop.f32.mrb[233].mxu0  ;;  %8093 = vmatprep.mubr.bf16.mxu0 %v10692_v25 }
 0x30e   : > { %v3145_v0 = vpop.f32.mrb[249].mxu1  ;;  %v3363_v24 = vpop.f32.mrb[234].mxu0  ;;  %v10707_v63 = vsel %vm547_vm1, %v4011_v46, %v4015_v6 }
 0x30f   : > { %v3961_v57 = vpack.c.bf16 %v3665_v47, %v3909_v40  ;;  %v10709_v26 = vpack.c.bf16 %v3665_v47, %v3664_v43  ;;  %v3551_v31 = vadd.f32 %v3361_v9, %v10258_v52  ;;  %v10712_v17 = vpop.f32.mrb[250].mxu1  ;;  %v3364_v44 = vadd.f32 %v3363_v24, %v10642_v53  ;;  %4608 = vmatprep.mubr.bf16.mxu1 %v10707_v63  ;;  %v7988_v41 = vpop.f32.mrb[235].mxu0 }
 0x310   : > { %v3148_v15 = vpop.f32.mrb[251].mxu1  ;;  %6711 = vmatmul.mubr.msk.bf16.vlgmr.msra.gmra.mrb[92].mxu1 %vm10702_vm6, %v10677_v60 }
 0x311   : > { %v3612_v14 = vadd.f32 %v10655_v37, %v3551_v31  ;;  %v3552_v35 = vadd.f32 %v3364_v44, %v10261_v3  ;;  %v4020_v43 = vshll.u32 %v3961_v57, 16  ;;  %v4269_v31 = vrot.slane %v3961_v57, 1 }
 0x312   : > { %v4018_v25 = vshrl.u32 %v3961_v57, 16 }
 0x313   : > { %v3666_v16 = vmax.f32 %v3612_v14, 0.0  ;;  %v3613_v52 = vadd.f32 %v10655_v37, %v3552_v35  ;;  %v4022_v24 = vrot.slane %v4020_v43, 1 }
 0x314   : > { %v3368_v46 = vpop.f32.mrb[236].mxu0 }
 0x315   : > { %v3911_v53 = vsel %vm3848_vm4, %v3666_v16, 0.0  ;;  %v10724_v6 = vpop.f32.mrb[252].mxu1  ;;  %v3369_v40 = vadd.f32 %v3368_v46, %v10646_v1  ;;  %v7991_v47 = vpop.f32.mrb[237].mxu0  ;;  %v3667_v35 = vmax.f32 %v3613_v52, 0.0  ;;  %v8541_v1 = vld [vmem:[%s11738_s3 + $0x40] sm:$0xff]  }
 0x316   : > { %v3962_v9 = vpack.c.bf16 %v3911_v53, %v3911_v53  ;;  %v3153_v12 = vpop.f32.mrb[253].mxu1  ;;  %v3371_v0 = vpop.f32.mrb[238].mxu0  ;;  %v4023_v53 = vor.u32 %v4022_v24, %v4018_v25  ;;  %7433 = vmatprep.subr.bf16.mxu0 %v8541_v1  ;;  %v8542_v24 = vld [vmem:[%s11738_s3] sm:$0xff]  }
 0x317   : > { %v3553_v3 = vadd.f32 %v3369_v40, %v10269_v61  ;;  %v10728_v44 = vpop.f32.mrb[254].mxu1  ;;  %v3372_v41 = vadd.f32 %v3371_v0, %v10648_v30  ;;  %v7992_v15 = vpop.f32.mrb[239].mxu0  ;;  %v3912_v57 = vsel %vm3789_vm3, %v3667_v35, 0.0 }
 0x318   : > { %v4270_v14 = vrot.slane %v3962_v9, 1  ;;  %v3156_v16 = vpop.f32.mrb[255].mxu1  ;;  %v4025_v60 = vshll.u32 %v3962_v9, 16 }
 0x319   : > { %v3614_v46 = vadd.f32 %v10655_v37, %v3553_v3  ;;  %v3554_v43 = vadd.f32 %v3372_v41, %v10272_v32 }
 0x31a   : > { %v10737_v61 = vsel %vm888_vm2, %v4269_v31, %v4270_v14  ;;  %v4027_v40 = vrot.slane %v4025_v60, 1 }
 0x31b   : > { %12100 = vst [vmem:[#allocation53_spill] sm:$0xff] %v10737_v61  ;;  %v3668_v30 = vmax.f32 %v3614_v46, 0.0  ;;  %v3615_v52 = vadd.f32 %v10655_v37, %v3554_v43  ;;  %8094 = vmatmul.mubr.bf16.vlgmr.msra.gmra.mrb[44].mxu0 %v10737_v61 }
 0x31c   : > { %v3376_v47 = vpop.f32.mrb[240].mxu0  ;;  %v10744_v9 = vsel %vm547_vm1, %v4023_v53, %v4027_v40  ;;  %7434 = vmatpush3.bf16.msra.mxu0 %v8542_v24  ;;  %v8543_v53 = vld [vmem:[%s11738_s3 + $0x48] sm:$0xff]  }
 0x31d   : > { %v3963_v12 = vpack.c.bf16 %v3668_v30, %v3912_v57  ;;  %v10746_v32 = vpack.c.bf16 %v3668_v30, %v3667_v35  ;;  %v3669_v0 = vmax.f32 %v3615_v52, 0.0  ;;  %v10748_v31 = vpop.f32.mrb[0].mxu1  ;;  %v3377_v25 = vadd.f32 %v3376_v47, %v10660_v36  ;;  %v7995_v60 = vpop.f32.mrb[241].mxu0  ;;  %4616 = vmatprep.mubr.bf16.mxu1 %v10744_v9  ;;  %7435 = vmatprep.subr.bf16.mxu0 %v8543_v53 }
 0x31e   : > { %v3161_v3 = vpop.f32.mrb[1].mxu1  ;;  %v3379_v41 = vpop.f32.mrb[242].mxu0  ;;  %6714 = vmatmul.mubr.msk.bf16.gmra.mrb[96].mxu1 %vm10702_vm6, %v10709_v26 }
 0x31f   : > { %v3914_v15 = vsel %vm3848_vm4, %v3669_v0, 0.0  ;;  %v3555_v14 = vadd.f32 %v3377_v25, %v10280_v28  ;;  %v10761_v35 = vpop.f32.mrb[2].mxu1  ;;  %v3380_v36 = vadd.f32 %v3379_v41, %v10664_v7  ;;  %v7996_v16 = vpop.f32.mrb[243].mxu0  ;;  %v4032_v43 = vshll.u32 %v3963_v12, 16 }
 0x320   : > { %v3964_v1 = vpack.c.bf16 %v3914_v15, %v3914_v15  ;;  %v3164_v46 = vpop.f32.mrb[3].mxu1  ;;  %v4272_v52 = vrot.slane %v3963_v12, 1  ;;  %v4030_v28 = vshrl.u32 %v3963_v12, 16 }
 0x321   : > { %v3616_v40 = vadd.f32 %v10655_v37, %v3555_v14  ;;  %v3556_v30 = vadd.f32 %v3380_v36, %v10283_v29  ;;  %v4034_v47 = vrot.slane %v4032_v43, 1 }
 0x322   : > { %v4273_v57 = vrot.slane %v3964_v1, 1  ;;  %v4037_v0 = vshll.u32 %v3964_v1, 16 }
 0x323   : > { %v3670_v7 = vmax.f32 %v3616_v40, 0.0  ;;  %v3617_v25 = vadd.f32 %v10655_v37, %v3556_v30  ;;  %v4035_v3 = vor.u32 %v4034_v47, %v4030_v28 }
 0x324   : > { %v3384_v60 = vpop.f32.mrb[244].mxu0  ;;  %v10771_v24 = vsel %vm888_vm2, %v4272_v52, %v4273_v57  ;;  %v4039_v41 = vrot.slane %v4037_v0, 1 }
 0x325   : > { %12101 = vst [vmem:[#allocation52_spill] sm:$0xff] %v10771_v24  ;;  %v3915_v15 = vsel %vm3789_vm3, %v3670_v7, 0.0  ;;  %v3671_v14 = vmax.f32 %v3617_v25, 0.0  ;;  %v10775_v29 = vpop.f32.mrb[4].mxu1  ;;  %v3385_v12 = vadd.f32 %v3384_v60, %v10679_v38  ;;  %v7999_v36 = vpop.f32.mrb[245].mxu0  ;;  %8097 = vmatprep.mubr.bf16.mxu0 %v10771_v24 }
 0x326   : > { %v3169_v16 = vpop.f32.mrb[5].mxu1  ;;  %v3387_v1 = vpop.f32.mrb[246].mxu0  ;;  %v10780_v46 = vsel %vm547_vm1, %v4035_v3, %v4039_v41 }
 0x327   : > { %v3965_v43 = vpack.c.bf16 %v3671_v14, %v3915_v15  ;;  %v10782_v53 = vpack.c.bf16 %v3671_v14, %v3670_v7  ;;  %v3557_v40 = vadd.f32 %v3385_v12, %v10291_v10  ;;  %v10785_v30 = vpop.f32.mrb[6].mxu1  ;;  %v3388_v52 = vadd.f32 %v3387_v1, %v10685_v51  ;;  %4624 = vmatprep.mubr.bf16.mxu1 %v10780_v46  ;;  %v8000_v38 = vpop.f32.mrb[247].mxu0 }
 0x328   : > { %v3172_v57 = vpop.f32.mrb[7].mxu1  ;;  %6717 = vmatmul.mubr.msk.bf16.gmra.mrb[100].mxu1 %vm10702_vm6, %v10746_v32 }
 0x329   : > { %v3618_v28 = vadd.f32 %v10655_v37, %v3557_v40  ;;  %v3558_v47 = vadd.f32 %v3388_v52, %v10294_v59  ;;  %v4044_v0 = vshll.u32 %v3965_v43, 16  ;;  %v8544_v59 = vld [vmem:[%s11738_s3 + $0x8] sm:$0xff]   ;;  %v4275_v16 = vrot.slane %v3965_v43, 1 }
 0x32a   : > { %7436 = vmatpush3.bf16.msra.mxu0 %v8544_v59 }
 0x32b   : > { %v3672_v7 = vmax.f32 %v3618_v28, 0.0  ;;  %v3619_v10 = vadd.f32 %v10655_v37, %v3558_v47  ;;  %v4046_v36 = vrot.slane %v4044_v0, 1  ;;  %v4042_v47 = vshrl.u32 %v3965_v43, 16 }
 0x32c   : > { %v3392_v25 = vpop.f32.mrb[248].mxu0 }
 0x32d   : > { %v3917_v51 = vsel %vm3848_vm4, %v3672_v7, 0.0  ;;  %v10797_v60 = vpop.f32.mrb[8].mxu1  ;;  %v3393_v3 = vadd.f32 %v3392_v25, %v10696_v22  ;;  %v8003_v41 = vpop.f32.mrb[249].mxu0  ;;  %v3673_v28 = vmax.f32 %v3619_v10, 0.0 }
 0x32e   : > { %v3966_v15 = vpack.c.bf16 %v3917_v51, %v3917_v51  ;;  %v3177_v14 = vpop.f32.mrb[9].mxu1  ;;  %v3395_v12 = vpop.f32.mrb[250].mxu0  ;;  %v4047_v41 = vor.u32 %v4046_v36, %v4042_v47 }
 0x32f   : > { %v3559_v1 = vadd.f32 %v3393_v3, %v10302_v13  ;;  %v10804_v40 = vpop.f32.mrb[10].mxu1  ;;  %v3396_v52 = vadd.f32 %v3395_v12, %v10712_v17  ;;  %v8004_v38 = vpop.f32.mrb[251].mxu0  ;;  %v8545_v17 = vld [vmem:[%s11738_s3 + $0x50] sm:$0xff]   ;;  %v3918_v43 = vsel %vm3789_vm3, %v3673_v28, 0.0 }
 0x330   : > { %v4276_v57 = vrot.slane %v3966_v15, 1  ;;  %v3180_v22 = vpop.f32.mrb[11].mxu1  ;;  %v4049_v7 = vshll.u32 %v3966_v15, 16  ;;  %7437 = vmatprep.subr.bf16.mxu0 %v8545_v17 }
 0x331   : > { %v3620_v0 = vadd.f32 %v10655_v37, %v3559_v1  ;;  %v3560_v25 = vadd.f32 %v3396_v52, %v10307_v2 }
 0x332   : > { %v10810_v51 = vsel %vm888_vm2, %v4275_v16, %v4276_v57  ;;  %v4051_v13 = vrot.slane %v4049_v7, 1 }
 0x333   : > { %12102 = vst [vmem:[#allocation54_spill] sm:$0xff] %v10810_v51  ;;  %v3674_v3 = vmax.f32 %v3620_v0, 0.0  ;;  %v3621_v10 = vadd.f32 %v10655_v37, %v3560_v25  ;;  %8098 = vmatmul.mubr.bf16.gmra.mrb[48].mxu0 %v10810_v51 }
 0x334   : > { %v3400_v15 = vpop.f32.mrb[252].mxu0  ;;  %v10820_v2 = vsel %vm547_vm1, %v4047_v41, %v4051_v13 }
 0x335   : > { %v3967_v14 = vpack.c.bf16 %v3674_v3, %v3918_v43  ;;  %v10822_v12 = vpack.c.bf16 %v3674_v3, %v3673_v28  ;;  %v3675_v36 = vmax.f32 %v3621_v10, 0.0  ;;  %v10824_v59 = vpop.f32.mrb[12].mxu1  ;;  %v3401_v16 = vadd.f32 %v3400_v15, %v10724_v6  ;;  %v8007_v1 = vpop.f32.mrb[253].mxu0  ;;  %4632 = vmatprep.mubr.bf16.mxu1 %v10820_v2  ;;  %v8546_v3 = vld [vmem:[%s11738_s3 + $0x10] sm:$0xff]  }
 0x336   : > { %v3185_v52 = vpop.f32.mrb[13].mxu1  ;;  %v3403_v38 = vpop.f32.mrb[254].mxu0  ;;  %6720 = vmatmul.mubr.msk.bf16.gmra.mrb[104].mxu1 %vm10702_vm6, %v10782_v53  ;;  %7438 = vmatpush3.bf16.msra.mxu0 %v8546_v3 }
 0x337   : > { %v3920_v57 = vsel %vm3848_vm4, %v3675_v36, 0.0  ;;  %v3561_v28 = vadd.f32 %v3401_v16, %v10317_v56  ;;  %v10834_v22 = vpop.f32.mrb[14].mxu1  ;;  %v3404_v47 = vadd.f32 %v3403_v38, %v10728_v44  ;;  %v8008_v7 = vpop.f32.mrb[255].mxu0  ;;  %v4056_v25 = vshll.u32 %v3967_v14, 16  ;;  %v8547_v56 = vld [vmem:[%s11738_s3 + $0x58] sm:$0xff]  }
 0x338   : > { %v3968_v6 = vpack.c.bf16 %v3920_v57, %v3920_v57  ;;  %v3188_v0 = vpop.f32.mrb[15].mxu1  ;;  %v4278_v17 = vrot.slane %v3967_v14, 1  ;;  %v4054_v43 = vshrl.u32 %v3967_v14, 16  ;;  %7439 = vmatprep.subr.bf16.mxu0 %v8547_v56 }
 0x339   : > { %v3622_v41 = vadd.f32 %v10655_v37, %v3561_v28  ;;  %v3562_v13 = vadd.f32 %v3404_v47, %v10322_v4  ;;  %v4058_v44 = vrot.slane %v4056_v25, 1 }
 0x33a   : > { %v4279_v10 = vrot.slane %v3968_v6, 1  ;;  %v4061_v15 = vshll.u32 %v3968_v6, 16 }
 0x33b   : > { %v3676_v36 = vmax.f32 %v3622_v41, 0.0  ;;  %v3623_v16 = vadd.f32 %v10655_v37, %v3562_v13  ;;  %v4059_v52 = vor.u32 %v4058_v44, %v4054_v43  ;;  %v8548_v41 = vld [vmem:[%s11738_s3 + $0x18] sm:$0xff]   ;;  %v8551_v13 = vld [vmem:[%s11738_s3 + $0x1c0] sm:$0xff]  }
 0x33c   : > { %v3408_v1 = vpop.f32.mrb[0].mxu0  ;;  %v10847_v4 = vsel %vm888_vm2, %v4278_v17, %v4279_v10  ;;  %v4063_v38 = vrot.slane %v4061_v15, 1  ;;  %v8552_v44 = vld [vmem:[%s11738_s3 + $0x180] sm:$0xff]   ;;  %7440 = vmatpush3.bf16.msra.mxu0 %v8548_v41  ;;  %7569 = vmatprep.subr.bf16.mxu1 %v8551_v13 }
 0x33d   : > { %12103 = vst [vmem:[#allocation55_spill] sm:$0xff] %v10847_v4  ;;  %v3921_v57 = vsel %vm3789_vm3, %v3676_v36, 0.0  ;;  %v3677_v28 = vmax.f32 %v3623_v16, 0.0  ;;  %v10851_v47 = vpop.f32.mrb[16].mxu1  ;;  %v3409_v14 = vadd.f32 %v3408_v1, %v10748_v31  ;;  %v8011_v7 = vpop.f32.mrb[1].mxu0  ;;  %8101 = vmatprep.mubr.bf16.mxu0 %v10847_v4  ;;  %7570 = vmatpush3.bf16.msra.mxu1 %v8552_v44  ;;  %v8553_v1 = vld [vmem:[%s11738_s3 + $0x1c8] sm:$0xff]  }
 0x33e   : > { %v3193_v6 = vpop.f32.mrb[17].mxu1  ;;  %v3411_v0 = vpop.f32.mrb[2].mxu0  ;;  %v10856_v25 = vsel %vm547_vm1, %v4059_v52, %v4063_v38  ;;  %v8555_v38 = vld [vmem:[%s11738_s3 + $0x188] sm:$0xff]   ;;  %7571 = vmatprep.subr.bf16.mxu1 %v8553_v1 }
 0x33f   : > { %v3969_v17 = vpack.c.bf16 %v3677_v28, %v3921_v57  ;;  %v10864_v3 = vpack.c.bf16 %v3677_v28, %v3676_v36  ;;  %v3563_v31 = vadd.f32 %v3409_v14, %v10332_v49  ;;  %v10867_v56 = vpop.f32.mrb[18].mxu1  ;;  %v3412_v10 = vadd.f32 %v3411_v0, %v10761_v35  ;;  %4640 = vmatprep.mubr.bf16.mxu1 %v10856_v25  ;;  %v8012_v43 = vpop.f32.mrb[3].mxu0  ;;  %v8549_v35 = vld [vmem:[%s11738_s3 + $0x60] sm:$0xff]  }
 0x340   : > { %v3196_v15 = vpop.f32.mrb[19].mxu1  ;;  %6723 = vmatmul.mubr.msk.bf16.gmra.mrb[108].mxu1 %vm10702_vm6, %v10822_v12  ;;  %7441 = vmatprep.subr.bf16.mxu0 %v8549_v35  ;;  %v8557_v43 = vld [vmem:[%s11738_s3 + $0x1d0] sm:$0xff]  }
 0x341   : > { %v3624_v36 = vadd.f32 %v10655_v37, %v3563_v31  ;;  %v3564_v49 = vadd.f32 %v3412_v10, %v10337_v45  ;;  %v4068_v16 = vshll.u32 %v3969_v17, 16  ;;  %v8550_v10 = vld [vmem:[%s11738_s3 + $0x20] sm:$0xff]   ;;  %7572 = vmatpush3.bf16.msra.mxu1 %v8555_v38  ;;  %v4281_v44 = vrot.slane %v3969_v17, 1  ;;  %v8558_v35 = vld [vmem:[%s11738_s3 + $0x190] sm:$0xff]  }
 0x342   : > { %v4066_v38 = vshrl.u32 %v3969_v17, 16  ;;  %7442 = vmatpush3.bf16.msra.mxu0 %v8550_v10  ;;  %7573 = vmatprep.subr.bf16.mxu1 %v8557_v43  ;;  %v8559_v17 = vld [vmem:[%s11738_s3 + $0x1d8] sm:$0xff]  }
 0x343   : > { %v3678_v52 = vmax.f32 %v3624_v36, 0.0  ;;  %v3625_v57 = vadd.f32 %v10655_v37, %v3564_v49  ;;  %v4070_v31 = vrot.slane %v4068_v16, 1 }
 0x344   : > { %v3416_v45 = vpop.f32.mrb[4].mxu0 }
 0x345   : > { %v3923_v28 = vsel %vm3848_vm4, %v3678_v52, 0.0  ;;  %v10891_v14 = vpop.f32.mrb[20].mxu1  ;;  %v3417_v7 = vadd.f32 %v3416_v45, %v10775_v29  ;;  %v8015_v6 = vpop.f32.mrb[5].mxu0  ;;  %v3679_v1 = vmax.f32 %v3625_v57, 0.0  ;;  %7574 = vmatpush3.bf16.msra.mxu1 %v8558_v35 }
 0x346   : > { %v3970_v0 = vpack.c.bf16 %v3923_v28, %v3923_v28  ;;  %v3201_v41 = vpop.f32.mrb[21].mxu1  ;;  %v3419_v13 = vpop.f32.mrb[6].mxu0  ;;  %7575 = vmatprep.subr.bf16.mxu1 %v8559_v17 }
 0x347   : > { %v3565_v15 = vadd.f32 %v3417_v7, %v10347_v42  ;;  %v10901_v36 = vpop.f32.mrb[22].mxu1  ;;  %v3420_v29 = vadd.f32 %v3419_v13, %v10785_v30  ;;  %v8016_v49 = vpop.f32.mrb[7].mxu0  ;;  %v4071_v30 = vor.u32 %v4070_v31, %v4066_v38  ;;  %v8554_v41 = vld [vmem:[%s11738_s3 + $0x68] sm:$0xff]   ;;  %v3924_v13 = vsel %vm3789_vm3, %v3679_v1, 0.0  ;;  %v8563_v38 = vld [vmem:[%s11738_s3 + $0x1e0] sm:$0xff]  }
 0x348   : > { %v4282_v16 = vrot.slane %v3970_v0, 1  ;;  %v3204_v52 = vpop.f32.mrb[23].mxu1  ;;  %v4073_v45 = vshll.u32 %v3970_v0, 16  ;;  %7443 = vmatprep.subr.bf16.mxu0 %v8554_v41 }
 0x349   : > { %v3626_v28 = vadd.f32 %v10655_v37, %v3565_v15  ;;  %v3566_v42 = vadd.f32 %v3420_v29, %v10352_v55  ;;  %v8561_v55 = vld [vmem:[%s11738_s3 + $0x198] sm:$0xff]  }
 0x34a   : > { %v10910_v7 = vsel %vm888_vm2, %v4281_v44, %v4282_v16  ;;  %v4075_v6 = vrot.slane %v4073_v45, 1  ;;  %7576 = vmatpush3.bf16.msra.mxu1 %v8561_v55  ;;  %v8565_v55 = vld [vmem:[%s11738_s3 + $0x1e8] sm:$0xff]  }
 0x34b   : > { %12104 = vst [vmem:[#allocation59_spill] sm:$0xff] %v10910_v7  ;;  %v3680_v57 = vmax.f32 %v3626_v28, 0.0  ;;  %v3627_v0 = vadd.f32 %v10655_v37, %v3566_v42  ;;  %8102 = vmatmul.mubr.bf16.gmra.mrb[52].mxu0 %v10910_v7  ;;  %7577 = vmatprep.subr.bf16.mxu1 %v8563_v38 }
 0x34c   : > { %v3424_v31 = vpop.f32.mrb[8].mxu0  ;;  %v10926_v10 = vsel %vm547_vm1, %v4071_v30, %v4075_v6  ;;  %v8564_v30 = vld [vmem:[%s11738_s3 + $0x1a0] sm:$0xff]  }
 0x34d   : > { %v3971_v43 = vpack.c.bf16 %v3680_v57, %v3924_v13  ;;  %v10928_v44 = vpack.c.bf16 %v3680_v57, %v3679_v1  ;;  %v3681_v15 = vmax.f32 %v3627_v0, 0.0  ;;  %v10930_v29 = vpop.f32.mrb[24].mxu1  ;;  %v3425_v49 = vadd.f32 %v3424_v31, %v10797_v60  ;;  %v8019_v35 = vpop.f32.mrb[9].mxu0  ;;  %4648 = vmatprep.mubr.bf16.mxu1 %v10926_v10  ;;  %v8556_v57 = vld [vmem:[%s11738_s3 + $0x28] sm:$0xff]   ;;  %v12105_v0 = vld [vmem:[#allocation26_spill] sm:$0xff] }
 0x34e   : > { %v3209_v16 = vpop.f32.mrb[25].mxu1  ;;  %v3427_v52 = vpop.f32.mrb[10].mxu0  ;;  %6726 = vmatmul.mubr.msk.bf16.gmra.mrb[112].mxu1 %vm10702_vm6, %v10864_v3  ;;  %7444 = vmatpush3.bf16.msra.mxu0 %v8556_v57 }
 0x34f   : > { %v3926_v1 = vsel %vm3848_vm4, %v3681_v15, 0.0  ;;  %v3567_v45 = vadd.f32 %v3425_v49, %v10369_v50  ;;  %v10943_v28 = vpop.f32.mrb[26].mxu1  ;;  %v3428_v60 = vadd.f32 %v3427_v52, %v10804_v40  ;;  %v8020_v42 = vpop.f32.mrb[11].mxu0  ;;  %v4080_v17 = vshll.u32 %v3971_v43, 16  ;;  %v8560_v40 = vld [vmem:[%s11738_s3 + $0x70] sm:$0xff]   ;;  %7578 = vmatpush3.bf16.msra.mxu1 %v8564_v30 }
 0x350   : > { %v3972_v6 = vpack.c.bf16 %v3926_v1, %v3926_v1  ;;  %v3212_v41 = vpop.f32.mrb[27].mxu1  ;;  %v4284_v31 = vrot.slane %v3971_v43, 1  ;;  %v4078_v49 = vshrl.u32 %v3971_v43, 16  ;;  %v8562_v52 = vld [vmem:[%s11738_s3 + $0x30] sm:$0xff]   ;;  %7445 = vmatprep.subr.bf16.mxu0 %v8560_v40  ;;  %7579 = vmatprep.subr.bf16.mxu1 %v8565_v55  ;;  %v8566_v43 = vld [vmem:[%s11738_s3 + $0x78] sm:$0xff]  }
 0x351   : > { %v3628_v50 = vadd.f32 %v10655_v37, %v3567_v45  ;;  %v3568_v13 = vadd.f32 %v3428_v60, %v12105_v0  ;;  %v4082_v35 = vrot.slane %v4080_v17, 1  ;;  %v8567_v0 = vld [vmem:[%s11738_s3 + $0x1a8] sm:$0xff]   ;;  %v8568_v55 = vld [vmem:[%s11738_s3 + $0x38] sm:$0xff]  }
 0x352   : > { %v4285_v15 = vrot.slane %v3972_v6, 1  ;;  %v4085_v16 = vshll.u32 %v3972_v6, 16  ;;  %7446 = vmatpush3.bf16.msra.mxu0 %v8562_v52 }
 0x353   : > { %v3682_v38 = vmax.f32 %v3628_v50, 0.0  ;;  %v3629_v1 = vadd.f32 %v10655_v37, %v3568_v13  ;;  %v4083_v42 = vor.u32 %v4082_v35, %v4078_v49  ;;  %7447 = vmatprep.subr.bf16.mxu0 %v8566_v43  ;;  %7580 = vmatpush3.bf16.msra.mxu1 %v8567_v0 }
 0x354   : > { %v3432_v45 = vpop.f32.mrb[12].mxu0  ;;  %v10965_v60 = vsel %vm888_vm2, %v4284_v31, %v4285_v15  ;;  %v4087_v41 = vrot.slane %v4085_v16, 1 }
 0x355   : > { %12106 = vst [vmem:[#allocation56_spill] sm:$0xff] %v10965_v60  ;;  %v3927_v6 = vsel %vm3789_vm3, %v3682_v38, 0.0  ;;  %v3683_v17 = vmax.f32 %v3629_v1, 0.0  ;;  %v10972_v57 = vpop.f32.mrb[28].mxu1  ;;  %v3433_v50 = vadd.f32 %v3432_v45, %v10824_v59  ;;  %v8023_v30 = vpop.f32.mrb[13].mxu0  ;;  %8105 = vmatprep.mubr.bf16.mxu0 %v10965_v60  ;;  %v8569_v59 = vld [vmem:[%s11738_s3 + $0x1f0] sm:$0xff]  }
 0x356   : > { %v3217_v13 = vpop.f32.mrb[29].mxu1  ;;  %v3435_v31 = vpop.f32.mrb[14].mxu0  ;;  %v10980_v40 = vsel %vm547_vm1, %v4083_v42, %v4087_v41  ;;  %7448 = vmatpush3.bf16.msra.mxu0 %v8568_v55  ;;  %7581 = vmatprep.subr.bf16.mxu1 %v8569_v59 }
 0x357   : > { %v3973_v15 = vpack.c.bf16 %v3683_v17, %v3927_v6  ;;  %v10988_v49 = vpack.c.bf16 %v3683_v17, %v3682_v38  ;;  %v3569_v35 = vadd.f32 %v3433_v50, %v10386_v62  ;;  %v10991_v16 = vpop.f32.mrb[30].mxu1  ;;  %v3436_v1 = vadd.f32 %v3435_v31, %v10834_v22  ;;  %4656 = vmatprep.mubr.bf16.mxu1 %v10980_v40  ;;  %v8024_v52 = vpop.f32.mrb[15].mxu0  ;;  %v8570_v62 = vld [vmem:[%s11738_s3 + $0x1b0] sm:$0xff]   ;;  %v8571_v22 = vld [vmem:[%s11738_s3 + $0x1f8] sm:$0xff]  }
 0x358   : > { %v3220_v45 = vpop.f32.mrb[31].mxu1  ;;  %6729 = vmatmul.mubr.msk.bf16.gmra.mrb[116].mxu1 %vm10702_vm6, %v10928_v44  ;;  %v8573_v31 = vld [vmem:[%s11738_s3 + $0x1b8] sm:$0xff]  }
 0x359   : > { %v3630_v42 = vadd.f32 %v10655_v37, %v3569_v35  ;;  %v3570_v38 = vadd.f32 %v3436_v1, %v10395_v58  ;;  %v4092_v41 = vshll.u32 %v3973_v15, 16  ;;  %v11010_v58 = vld [vmem:[%s11738_s3 + $0x80] sm:$0xff]   ;;  %7582 = vmatpush3.bf16.msra.mxu1 %v8570_v62  ;;  %v4287_v52 = vrot.slane %v3973_v15, 1  ;;  %v12107_v45 = vld [vmem:[#allocation30_spill] sm:$0xff] }
 0x35a   : > { %7583 = vmatprep.subr.bf16.mxu1 %v8571_v22  ;;  %8125 = vmatprep.subr.bf16.mxu0 %v11010_v58  ;;  %v4090_v60 = vshrl.u32 %v3973_v15, 16 }
 0x35b   : > { %v3684_v6 = vmax.f32 %v3630_v42, 0.0  ;;  %v3631_v17 = vadd.f32 %v10655_v37, %v3570_v38  ;;  %v4094_v1 = vrot.slane %v4092_v41, 1 }
 0x35c   : > { %v3440_v43 = vpop.f32.mrb[16].mxu0 }
 0x35d   : > { %v3929_v50 = vsel %vm3848_vm4, %v3684_v6, 0.0  ;;  %v11014_v30 = vpop.f32.mrb[32].mxu1  ;;  %v3441_v0 = vadd.f32 %v3440_v43, %v10851_v47  ;;  %v8027_v13 = vpop.f32.mrb[17].mxu0  ;;  %v3685_v43 = vmax.f32 %v3631_v17, 0.0  ;;  %7584 = vmatpush3.bf16.msra.mxu1 %v8573_v31  ;;  %v4095_v4 = vor.u32 %v4094_v1, %v4090_v60 }
 0x35e   : > { %v3974_v55 = vpack.c.bf16 %v3929_v50, %v3929_v50  ;;  %v3225_v59 = vpop.f32.mrb[33].mxu1  ;;  %v3443_v35 = vpop.f32.mrb[18].mxu0 }
 0x35f   : > { %v3571_v42 = vadd.f32 %v3441_v0, %v12107_v45  ;;  %v11022_v38 = vpop.f32.mrb[34].mxu1  ;;  %v3444_v47 = vadd.f32 %v3443_v35, %v10867_v56  ;;  %v8028_v6 = vpop.f32.mrb[19].mxu0  ;;  %v12108_v59 = vld [vmem:[#allocation24_spill] sm:$0xff]  ;;  %v3930_v56 = vsel %vm3789_vm3, %v3685_v43, 0.0 }
 0x360   : > { %v4288_v62 = vrot.slane %v3974_v55, 1  ;;  %v3228_v13 = vpop.f32.mrb[35].mxu1  ;;  %v4097_v7 = vshll.u32 %v3974_v55, 16 }
 0x361   : > { %v3632_v50 = vadd.f32 %v10655_v37, %v3571_v42  ;;  %v3572_v41 = vadd.f32 %v3444_v47, %v12108_v59  ;;  %v12110_v47 = vld [vmem:[#allocation29_spill] sm:$0xff] }
 0x362   : > { %v11028_v22 = vsel %vm888_vm2, %v4287_v52, %v4288_v62  ;;  %v4099_v0 = vrot.slane %v4097_v7, 1 }
 0x363   : > { %12109 = vst [vmem:[#allocation57_spill] sm:$0xff] %v11028_v22  ;;  %v3686_v45 = vmax.f32 %v3632_v50, 0.0  ;;  %v3633_v51 = vadd.f32 %v10655_v37, %v3572_v41  ;;  %8106 = vmatmul.mubr.bf16.gmra.mrb[56].mxu0 %v11028_v22  ;;  %v12111_v41 = vld [vmem:[#allocation34_spill] sm:$0xff] }
 0x364   : > { %v3448_v15 = vpop.f32.mrb[20].mxu0  ;;  %v11035_v17 = vsel %vm547_vm1, %v4095_v4, %v4099_v0 }
 0x365   : > { %v3975_v55 = vpack.c.bf16 %v3686_v45, %v3930_v56  ;;  %v11037_v35 = vpack.c.bf16 %v3686_v45, %v3685_v43  ;;  %v3687_v31 = vmax.f32 %v3633_v51, 0.0  ;;  %v11039_v52 = vpop.f32.mrb[36].mxu1  ;;  %v3449_v7 = vadd.f32 %v3448_v15, %v10891_v14  ;;  %v8031_v60 = vpop.f32.mrb[21].mxu0  ;;  %4664 = vmatprep.mubr.bf16.mxu1 %v11035_v17 }
 0x366   : > { %v3233_v1 = vpop.f32.mrb[37].mxu1  ;;  %v3451_v42 = vpop.f32.mrb[22].mxu0  ;;  %6732 = vmatmul.mubr.msk.bf16.gmra.mrb[120].mxu1 %vm10702_vm6, %v10988_v49 }
 0x367   : > { %v3932_v4 = vsel %vm3848_vm4, %v3687_v31, 0.0  ;;  %v3573_v6 = vadd.f32 %v3449_v7, %v12110_v47  ;;  %v11049_v62 = vpop.f32.mrb[38].mxu1  ;;  %v3452_v51 = vadd.f32 %v3451_v42, %v10901_v36  ;;  %v8032_v43 = vpop.f32.mrb[23].mxu0  ;;  %v4104_v50 = vshll.u32 %v3975_v55, 16 }
 0x368   : > { %v3976_v14 = vpack.c.bf16 %v3932_v4, %v3932_v4  ;;  %v3236_v13 = vpop.f32.mrb[39].mxu1  ;;  %v4290_v45 = vrot.slane %v3975_v55, 1  ;;  %v4102_v15 = vshrl.u32 %v3975_v55, 16 }
 0x369   : > { %v3634_v59 = vadd.f32 %v10655_v37, %v3573_v6  ;;  %v3574_v0 = vadd.f32 %v3452_v51, %v12111_v41  ;;  %v4106_v60 = vrot.slane %v4104_v50, 1 }
 0x36a   : > { %v4291_v56 = vrot.slane %v3976_v14, 1  ;;  %v4109_v1 = vshll.u32 %v3976_v14, 16 }
 0x36b   : > { %v3688_v31 = vmax.f32 %v3634_v59, 0.0  ;;  %v3635_v7 = vadd.f32 %v10655_v37, %v3574_v0  ;;  %v4107_v36 = vor.u32 %v4106_v60, %v4102_v15 }
 0x36c   : > { %v3456_v47 = vpop.f32.mrb[24].mxu0  ;;  %v11056_v22 = vsel %vm888_vm2, %v4290_v45, %v4291_v56  ;;  %v4111_v42 = vrot.slane %v4109_v1, 1  ;;  %v12113_v1 = vld [vmem:[#allocation38_spill] sm:$0xff] }
 0x36d   : > { %12112 = vst [vmem:[#allocation16_spill] sm:$0xff] %v11056_v22  ;;  %v3933_v4 = vsel %vm3789_vm3, %v3688_v31, 0.0  ;;  %v3689_v6 = vmax.f32 %v3635_v7, 0.0  ;;  %v11060_v43 = vpop.f32.mrb[40].mxu1  ;;  %v3457_v51 = vadd.f32 %v3456_v47, %v10930_v29  ;;  %v8035_v55 = vpop.f32.mrb[25].mxu0  ;;  %8109 = vmatprep.mubr.bf16.mxu0 %v11056_v22 }
 0x36e   : > { %v3241_v14 = vpop.f32.mrb[41].mxu1  ;;  %v3459_v13 = vpop.f32.mrb[26].mxu0  ;;  %v11065_v50 = vsel %vm547_vm1, %v4107_v36, %v4111_v42 }
 0x36f   : > { %v3977_v59 = vpack.c.bf16 %v3689_v6, %v3933_v4  ;;  %v11067_v41 = vpack.c.bf16 %v3689_v6, %v3688_v31  ;;  %v3575_v0 = vadd.f32 %v3457_v51, %v10455_v18  ;;  %v11070_v45 = vpop.f32.mrb[42].mxu1  ;;  %v3460_v56 = vadd.f32 %v3459_v13, %v10943_v28  ;;  %4672 = vmatprep.mubr.bf16.mxu1 %v11065_v50  ;;  %v8036_v29 = vpop.f32.mrb[27].mxu0 }
 0x370   : > { %v3244_v15 = vpop.f32.mrb[43].mxu1  ;;  %6735 = vmatmul.mubr.msk.bf16.gmra.mrb[124].mxu1 %vm10702_vm6, %v11037_v35  ;;  %v12114_v29 = vld [vmem:[#allocation32_spill] sm:$0xff] }
 0x371   : > { %v3636_v60 = vadd.f32 %v10655_v37, %v3575_v0  ;;  %v3576_v7 = vadd.f32 %v3460_v56, %v12113_v1  ;;  %v4116_v31 = vshll.u32 %v3977_v59, 16  ;;  %v4293_v0 = vrot.slane %v3977_v59, 1 }
 0x372   : > { %v4114_v24 = vshrl.u32 %v3977_v59, 16 }
 0x373   : > { %v3690_v47 = vmax.f32 %v3636_v60, 0.0  ;;  %v3637_v18 = vadd.f32 %v10655_v37, %v3576_v7  ;;  %v4118_v13 = vrot.slane %v4116_v31, 1 }
 0x374   : > { %v3464_v36 = vpop.f32.mrb[28].mxu0 }
 0x375   : > { %v3935_v28 = vsel %vm3848_vm4, %v3690_v47, 0.0  ;;  %v11082_v42 = vpop.f32.mrb[44].mxu1  ;;  %v3465_v4 = vadd.f32 %v3464_v36, %v10972_v57  ;;  %v8039_v6 = vpop.f32.mrb[29].mxu0  ;;  %v3691_v22 = vmax.f32 %v3637_v18, 0.0  ;;  %v12115_v36 = vld [vmem:[#allocation37_spill] sm:$0xff]  ;;  %v4119_v31 = vor.u32 %v4118_v13, %v4114_v24 }
 0x376   : > { %v3978_v51 = vpack.c.bf16 %v3935_v28, %v3935_v28  ;;  %v3249_v55 = vpop.f32.mrb[45].mxu1  ;;  %v3467_v14 = vpop.f32.mrb[30].mxu0 }
 0x377   : > { %v3577_v56 = vadd.f32 %v3465_v4, %v12114_v29  ;;  %v11086_v15 = vpop.f32.mrb[46].mxu1  ;;  %v3468_v60 = vadd.f32 %v3467_v14, %v10991_v16  ;;  %v8040_v1 = vpop.f32.mrb[31].mxu0  ;;  %v3936_v16 = vsel %vm3789_vm3, %v3691_v22, 0.0 }
 0x378   : > { %v4294_v7 = vrot.slane %v3978_v51, 1  ;;  %v3252_v47 = vpop.f32.mrb[47].mxu1  ;;  %v4121_v61 = vshll.u32 %v3978_v51, 16  ;;  %v12118_v1 = vld [vmem:[#allocation8_spill] sm:$0xff] }
 0x379   : > { %v3638_v57 = vadd.f32 %v10655_v37, %v3577_v56  ;;  %v3578_v28 = vadd.f32 %v3468_v60, %v12115_v36 }
 0x37a   : > { %v11092_v6 = vsel %vm888_vm2, %v4293_v0, %v4294_v7  ;;  %v4123_v55 = vrot.slane %v4121_v61, 1 }
 0x37b   : > { %12116 = vst [vmem:[#allocation58_spill] sm:$0xff] %v11092_v6  ;;  %v3692_v4 = vmax.f32 %v3638_v57, 0.0  ;;  %v3639_v29 = vadd.f32 %v10655_v37, %v3578_v28  ;;  %8110 = vmatmul.mubr.bf16.gmra.mrb[60].mxu0 %v11092_v6 }
 0x37c   : > { %v3472_v18 = vpop.f32.mrb[32].mxu0  ;;  %v11099_v59 = vsel %vm547_vm1, %v4119_v31, %v4123_v55  ;;  %v11119_v31 = vld [vmem:[%s11737_s2] ss:$0 sm:$0xff] }
 0x37d   : > { %v3979_v51 = vpack.c.bf16 %v3692_v4, %v3936_v16  ;;  %v11101_v14 = vpack.c.bf16 %v3692_v4, %v3691_v22  ;;  %v3693_v56 = vmax.f32 %v3639_v29, 0.0  ;;  %v11103_v0 = vpop.f32.mrb[48].mxu1  ;;  %v3473_v61 = vadd.f32 %v3472_v18, %v11014_v30  ;;  %v8043_v24 = vpop.f32.mrb[33].mxu0  ;;  %4680 = vmatprep.mubr.bf16.mxu1 %v11099_v59  ;;  %v12119_v4 = vld [vmem:[#allocation48_spill] sm:$0xff] }
 0x37e   : > { %v3257_v37 = vpop.f32.mrb[49].mxu1  ;;  %v3475_v13 = vpop.f32.mrb[34].mxu0  ;;  %6738 = vmatmul.mubr.msk.bf16.gmra.mrb[128].mxu1 %vm10702_vm6, %v11067_v41 }
 0x37f   : > { %12117 = vst [vmem:[#allocation61_spill] sm:$0xff] %v11101_v14  ;;  %v3938_v60 = vsel %vm3848_vm4, %v3693_v56, 0.0  ;;  %v3579_v22 = vadd.f32 %v3473_v61, %v12118_v1  ;;  %v11113_v7 = vpop.f32.mrb[50].mxu1  ;;  %v3476_v47 = vadd.f32 %v3475_v13, %v11022_v38  ;;  %v8044_v57 = vpop.f32.mrb[35].mxu0  ;;  %v4128_v28 = vshll.u32 %v3979_v51, 16 }
 0x380   : > { %v3980_v30 = vpack.c.bf16 %v3938_v60, %v3938_v60  ;;  %v3260_v36 = vpop.f32.mrb[51].mxu1  ;;  %v4296_v16 = vrot.slane %v3979_v51, 1  ;;  %v4126_v56 = vshrl.u32 %v3979_v51, 16 }
 0x381   : > { %v3640_v55 = vadd.f32 %v11119_v31, %v3579_v22  ;;  %v3580_v29 = vadd.f32 %v3476_v47, %v12119_v4  ;;  %v4130_v61 = vrot.slane %v4128_v28, 1 }
 0x382   : > { %v4297_v18 = vrot.slane %v3980_v30, 1  ;;  %v4133_v24 = vshll.u32 %v3980_v30, 16 }
 0x383   : > { %v3694_v37 = vmax.f32 %v3640_v55, 0.0  ;;  %v3641_v38 = vadd.f32 %v11119_v31, %v3580_v29  ;;  %v4131_v1 = vor.u32 %v4130_v61, %v4126_v56 }
 0x384   : > { %v3480_v13 = vpop.f32.mrb[36].mxu0  ;;  %v11125_v60 = vsel %vm888_vm2, %v4296_v16, %v4297_v18  ;;  %v4135_v57 = vrot.slane %v4133_v24, 1 }
 0x385   : > { %12120 = vst [vmem:[#allocation60_spill] sm:$0xff] %v11125_v60  ;;  %v3939_v36 = vsel %vm3789_vm3, %v3694_v37, 0.0  ;;  %v3695_v22 = vmax.f32 %v3641_v38, 0.0  ;;  %v11129_v6 = vpop.f32.mrb[52].mxu1  ;;  %v3481_v47 = vadd.f32 %v3480_v13, %v11039_v52  ;;  %v8047_v51 = vpop.f32.mrb[37].mxu0  ;;  %8113 = vmatprep.mubr.bf16.mxu0 %v11125_v60 }
 0x386   : > { %v3265_v30 = vpop.f32.mrb[53].mxu1  ;;  %v3483_v28 = vpop.f32.mrb[38].mxu0  ;;  %v11134_v55 = vsel %vm547_vm1, %v4131_v1, %v4135_v57 }
 0x387   : > { %v3981_v4 = vpack.c.bf16 %v3695_v22, %v3939_v36  ;;  %v11136_v29 = vpack.c.bf16 %v3695_v22, %v3694_v37  ;;  %v3581_v16 = vadd.f32 %v3481_v47, %v10516_v34  ;;  %v11139_v18 = vpop.f32.mrb[54].mxu1  ;;  %v3484_v56 = vadd.f32 %v3483_v28, %v11049_v62  ;;  %4688 = vmatprep.mubr.bf16.mxu1 %v11134_v55  ;;  %v8048_v52 = vpop.f32.mrb[39].mxu0 }
 0x388   : > { %v3268_v61 = vpop.f32.mrb[55].mxu1  ;;  %6741 = vmatmul.mubr.msk.bf16.gmra.mrb[132].mxu1 %vm10702_vm6, %v11101_v14 }
 0x389   : > { %v3642_v24 = vadd.f32 %v11119_v31, %v3581_v16  ;;  %v3582_v38 = vadd.f32 %v3484_v56, %v10522_v48  ;;  %v4140_v37 = vshll.u32 %v3981_v4, 16  ;;  %v4299_v16 = vrot.slane %v3981_v4, 1 }
 0x38a   : > { %v4138_v60 = vshrl.u32 %v3981_v4, 16 }
 0x38b   : > { %v3696_v13 = vmax.f32 %v3642_v24, 0.0  ;;  %v3643_v34 = vadd.f32 %v11119_v31, %v3582_v38  ;;  %v4142_v28 = vrot.slane %v4140_v37, 1 }
 0x38c   : > { %v3488_v1 = vpop.f32.mrb[40].mxu0 }
 0x38d   : > { %v3941_v62 = vsel %vm3848_vm4, %v3696_v13, 0.0  ;;  %v11151_v57 = vpop.f32.mrb[56].mxu1  ;;  %v3489_v36 = vadd.f32 %v3488_v1, %v11060_v43  ;;  %v8051_v22 = vpop.f32.mrb[41].mxu0  ;;  %v3697_v38 = vmax.f32 %v3643_v34, 0.0  ;;  %v4143_v37 = vor.u32 %v4142_v28, %v4138_v60 }
 0x38e   : > { %v3982_v47 = vpack.c.bf16 %v3941_v62, %v3941_v62  ;;  %v3273_v51 = vpop.f32.mrb[57].mxu1  ;;  %v3491_v30 = vpop.f32.mrb[42].mxu0 }
 0x38f   : > { %v3583_v48 = vadd.f32 %v3489_v36, %v10533_v20  ;;  %v11155_v56 = vpop.f32.mrb[58].mxu1  ;;  %v3492_v52 = vadd.f32 %v3491_v30, %v11070_v45  ;;  %v8052_v61 = vpop.f32.mrb[43].mxu0  ;;  %v3942_v45 = vsel %vm3789_vm3, %v3697_v38, 0.0 }
 0x390   : > { %v4300_v24 = vrot.slane %v3982_v47, 1  ;;  %v3276_v13 = vpop.f32.mrb[59].mxu1  ;;  %v4145_v14 = vshll.u32 %v3982_v47, 16 }
 0x391   : > { %v3644_v43 = vadd.f32 %v11119_v31, %v3583_v48  ;;  %v3584_v1 = vadd.f32 %v3492_v52, %v10537_v23 }
 0x392   : > { %v11161_v62 = vsel %vm888_vm2, %v4299_v16, %v4300_v24  ;;  %v4147_v22 = vrot.slane %v4145_v14, 1 }
 0x393   : > { %v3698_v20 = vmax.f32 %v3644_v43, 0.0  ;;  %v3645_v36 = vadd.f32 %v11119_v31, %v3584_v1  ;;  %8114 = vmatmul.mubr.bf16.gmra.mrb[64].mxu0 %v11161_v62 }
 0x394   : > { %v11168_v4 = vsel %vm547_vm1, %v4143_v37, %v4147_v22 }
 0x395   : > { %v3983_v34 = vpack.c.bf16 %v3698_v20, %v3942_v45  ;;  %v11170_v47 = vpack.c.bf16 %v3698_v20, %v3697_v38  ;;  %v3699_v23 = vmax.f32 %v3645_v36, 0.0  ;;  %v11172_v51 = vpop.f32.mrb[60].mxu1  ;;  %4696 = vmatprep.mubr.bf16.mxu1 %v11168_v4 }
 0x396   : > { %v3281_v14 = vpop.f32.mrb[61].mxu1  ;;  %6744 = vmatmul.mubr.msk.bf16.gmra.mrb[136].mxu1 %vm10702_vm6, %v11136_v29 }
 0x397   : > { %v3944_v60 = vsel %vm3848_vm4, %v3699_v23, 0.0  ;;  %v3282_v30 = vpop.f32.mrb[62].mxu1  ;;  %v4152_v28 = vshll.u32 %v3983_v34, 16  ;;  %v4150_v52 = vshrl.u32 %v3983_v34, 16  ;;  %v4302_v24 = vrot.slane %v3983_v34, 1 }
 0x398   : > { %v3984_v16 = vpack.c.bf16 %v3944_v60, %v3944_v60  ;;  %v3284_v48 = vpop.f32.mrb[63].mxu1 }
 0x399   : > { %v4154_v61 = vrot.slane %v4152_v28, 1 }
 0x39a   : > { %v4303_v38 = vrot.slane %v3984_v16, 1  ;;  %v4157_v13 = vshll.u32 %v3984_v16, 16 }
 0x39b   : > { %v4155_v43 = vor.u32 %v4154_v61, %v4150_v52 }
 0x39c   : > { %v11181_v1 = vsel %vm888_vm2, %v4302_v24, %v4303_v38  ;;  %v4159_v37 = vrot.slane %v4157_v13, 1 }
 0x39d   : > { %v3287_v22 = vpop.f32.mrb[64].mxu1  ;;  %8117 = vmatprep.mubr.bf16.mxu0 %v11181_v1 }
 0x39e   : > { %v3289_v20 = vpop.f32.mrb[65].mxu1  ;;  %v11185_v36 = vsel %vm547_vm1, %v4155_v43, %v4159_v37 }
 0x39f   : > { %v3290_v45 = vpop.f32.mrb[66].mxu1  ;;  %4704 = vmatprep.mubr.bf16.mxu1 %v11185_v36 }
 0x3a0   : > { %v3292_v23 = vpop.f32.mrb[67].mxu1  ;;  %6747 = vmatmul.mubr.msk.bf16.gmra.mrb[140].mxu1 %vm10702_vm6, %v11170_v47 }
 0x3a5   : > { %v3496_v34 = vpop.f32.mrb[68].mxu1 }
 0x3a6   : > { %v3497_v14 = vadd.f32 %v3496_v34, %v11082_v42  ;;  %v8055_v60 = vpop.f32.mrb[69].mxu1 }
 0x3a7   : > { %v3499_v30 = vpop.f32.mrb[70].mxu1 }
 0x3a8   : > { %v3585_v28 = vadd.f32 %v3497_v14, %v10543_v54  ;;  %v3500_v16 = vadd.f32 %v3499_v30, %v11086_v15  ;;  %v8056_v48 = vpop.f32.mrb[71].mxu1 }
 0x3aa   : > { %v3646_v52 = vadd.f32 %v11119_v31, %v3585_v28  ;;  %v3586_v61 = vadd.f32 %v3500_v16, %v10548_v11 }
 0x3ac   : > { %v3700_v24 = vmax.f32 %v3646_v52, 0.0  ;;  %v3647_v38 = vadd.f32 %v11119_v31, %v3586_v61 }
 0x3ad   : > { %v3504_v13 = vpop.f32.mrb[72].mxu1 }
 0x3ae   : > { %v3945_v43 = vsel %vm3789_vm3, %v3700_v24, 0.0  ;;  %v3701_v37 = vmax.f32 %v3647_v38, 0.0  ;;  %v3505_v42 = vadd.f32 %v3504_v13, %v11103_v0  ;;  %v8059_v22 = vpop.f32.mrb[73].mxu1 }
 0x3af   : > { %v3507_v20 = vpop.f32.mrb[74].mxu1 }
 0x3b0   : > { %v3985_v54 = vpack.c.bf16 %v3701_v37, %v3945_v43  ;;  %v11200_v45 = vpack.c.bf16 %v3701_v37, %v3700_v24  ;;  %v3587_v15 = vadd.f32 %v3505_v42, %v10551_v8  ;;  %v3508_v23 = vadd.f32 %v3507_v20, %v11113_v7  ;;  %v8060_v11 = vpop.f32.mrb[75].mxu1 }
 0x3b2   : > { %v3648_v34 = vadd.f32 %v11119_v31, %v3587_v15  ;;  %v3588_v14 = vadd.f32 %v3508_v23, %v10554_v5  ;;  %v4164_v60 = vshll.u32 %v3985_v54, 16  ;;  %v4305_v7 = vrot.slane %v3985_v54, 1 }
 0x3b3   : > { %v4162_v42 = vshrl.u32 %v3985_v54, 16 }
 0x3b4   : > { %v3702_v30 = vmax.f32 %v3648_v34, 0.0  ;;  %v3649_v28 = vadd.f32 %v11119_v31, %v3588_v14  ;;  %v4166_v24 = vrot.slane %v4164_v60, 1 }
 0x3b5   : > { %v3512_v16 = vpop.f32.mrb[76].mxu1 }
 0x3b6   : > { %v3947_v0 = vsel %vm3848_vm4, %v3702_v30, 0.0  ;;  %v3513_v48 = vadd.f32 %v3512_v16, %v11129_v6  ;;  %v8063_v52 = vpop.f32.mrb[77].mxu1  ;;  %v3703_v37 = vmax.f32 %v3649_v28, 0.0  ;;  %v4167_v23 = vor.u32 %v4166_v24, %v4162_v42 }
 0x3b7   : > { %v3986_v61 = vpack.c.bf16 %v3947_v0, %v3947_v0  ;;  %v3515_v8 = vpop.f32.mrb[78].mxu1  ;;  %v12121_v52 = vld [vmem:[#allocation47_spill] sm:$0xff] }
 0x3b8   : > { %v3589_v38 = vadd.f32 %v3513_v48, %v10559_v33  ;;  %v3516_v13 = vadd.f32 %v3515_v8, %v11139_v18  ;;  %v8064_v5 = vpop.f32.mrb[79].mxu1  ;;  %v3948_v33 = vsel %vm3789_vm3, %v3703_v37, 0.0 }
 0x3b9   : > { %v4306_v43 = vrot.slane %v3986_v61, 1  ;;  %v4169_v22 = vshll.u32 %v3986_v61, 16 }
 0x3ba   : > { %v3650_v20 = vadd.f32 %v11119_v31, %v3589_v38  ;;  %v3590_v15 = vadd.f32 %v3516_v13, %v10561_v19  ;;  %v12122_v13 = vld [vmem:[#allocation49_spill] sm:$0xff] }
 0x3bb   : > { %v11215_v6 = vsel %vm888_vm2, %v4305_v7, %v4306_v43  ;;  %v4171_v11 = vrot.slane %v4169_v22, 1 }
 0x3bc   : > { %v3704_v34 = vmax.f32 %v3650_v20, 0.0  ;;  %v3651_v14 = vadd.f32 %v11119_v31, %v3590_v15  ;;  %8118 = vmatmul.mubr.bf16.gmra.mrb[68].mxu0 %v11215_v6 }
 0x3bd   : > { %v3520_v18 = vpop.f32.mrb[80].mxu1  ;;  %v11222_v54 = vsel %vm547_vm1, %v4167_v23, %v4171_v11 }
 0x3be   : > { %v3987_v60 = vpack.c.bf16 %v3704_v34, %v3948_v33  ;;  %v11224_v30 = vpack.c.bf16 %v3704_v34, %v3703_v37  ;;  %v3705_v19 = vmax.f32 %v3651_v14, 0.0  ;;  %v3521_v28 = vadd.f32 %v3520_v18, %v11151_v57  ;;  %v8067_v16 = vpop.f32.mrb[81].mxu1  ;;  %4712 = vmatprep.mubr.bf16.mxu1 %v11222_v54 }
 0x3bf   : > { %v3523_v0 = vpop.f32.mrb[82].mxu1  ;;  %6750 = vmatmul.mubr.msk.bf16.gmra.mrb[144].mxu1 %vm10702_vm6, %v11200_v45 }
 0x3c0   : > { %v3950_v48 = vsel %vm3848_vm4, %v3705_v19, 0.0  ;;  %v3591_v61 = vadd.f32 %v3521_v28, %v12121_v52  ;;  %v3524_v8 = vadd.f32 %v3523_v0, %v11155_v56  ;;  %v8068_v24 = vpop.f32.mrb[83].mxu1  ;;  %v4176_v38 = vshll.u32 %v3987_v60, 16  ;;  %v12123_v52 = vld [vmem:[#allocation50_spill] sm:$0xff] }
 0x3c1   : > { %v3988_v7 = vpack.c.bf16 %v3950_v48, %v3950_v48  ;;  %v4308_v43 = vrot.slane %v3987_v60, 1  ;;  %v4174_v42 = vshrl.u32 %v3987_v60, 16 }
 0x3c2   : > { %v3652_v57 = vadd.f32 %v11119_v31, %v3591_v61  ;;  %v3592_v5 = vadd.f32 %v3524_v8, %v12122_v13  ;;  %v4178_v22 = vrot.slane %v4176_v38, 1 }
 0x3c3   : > { %v4309_v37 = vrot.slane %v3988_v7, 1  ;;  %v4181_v20 = vshll.u32 %v3988_v7, 16 }
 0x3c4   : > { %v3706_v15 = vmax.f32 %v3652_v57, 0.0  ;;  %v3653_v23 = vadd.f32 %v11119_v31, %v3592_v5  ;;  %v4179_v56 = vor.u32 %v4178_v22, %v4174_v42 }
 0x3c5   : > { %v3528_v11 = vpop.f32.mrb[84].mxu1  ;;  %v11239_v34 = vsel %vm888_vm2, %v4308_v43, %v4309_v37  ;;  %v4183_v14 = vrot.slane %v4181_v20, 1  ;;  %v12124_v37 = vmov 0  }
 0x3c6   : > { %v3951_v33 = vsel %vm3789_vm3, %v3706_v15, 0.0  ;;  %v3707_v18 = vmax.f32 %v3653_v23, 0.0  ;;  %v3529_v19 = vadd.f32 %v3528_v11, %v11172_v51  ;;  %v8071_v28 = vpop.f32.mrb[85].mxu1  ;;  %8121 = vmatprep.mubr.bf16.mxu0 %v11239_v34  ;;  %v11259_v42 = vrot.slane %v12124_v37, 1 }
 0x3c7   : > { %v3531_v60 = vpop.f32.mrb[86].mxu1  ;;  %v11246_v16 = vsel %vm547_vm1, %v4179_v56, %v4183_v14  ;;  %v8576_v28 = vld [vmem:[%s11738_s3 + $0x98] sm:$0xff]  }
 0x3c8   : > { %v3989_v0 = vpack.c.bf16 %v3707_v18, %v3951_v33  ;;  %v11248_v48 = vpack.c.bf16 %v3707_v18, %v3706_v15  ;;  %v3593_v61 = vadd.f32 %v3529_v19, %v12123_v52  ;;  %v8072_v8 = vpop.f32.mrb[87].mxu1  ;;  %4720 = vmatprep.mubr.bf16.mxu1 %v11246_v16  ;;  %v8574_v33 = vld [vmem:[%s11738_s3 + $0x88] sm:$0xff]   ;;  %v8647_v18 = vmov 0.0|0.0   ;;  %v8575_v19 = vld [vmem:[%s11738_s3 + $0x90] sm:$0xff]   ;;  %v12125_v60 = vld [vmem:[#allocation11_spill] sm:$0xff] }
 0x3c9   : > { %6753 = vmatmul.mubr.msk.bf16.gmra.mrb[148].mxu1 %vm10702_vm6, %v11224_v30  ;;  %v8577_v8 = vld [vmem:[%s11738_s3 + $0xa0] sm:$0xff]  }
 0x3ca   : > { %v3654_v21 = vadd.f32 %v11119_v31, %v3593_v61  ;;  %v4188_v51 = vshll.u32 %v3989_v0, 16  ;;  %v4311_v20 = vrot.slane %v3989_v0, 1  ;;  %v4186_v23 = vshrl.u32 %v3989_v0, 16 }
 0x3cc   : > { %v3708_v24 = vmax.f32 %v3654_v21, 0.0  ;;  %v4190_v5 = vrot.slane %v4188_v51, 1  ;;  %v8579_v51 = vld [vmem:[%s11738_s3 + $0xb0] sm:$0xff]  }
 0x3cd   : > { %v3536_v7 = vpop.f32.mrb[88].mxu1 }
 0x3ce   : > { %v3953_v38 = vsel %vm3848_vm4, %v3708_v24, 0.0  ;;  %v8075_v57 = vpop.f32.mrb[89].mxu1  ;;  %v4191_v56 = vor.u32 %v4190_v5, %v4186_v23  ;;  %v11333_v5 = vld [vmem:[%s11738_s3 + $0x200] sm:$0xff]  }
 0x3cf   : > { %v3990_v13 = vpack.c.bf16 %v3953_v38, %v3953_v38  ;;  %v3539_v43 = vpop.f32.mrb[90].mxu1 }
 0x3d0   : > { %v8076_v22 = vpop.f32.mrb[91].mxu1 }
 0x3d1   : > { %v4312_v15 = vrot.slane %v3990_v13, 1  ;;  %v4193_v11 = vshll.u32 %v3990_v13, 16 }
 0x3d3   : > { %v11262_v31 = vsel %vm888_vm2, %v4311_v20, %v4312_v15  ;;  %v4195_v14 = vrot.slane %v4193_v11, 1 }
 0x3d4   : > { %8122 = vmatmul.mubr.bf16.gmra.mrb[72].mxu0 %v11262_v31 }
 0x3d5   : > { %v11266_v27 = vsel %vm547_vm1, %v4191_v56, %v4195_v14  ;;  %5074 = vmatprep.mubr.bf16.mxu0 %v11259_v42 }
 0x3d6   : > { %4728 = vmatprep.mubr.bf16.mxu1 %v11266_v27 }
 0x3d7   : > { %6756 = vmatmul.mubr.msk.bf16.gmra.mrb[152].mxu1 %vm10702_vm6, %v11248_v48 }
 0x3d8   : > { %5589 = vmatprep.mubr.bf16.mxu1 %v10744_v9 }
 0x3dc   : > { %5075 = vmatmul.mubr.bf16.vlgmr.msra.gmra.mrb[76].mxu0 %v8647_v18 }
 0x3dd   : > { %5082 = vmatprep.mubr.bf16.mxu0 %v10707_v63  ;;  %8126 = vmatpush3.bf16.msra.mxu0 %v11010_v58 }
 0x3de   : > { %8127 = vmatprep.subr.bf16.mxu0 %v8574_v33 }
 0x3df   : > { %6900 = vmatmul.mubr.msk.bf16.vlgmr.msra.gmra.mrb[156].mxu1 %vm10702_vm6, %v10709_v26 }
 0x3e0   : > { %5597 = vmatprep.mubr.bf16.mxu1 %v10780_v46 }
 0x3e1   : > { %8128 = vmatpush3.bf16.msra.mxu0 %v8574_v33 }
 0x3e2   : > { %8129 = vmatprep.subr.bf16.mxu0 %v8575_v19 }
 0x3e3   : > { %v7313_v63 = vpop.f32.mrb[92].mxu1 }
 0x3e4   : > { %6783 = vmatmul.mubr.msk.bf16.gmra.mrb[80].mxu0 %vm10702_vm6, %v12125_v60  ;;  %v7314_v58 = vpop.f32.mrb[93].mxu1 }
 0x3e5   : > { %v11293_v0 = vadd.f32 %v7314_v58, %v7313_v63  ;;  %5090 = vmatprep.mubr.bf16.mxu0 %v10744_v9  ;;  %v7316_v52 = vpop.f32.mrb[94].mxu1  ;;  %8130 = vmatpush3.bf16.msra.mxu0 %v8575_v19  ;;  %v8578_v9 = vld [vmem:[%s11738_s3 + $0xa8] sm:$0xff]  }
 0x3e6   : > { %v7317_v61 = vpop.f32.mrb[95].mxu1  ;;  %8131 = vmatprep.subr.bf16.mxu0 %v8576_v28 }
 0x3e7   : > { %v11299_v21 = vadd.f32 %v7317_v61, %v7316_v52  ;;  %6903 = vmatmul.mubr.msk.bf16.gmra.mrb[160].mxu1 %vm10702_vm6, %v10746_v32 }
 0x3e8   : > { %5605 = vmatprep.mubr.bf16.mxu1 %v10820_v2 }
 0x3e9   : > { %8132 = vmatpush3.bf16.msra.mxu0 %v8576_v28 }
 0x3ea   : > { %8133 = vmatprep.subr.bf16.mxu0 %v8577_v8 }
 0x3ec   : > { %6786 = vmatmul.mubr.msk.bf16.gmra.mrb[84].mxu0 %vm10702_vm6, %v10709_v26  ;;  %v8580_v26 = vld [vmem:[%s11738_s3 + $0xb8] sm:$0xff]  }
 0x3ed   : > { %5098 = vmatprep.mubr.bf16.mxu0 %v10780_v46  ;;  %8134 = vmatpush3.bf16.msra.mxu0 %v8577_v8 }
 0x3ee   : > { %8135 = vmatprep.subr.bf16.mxu0 %v8578_v9 }
 0x3ef   : > { %6906 = vmatmul.mubr.msk.bf16.gmra.mrb[164].mxu1 %vm10702_vm6, %v10782_v53 }
 0x3f0   : > { %5613 = vmatprep.mubr.bf16.mxu1 %v10856_v25 }
 0x3f1   : > { %v7319_v24 = vpop.f32.mrb[96].mxu1  ;;  %8136 = vmatpush3.bf16.msra.mxu0 %v8578_v9 }
 0x3f2   : > { %v7320_v7 = vpop.f32.mrb[97].mxu1  ;;  %8137 = vmatprep.subr.bf16.mxu0 %v8579_v51 }
 0x3f3   : > { %v11322_v46 = vadd.f32 %v7320_v7, %v7319_v24  ;;  %v7322_v38 = vpop.f32.mrb[98].mxu1 }
 0x3f4   : > { %6789 = vmatmul.mubr.msk.bf16.gmra.mrb[88].mxu0 %vm10702_vm6, %v10746_v32  ;;  %v7323_v57 = vpop.f32.mrb[99].mxu1 }
 0x3f5   : > { %v11327_v13 = vadd.f32 %v7323_v57, %v7322_v38  ;;  %5106 = vmatprep.mubr.bf16.mxu0 %v10820_v2  ;;  %8138 = vmatpush3.bf16.msra.mxu0 %v8579_v51 }
 0x3f6   : > { %8139 = vmatprep.subr.bf16.mxu0 %v8580_v26 }
 0x3f7   : > { %6909 = vmatmul.mubr.msk.bf16.gmra.mrb[168].mxu1 %vm10702_vm6, %v10822_v12 }
 0x3f8   : > { %5621 = vmatprep.mubr.bf16.mxu1 %v10926_v10 }
 0x3f9   : > { %8140 = vmatpush3.bf16.msra.mxu0 %v8580_v26 }
 0x3fa   : > { %8173 = vmatprep.subr.bf16.mxu0 %v11333_v5 }
 0x3fb   : > { %v7325_v32 = vpop.f32.mrb[100].mxu1 }
 0x3fc   : > { %6792 = vmatmul.mubr.msk.bf16.gmra.mrb[92].mxu0 %vm10702_vm6, %v10782_v53  ;;  %v7326_v2 = vpop.f32.mrb[101].mxu1 }
 0x3fd   : > { %v11343_v43 = vadd.f32 %v7326_v2, %v7325_v32  ;;  %5114 = vmatprep.mubr.bf16.mxu0 %v10856_v25  ;;  %v7328_v37 = vpop.f32.mrb[102].mxu1  ;;  %v12127_v2 = vld [vmem:[#allocation51_spill] sm:$0xff] }
 0x3fe   : > { %v7329_v22 = vpop.f32.mrb[103].mxu1 }
 0x3ff   : > { %v11346_v20 = vadd.f32 %v7329_v22, %v7328_v37  ;;  %6912 = vmatmul.mubr.msk.bf16.gmra.mrb[172].mxu1 %vm10702_vm6, %v10864_v3 }
 0x400   : > { %5629 = vmatprep.mubr.bf16.mxu1 %v10980_v40 }
 0x404   : > { %6795 = vmatmul.mubr.msk.bf16.gmra.mrb[96].mxu0 %vm10702_vm6, %v10822_v12 }
 0x405   : > { %5122 = vmatprep.mubr.bf16.mxu0 %v10926_v10 }
 0x407   : > { %6915 = vmatmul.mubr.msk.bf16.gmra.mrb[176].mxu1 %vm10702_vm6, %v10928_v44 }
 0x408   : > { %5637 = vmatprep.mubr.bf16.mxu1 %v11035_v17 }
 0x409   : > { %v7331_v53 = vpop.f32.mrb[104].mxu1 }
 0x40a   : > { %v7332_v25 = vpop.f32.mrb[105].mxu1 }
 0x40b   : > { %v11360_v15 = vadd.f32 %v7332_v25, %v7331_v53  ;;  %v7334_v23 = vpop.f32.mrb[106].mxu1  ;;  %v12128_v53 = vld [vmem:[#allocation53_spill] sm:$0xff] }
 0x40c   : > { %6798 = vmatmul.mubr.msk.bf16.gmra.mrb[100].mxu0 %vm10702_vm6, %v10864_v3  ;;  %v7335_v11 = vpop.f32.mrb[107].mxu1 }
 0x40d   : > { %v11365_v56 = vadd.f32 %v7335_v11, %v7334_v23  ;;  %5130 = vmatprep.mubr.bf16.mxu0 %v10980_v40  ;;  %v8584_v23 = vld [vmem:[%s11738_s3 + $0x218] sm:$0xff]   ;;  %v12129_v11 = vld [vmem:[#allocation52_spill] sm:$0xff] }
 0x40f   : > { %6918 = vmatmul.mubr.msk.bf16.gmra.mrb[180].mxu1 %vm10702_vm6, %v10988_v49 }
 0x410   : > { %5645 = vmatprep.mubr.bf16.mxu1 %v11065_v50 }
 0x413   : > { %v7337_v12 = vpop.f32.mrb[108].mxu1 }
 0x414   : > { %6801 = vmatmul.mubr.msk.bf16.gmra.mrb[104].mxu0 %vm10702_vm6, %v10928_v44  ;;  %v7338_v10 = vpop.f32.mrb[109].mxu1 }
 0x415   : > { %v11375_v14 = vadd.f32 %v7338_v10, %v7337_v12  ;;  %5138 = vmatprep.mubr.bf16.mxu0 %v11035_v17  ;;  %v7340_v3 = vpop.f32.mrb[110].mxu1  ;;  %v12130_v12 = vld [vmem:[#allocation54_spill] sm:$0xff] }
 0x416   : > { %v7341_v33 = vpop.f32.mrb[111].mxu1 }
 0x417   : > { %v11378_v19 = vadd.f32 %v7341_v33, %v7340_v3  ;;  %6921 = vmatmul.mubr.msk.bf16.gmra.mrb[184].mxu1 %vm10702_vm6, %v11037_v35  ;;  %v8586_v33 = vld [vmem:[%s11738_s3 + $0x228] sm:$0xff]  }
 0x418   : > { %5653 = vmatprep.mubr.bf16.mxu1 %v11099_v59 }
 0x41c   : > { %6804 = vmatmul.mubr.msk.bf16.gmra.mrb[108].mxu0 %vm10702_vm6, %v10988_v49  ;;  %v12126_v49 = vld [vmem:[#allocation61_spill] sm:$0xff] }
 0x41d   : > { %5146 = vmatprep.mubr.bf16.mxu0 %v11065_v50 }
 0x41f   : > { %6924 = vmatmul.mubr.msk.bf16.gmra.mrb[188].mxu1 %vm10702_vm6, %v11067_v41 }
 0x420   : > { %5661 = vmatprep.mubr.bf16.mxu1 %v11134_v55 }
 0x421   : > { %v7343_v44 = vpop.f32.mrb[112].mxu1 }
 0x422   : > { %v7344_v40 = vpop.f32.mrb[113].mxu1 }
 0x423   : > { %v11392_v17 = vadd.f32 %v7344_v40, %v7343_v44  ;;  %v7346_v28 = vpop.f32.mrb[114].mxu1 }
 0x424   : > { %6807 = vmatmul.mubr.msk.bf16.gmra.mrb[112].mxu0 %vm10702_vm6, %v11037_v35  ;;  %v7347_v63 = vpop.f32.mrb[115].mxu1 }
 0x425   : > { %v11397_v60 = vadd.f32 %v7347_v63, %v7346_v28  ;;  %5154 = vmatprep.mubr.bf16.mxu0 %v11099_v59  ;;  %v12131_v28 = vld [vmem:[#allocation55_spill] sm:$0xff] }
 0x427   : > { %6927 = vmatmul.mubr.msk.bf16.gmra.mrb[192].mxu1 %vm10702_vm6, %v12126_v49 }
 0x428   : > { %5669 = vmatprep.mubr.bf16.mxu1 %v11168_v4 }
 0x42b   : > { %v7349_v50 = vpop.f32.mrb[116].mxu1 }
 0x42c   : > { %6810 = vmatmul.mubr.msk.bf16.gmra.mrb[116].mxu0 %vm10702_vm6, %v11067_v41  ;;  %v7350_v58 = vpop.f32.mrb[117].mxu1 }
 0x42d   : > { %v11407_v52 = vadd.f32 %v7350_v58, %v7349_v50  ;;  %5162 = vmatprep.mubr.bf16.mxu0 %v11134_v55  ;;  %v7352_v35 = vpop.f32.mrb[118].mxu1  ;;  %v12132_v50 = vld [vmem:[#allocation59_spill] sm:$0xff]  ;;  %v8587_v58 = vld [vmem:[%s11738_s3 + $0x230] sm:$0xff]  }
 0x42e   : > { %v7353_v61 = vpop.f32.mrb[119].mxu1 }
 0x42f   : > { %v11410_v8 = vadd.f32 %v7353_v61, %v7352_v35  ;;  %6930 = vmatmul.mubr.msk.bf16.gmra.mrb[196].mxu1 %vm10702_vm6, %v11136_v29  ;;  %v8588_v35 = vld [vmem:[%s11738_s3 + $0x238] sm:$0xff]  }
 0x430   : > { %5677 = vmatprep.mubr.bf16.mxu1 %v11185_v36 }
 0x434   : > { %6813 = vmatmul.mubr.msk.bf16.gmra.mrb[120].mxu0 %vm10702_vm6, %v12126_v49 }
 0x435   : > { %5170 = vmatprep.mubr.bf16.mxu0 %v11168_v4 }
 0x437   : > { %6933 = vmatmul.mubr.msk.bf16.gmra.mrb[200].mxu1 %vm10702_vm6, %v11170_v47 }
 0x438   : > { %5685 = vmatprep.mubr.bf16.mxu1 %v11222_v54 }
 0x439   : > { %v7355_v41 = vpop.f32.mrb[120].mxu1 }
 0x43a   : > { %v7356_v59 = vpop.f32.mrb[121].mxu1 }
 0x43b   : > { %v11424_v55 = vadd.f32 %v7356_v59, %v7355_v41  ;;  %v7358_v9 = vpop.f32.mrb[122].mxu1  ;;  %v12133_v41 = vld [vmem:[#allocation56_spill] sm:$0xff] }
 0x43c   : > { %6816 = vmatmul.mubr.msk.bf16.gmra.mrb[124].mxu0 %vm10702_vm6, %v11136_v29  ;;  %v7359_v51 = vpop.f32.mrb[123].mxu1 }
 0x43d   : > { %v11429_v24 = vadd.f32 %v7359_v51, %v7358_v9  ;;  %5178 = vmatprep.mubr.bf16.mxu0 %v11185_v36  ;;  %v11457_v36 = vrot.slane %v8647_v18, 1  ;;  %v12134_v51 = vld [vmem:[#allocation57_spill] sm:$0xff] }
 0x43f   : > { %6936 = vmatmul.mubr.msk.bf16.gmra.mrb[204].mxu1 %vm10702_vm6, %v11200_v45 }
 0x440   : > { %5693 = vmatprep.mubr.bf16.mxu1 %v11246_v16 }
 0x443   : > { %v7361_v4 = vpop.f32.mrb[124].mxu1 }
 0x444   : > { %6819 = vmatmul.mubr.msk.bf16.gmra.mrb[128].mxu0 %vm10702_vm6, %v11170_v47  ;;  %v7362_v7 = vpop.f32.mrb[125].mxu1 }
 0x445   : > { %v11439_v26 = vadd.f32 %v7362_v7, %v7361_v4  ;;  %5186 = vmatprep.mubr.bf16.mxu0 %v11222_v54  ;;  %v7364_v29 = vpop.f32.mrb[126].mxu1 }
 0x446   : > { %v7365_v38 = vpop.f32.mrb[127].mxu1 }
 0x447   : > { %v11442_v57 = vadd.f32 %v7365_v38, %v7364_v29  ;;  %6939 = vmatmul.mubr.msk.bf16.gmra.mrb[208].mxu1 %vm10702_vm6, %v11224_v30  ;;  %v12135_v38 = vld [vmem:[#allocation16_spill] sm:$0xff] }
 0x448   : > { %5701 = vmatprep.mubr.bf16.mxu1 %v11266_v27 }
 0x44c   : > { %6822 = vmatmul.mubr.msk.bf16.gmra.mrb[132].mxu0 %vm10702_vm6, %v11200_v45 }
 0x44d   : > { %5194 = vmatprep.mubr.bf16.mxu0 %v11246_v16 }
 0x44f   : > { %6942 = vmatmul.mubr.msk.bf16.gmra.mrb[212].mxu1 %vm10702_vm6, %v11248_v48  ;;  %v8582_v48 = vld [vmem:[%s11738_s3 + $0x208] sm:$0xff]  }
 0x450   : > { %5709 = vmatprep.mubr.bf16.mxu1 %v11259_v42 }
 0x451   : > { %v7367_v47 = vpop.f32.mrb[128].mxu1 }
 0x452   : > { %v7368_v54 = vpop.f32.mrb[129].mxu1 }
 0x453   : > { %v11459_v32 = vadd.f32 %v7368_v54, %v7367_v47  ;;  %v7370_v27 = vpop.f32.mrb[130].mxu1  ;;  %v12136_v47 = vld [vmem:[#allocation58_spill] sm:$0xff]  ;;  %v12137_v54 = vld [vmem:[#allocation60_spill] sm:$0xff] }
 0x454   : > { %6825 = vmatmul.mubr.msk.bf16.gmra.mrb[136].mxu0 %vm10702_vm6, %v11224_v30  ;;  %v7371_v45 = vpop.f32.mrb[131].mxu1 }
 0x455   : > { %v11464_v16 = vadd.f32 %v7371_v45, %v7370_v27  ;;  %8141 = vmatprep.mubr.bf16.mxu0 %v11457_v36 }
 0x457   : > { %5710 = vmatmul.mubr.bf16.gmra.mrb[216].mxu1 %v8647_v18  ;;  %v8583_v18 = vld [vmem:[%s11738_s3 + $0x210] sm:$0xff]  }
 0x45b   : > { %v7373_v42 = vpop.f32.mrb[132].mxu1 }
 0x45c   : > { %8142 = vmatmul.mubr.bf16.vlgmr.msra.gmra.mrb[44].mxu0 %v12127_v2  ;;  %v7374_v37 = vpop.f32.mrb[133].mxu1 }
 0x45d   : > { %v11472_v22 = vadd.f32 %v7374_v37, %v7373_v42  ;;  %8145 = vmatprep.mubr.bf16.mxu0 %v12128_v53  ;;  %8174 = vmatpush3.bf16.msra.mxu0 %v11333_v5  ;;  %v7376_v39 = vpop.f32.mrb[134].mxu1  ;;  %v8585_v5 = vld [vmem:[%s11738_s3 + $0x220] sm:$0xff]  }
 0x45e   : > { %v7377_v30 = vpop.f32.mrb[135].mxu1  ;;  %8175 = vmatprep.subr.bf16.mxu0 %v8582_v48 }
 0x45f   : > { %v11479_v25 = vadd.f32 %v7377_v30, %v7376_v39 }
 0x461   : > { %8176 = vmatpush3.bf16.msra.mxu0 %v8582_v48 }
 0x462   : > { %8177 = vmatprep.subr.bf16.mxu0 %v8583_v18 }
 0x464   : > { %8146 = vmatmul.mubr.bf16.gmra.mrb[48].mxu0 %v12129_v11 }
 0x465   : > { %8149 = vmatprep.mubr.bf16.mxu0 %v12130_v12  ;;  %8178 = vmatpush3.bf16.msra.mxu0 %v8583_v18 }
 0x466   : > { %8179 = vmatprep.subr.bf16.mxu0 %v8584_v23 }
 0x469   : > { %v7379_v10 = vpop.f32.mrb[136].mxu1  ;;  %8180 = vmatpush3.bf16.msra.mxu0 %v8584_v23 }
 0x46a   : > { %v7380_v3 = vpop.f32.mrb[137].mxu1  ;;  %8181 = vmatprep.subr.bf16.mxu0 %v8585_v5 }
 0x46b   : > { %v11492_v44 = vadd.f32 %v7380_v3, %v7379_v10  ;;  %v7382_v40 = vpop.f32.mrb[138].mxu1 }
 0x46c   : > { %8150 = vmatmul.mubr.bf16.gmra.mrb[52].mxu0 %v12131_v28  ;;  %v7383_v63 = vpop.f32.mrb[139].mxu1 }
 0x46d   : > { %v11495_v49 = vadd.f32 %v7383_v63, %v7382_v40  ;;  %8153 = vmatprep.mubr.bf16.mxu0 %v12132_v50  ;;  %8182 = vmatpush3.bf16.msra.mxu0 %v8585_v5 }
 0x46e   : > { %8183 = vmatprep.subr.bf16.mxu0 %v8586_v33 }
 0x471   : > { %8184 = vmatpush3.bf16.msra.mxu0 %v8586_v33 }
 0x472   : > { %8185 = vmatprep.subr.bf16.mxu0 %v8587_v58 }
 0x473   : > { %v7385_v61 = vpop.f32.mrb[140].mxu1 }
 0x474   : > { %8154 = vmatmul.mubr.bf16.gmra.mrb[56].mxu0 %v12133_v41  ;;  %v7386_v59 = vpop.f32.mrb[141].mxu1 }
 0x475   : > { %v11505_v9 = vadd.f32 %v7386_v59, %v7385_v61  ;;  %8157 = vmatprep.mubr.bf16.mxu0 %v12134_v51  ;;  %v7388_v4 = vpop.f32.mrb[142].mxu1  ;;  %8186 = vmatpush3.bf16.msra.mxu0 %v8587_v58 }
 0x476   : > { %v7389_v7 = vpop.f32.mrb[143].mxu1  ;;  %8187 = vmatprep.subr.bf16.mxu0 %v8588_v35 }
 0x477   : > { %v11508_v29 = vadd.f32 %v7389_v7, %v7388_v4 }
 0x479   : > { %8188 = vmatpush3.bf16.msra.mxu0 %v8588_v35 }
 0x47c   : > { %8158 = vmatmul.mubr.bf16.gmra.mrb[60].mxu0 %v12135_v38 }
 0x47d   : > { %8161 = vmatprep.mubr.bf16.mxu0 %v12136_v47 }
 0x484   : > { %8162 = vmatmul.mubr.bf16.gmra.mrb[64].mxu0 %v12137_v54 }
 0x485   : > { %8165 = vmatprep.mubr.bf16.mxu0 %v11161_v62 }
 0x48c   : > { %8166 = vmatmul.mubr.bf16.gmra.mrb[68].mxu0 %v11181_v1 }
 0x48d   : > { %8169 = vmatprep.mubr.bf16.mxu0 %v11215_v6 }
 0x492   : > { %v7391_v27 = vpop.f32.mrb[144].mxu1 }
 0x493   : > { %v7392_v45 = vpop.f32.mrb[145].mxu1 }
 0x494   : > { %v11516_v48 = vadd.f32 %v7392_v45, %v7391_v27  ;;  %v7394_v42 = vpop.f32.mrb[146].mxu1  ;;  %8170 = vmatmul.mubr.bf16.gmra.mrb[72].mxu0 %v11239_v34 }
 0x495   : > { %v7395_v2 = vpop.f32.mrb[147].mxu1  ;;  %8189 = vmatprep.mubr.bf16.mxu0 %v12128_v53 }
 0x496   : > { %v11520_v37 = vadd.f32 %v7395_v2, %v7394_v42 }
 0x49c   : > { %v7397_v39 = vpop.f32.mrb[148].mxu1  ;;  %8190 = vmatmul.mubr.bf16.vlgmr.msra.gmra.mrb[44].mxu0 %v12129_v11 }
 0x49d   : > { %v7398_v30 = vpop.f32.mrb[149].mxu1  ;;  %8193 = vmatprep.mubr.bf16.mxu0 %v12130_v12 }
 0x49e   : > { %v11524_v18 = vadd.f32 %v7398_v30, %v7397_v39  ;;  %v7400_v23 = vpop.f32.mrb[150].mxu1 }
 0x49f   : > { %v7401_v5 = vpop.f32.mrb[151].mxu1 }
 0x4a0   : > { %v11526_v10 = vadd.f32 %v7401_v5, %v7400_v23 }
 0x4a4   : > { %8194 = vmatmul.mubr.bf16.gmra.mrb[48].mxu0 %v12131_v28 }
 0x4a5   : > { %8197 = vmatprep.mubr.bf16.mxu0 %v12132_v50 }
 0x4aa   : > { %v7403_v3 = vpop.f32.mrb[152].mxu1 }
 0x4ab   : > { %v7404_v53 = vpop.f32.mrb[153].mxu1 }
 0x4ac   : > { %v11530_v33 = vadd.f32 %v7404_v53, %v7403_v3  ;;  %v7406_v40 = vpop.f32.mrb[154].mxu1  ;;  %8198 = vmatmul.mubr.bf16.gmra.mrb[52].mxu0 %v12133_v41 }
 0x4ad   : > { %v7407_v11 = vpop.f32.mrb[155].mxu1  ;;  %8201 = vmatprep.mubr.bf16.mxu0 %v12134_v51 }
 0x4ae   : > { %v11534_v12 = vadd.f32 %v7407_v11, %v7406_v40 }
 0x4af   : > { %v7449_v63 = vpop.f32.mrb[76].mxu0 }
 0x4b0   : > { %v7450_v58 = vpop.f32.mrb[77].mxu0 }
 0x4b1   : > { %v7451_v35 = vadd.f32 %v7450_v58, %v7449_v63  ;;  %v7452_v61 = vpop.f32.mrb[78].mxu0 }
 0x4b2   : > { %v7453_v59 = vpop.f32.mrb[79].mxu0  ;;  %v7585_v28 = vpop.f32.mrb[156].mxu1 }
 0x4b3   : > { %v8240_v50 = vadd.f32 %v7451_v35, %v11293_v0  ;;  %v7454_v4 = vadd.f32 %v7453_v59, %v7452_v61  ;;  %v7586_v7 = vpop.f32.mrb[157].mxu1 }
 0x4b4   : > { %v7587_v27 = vadd.f32 %v7586_v7, %v7585_v28  ;;  %v7588_v45 = vpop.f32.mrb[158].mxu1  ;;  %8202 = vmatmul.mubr.bf16.gmra.mrb[56].mxu0 %v12135_v38 }
 0x4b5   : > { %v8246_v41 = vadd.f32 %v7454_v4, %v11299_v21  ;;  %v7589_v42 = vpop.f32.mrb[159].mxu1  ;;  %8205 = vmatprep.mubr.bf16.mxu0 %v12136_v47 }
 0x4b6   : > { %v7590_v51 = vadd.f32 %v7589_v42, %v7588_v45  ;;  %v11540_v2 = vadd.f32 %v8240_v50, %v7587_v27 }
 0x4b7   : > { %v7455_v39 = vpop.f32.mrb[80].mxu0 }
 0x4b8   : > { %v7456_v30 = vpop.f32.mrb[81].mxu0  ;;  %v11542_v23 = vadd.f32 %v8246_v41, %v7590_v51 }
 0x4b9   : > { %v7457_v5 = vadd.f32 %v7456_v30, %v7455_v39  ;;  %v7458_v0 = vpop.f32.mrb[82].mxu0 }
 0x4ba   : > { %v7459_v3 = vpop.f32.mrb[83].mxu0  ;;  %v7591_v53 = vpop.f32.mrb[160].mxu1 }
 0x4bb   : > { %v8237_v40 = vadd.f32 %v7457_v5, %v11322_v46  ;;  %v7460_v11 = vadd.f32 %v7459_v3, %v7458_v0  ;;  %v7592_v38 = vpop.f32.mrb[161].mxu1 }
 0x4bc   : > { %v7593_v63 = vadd.f32 %v7592_v38, %v7591_v53  ;;  %v7594_v21 = vpop.f32.mrb[162].mxu1  ;;  %8206 = vmatmul.mubr.bf16.gmra.mrb[60].mxu0 %v12137_v54 }
 0x4bd   : > { %v8243_v47 = vadd.f32 %v7460_v11, %v11327_v13  ;;  %v7595_v58 = vpop.f32.mrb[163].mxu1  ;;  %8209 = vmatprep.mubr.bf16.mxu0 %v11161_v62 }
 0x4be   : > { %v7596_v35 = vadd.f32 %v7595_v58, %v7594_v21  ;;  %v11548_v61 = vadd.f32 %v8237_v40, %v7593_v63 }
 0x4bf   : > { %v7461_v59 = vpop.f32.mrb[84].mxu0 }
 0x4c0   : > { %v7462_v28 = vpop.f32.mrb[85].mxu0  ;;  %v11550_v50 = vadd.f32 %v8243_v47, %v7596_v35 }
 0x4c1   : > { %v7463_v4 = vadd.f32 %v7462_v28, %v7461_v59  ;;  %v7464_v46 = vpop.f32.mrb[86].mxu0 }
 0x4c2   : > { %v7465_v7 = vpop.f32.mrb[87].mxu0  ;;  %v7597_v27 = vpop.f32.mrb[164].mxu1 }
 0x4c3   : > { %v8252_v45 = vadd.f32 %v7463_v4, %v11343_v43  ;;  %v7466_v41 = vadd.f32 %v7465_v7, %v7464_v46  ;;  %v7598_v54 = vpop.f32.mrb[165].mxu1 }
 0x4c4   : > { %v7599_v42 = vadd.f32 %v7598_v54, %v7597_v27  ;;  %v7600_v13 = vpop.f32.mrb[166].mxu1  ;;  %8210 = vmatmul.mubr.bf16.gmra.mrb[64].mxu0 %v11181_v1 }
 0x4c5   : > { %v8258_v62 = vadd.f32 %v7466_v41, %v11346_v20  ;;  %v7601_v51 = vpop.f32.mrb[167].mxu1  ;;  %8213 = vmatprep.mubr.bf16.mxu0 %v11215_v6 }
 0x4c6   : > { %v7602_v39 = vadd.f32 %v7601_v51, %v7600_v13  ;;  %v11556_v30 = vadd.f32 %v8252_v45, %v7599_v42 }
 0x4c7   : > { %v7467_v5 = vpop.f32.mrb[88].mxu0 }
 0x4c8   : > { %v7468_v0 = vpop.f32.mrb[89].mxu0  ;;  %v11558_v3 = vadd.f32 %v8258_v62, %v7602_v39 }
 0x4c9   : > { %v7469_v53 = vadd.f32 %v7468_v0, %v7467_v5  ;;  %v7470_v43 = vpop.f32.mrb[90].mxu0 }
 0x4ca   : > { %v7471_v40 = vpop.f32.mrb[91].mxu0  ;;  %v7603_v11 = vpop.f32.mrb[168].mxu1 }
 0x4cb   : > { %v8249_v38 = vadd.f32 %v7469_v53, %v11360_v15  ;;  %v7472_v63 = vadd.f32 %v7471_v40, %v7470_v43  ;;  %v7604_v1 = vpop.f32.mrb[169].mxu1 }
 0x4cc   : > { %v7605_v21 = vadd.f32 %v7604_v1, %v7603_v11  ;;  %v7606_v20 = vpop.f32.mrb[170].mxu1  ;;  %8214 = vmatmul.mubr.bf16.gmra.mrb[68].mxu0 %v11239_v34 }
 0x4cd   : > { %v8255_v6 = vadd.f32 %v7472_v63, %v11365_v56  ;;  %v7607_v47 = vpop.f32.mrb[171].mxu1  ;;  %8217 = vmatprep.mubr.bf16.mxu0 %v11262_v31 }
 0x4ce   : > { %v7608_v58 = vadd.f32 %v7607_v47, %v7606_v20  ;;  %v11564_v35 = vadd.f32 %v8249_v38, %v7605_v21 }
 0x4cf   : > { %v7473_v59 = vpop.f32.mrb[92].mxu0 }
 0x4d0   : > { %v7474_v28 = vpop.f32.mrb[93].mxu0  ;;  %v11566_v4 = vadd.f32 %v8255_v6, %v7608_v58 }
 0x4d1   : > { %v7475_v46 = vadd.f32 %v7474_v28, %v7473_v59  ;;  %v7476_v15 = vpop.f32.mrb[94].mxu0 }
 0x4d2   : > { %v7477_v7 = vpop.f32.mrb[95].mxu0  ;;  %v7609_v27 = vpop.f32.mrb[172].mxu1 }
 0x4d3   : > { %v8264_v45 = vadd.f32 %v7475_v46, %v11375_v14  ;;  %v7478_v41 = vadd.f32 %v7477_v7, %v7476_v15  ;;  %v7610_v34 = vpop.f32.mrb[173].mxu1 }
 0x4d4   : > { %v7611_v54 = vadd.f32 %v7610_v34, %v7609_v27  ;;  %v7612_v56 = vpop.f32.mrb[174].mxu1  ;;  %8218 = vmatmul.mubr.bf16.gmra.mrb[72].mxu0 %v11457_v36 }
 0x4d5   : > { %v8270_v31 = vadd.f32 %v7478_v41, %v11378_v19  ;;  %v7613_v42 = vpop.f32.mrb[175].mxu1 }
 0x4d6   : > { %v7614_v13 = vadd.f32 %v7613_v42, %v7612_v56  ;;  %v11571_v62 = vadd.f32 %v8264_v45, %v7611_v54 }
 0x4d7   : > { %v7479_v51 = vpop.f32.mrb[96].mxu0 }
 0x4d8   : > { %v7480_v39 = vpop.f32.mrb[97].mxu0  ;;  %v11573_v5 = vadd.f32 %v8270_v31, %v7614_v13 }
 0x4d9   : > { %v7481_v0 = vadd.f32 %v7480_v39, %v7479_v51  ;;  %v7482_v53 = vpop.f32.mrb[98].mxu0 }
 0x4da   : > { %v7483_v43 = vpop.f32.mrb[99].mxu0  ;;  %v7615_v14 = vpop.f32.mrb[176].mxu1 }
 0x4db   : > { %v8261_v40 = vadd.f32 %v7481_v0, %v11392_v17  ;;  %v7484_v11 = vadd.f32 %v7483_v43, %v7482_v53  ;;  %v7616_v38 = vpop.f32.mrb[177].mxu1 }
 0x4dc   : > { %v7617_v63 = vadd.f32 %v7616_v38, %v7615_v14  ;;  %v7618_v36 = vpop.f32.mrb[178].mxu1 }
 0x4dd   : > { %v8267_v19 = vadd.f32 %v7484_v11, %v11397_v60  ;;  %v7619_v1 = vpop.f32.mrb[179].mxu1 }
 0x4de   : > { %v7620_v21 = vadd.f32 %v7619_v1, %v7618_v36  ;;  %v11577_v20 = vadd.f32 %v8261_v40, %v7617_v63 }
 0x4df   : > { %v7485_v6 = vpop.f32.mrb[100].mxu0 }
 0x4e0   : > { %v7486_v47 = vpop.f32.mrb[101].mxu0  ;;  %v11579_v58 = vadd.f32 %v8267_v19, %v7620_v21 }
 0x4e1   : > { %v7487_v59 = vadd.f32 %v7486_v47, %v7485_v6  ;;  %v7488_v28 = vpop.f32.mrb[102].mxu0 }
 0x4e2   : > { %v7489_v46 = vpop.f32.mrb[103].mxu0  ;;  %v7621_v15 = vpop.f32.mrb[180].mxu1 }
 0x4e3   : > { %v8276_v17 = vadd.f32 %v7487_v59, %v11407_v52  ;;  %v7490_v7 = vadd.f32 %v7489_v46, %v7488_v28  ;;  %v7622_v27 = vpop.f32.mrb[181].mxu1 }
 0x4e4   : > { %v7623_v45 = vadd.f32 %v7622_v27, %v7621_v15  ;;  %v7624_v41 = vpop.f32.mrb[182].mxu1 }
 0x4e5   : > { %v8282_v60 = vadd.f32 %v7490_v7, %v11410_v8  ;;  %v7625_v34 = vpop.f32.mrb[183].mxu1 }
 0x4e6   : > { %v7626_v54 = vadd.f32 %v7625_v34, %v7624_v41  ;;  %v11583_v56 = vadd.f32 %v8276_v17, %v7623_v45 }
 0x4e7   : > { %v7491_v31 = vpop.f32.mrb[104].mxu0 }
 0x4e8   : > { %v7492_v42 = vpop.f32.mrb[105].mxu0  ;;  %v11585_v13 = vadd.f32 %v8282_v60, %v7626_v54 }
 0x4e9   : > { %v7493_v51 = vadd.f32 %v7492_v42, %v7491_v31  ;;  %v7494_v39 = vpop.f32.mrb[106].mxu0 }
 0x4ea   : > { %v7495_v0 = vpop.f32.mrb[107].mxu0  ;;  %v7627_v53 = vpop.f32.mrb[184].mxu1 }
 0x4eb   : > { %v8273_v52 = vadd.f32 %v7493_v51, %v11424_v55  ;;  %v7496_v43 = vadd.f32 %v7495_v0, %v7494_v39  ;;  %v7628_v14 = vpop.f32.mrb[185].mxu1 }
 0x4ec   : > { %v7629_v40 = vadd.f32 %v7628_v14, %v7627_v53  ;;  %v7630_v11 = vpop.f32.mrb[186].mxu1 }
 0x4ed   : > { %v8279_v8 = vadd.f32 %v7496_v43, %v11429_v24  ;;  %v7631_v38 = vpop.f32.mrb[187].mxu1 }
 0x4ee   : > { %v7632_v63 = vadd.f32 %v7631_v38, %v7630_v11  ;;  %v11589_v36 = vadd.f32 %v8273_v52, %v7629_v40 }
 0x4ef   : > { %v7497_v19 = vpop.f32.mrb[108].mxu0 }
 0x4f0   : > { %v7498_v1 = vpop.f32.mrb[109].mxu0  ;;  %v11591_v21 = vadd.f32 %v8279_v8, %v7632_v63 }
 0x4f1   : > { %v7499_v6 = vadd.f32 %v7498_v1, %v7497_v19  ;;  %v7500_v47 = vpop.f32.mrb[110].mxu0 }
 0x4f2   : > { %v7501_v59 = vpop.f32.mrb[111].mxu0  ;;  %v7633_v28 = vpop.f32.mrb[188].mxu1 }
 0x4f3   : > { %v8288_v55 = vadd.f32 %v7499_v6, %v11439_v26  ;;  %v7502_v46 = vadd.f32 %v7501_v59, %v7500_v47  ;;  %v7634_v15 = vpop.f32.mrb[189].mxu1 }
 0x4f4   : > { %v7635_v17 = vadd.f32 %v7634_v15, %v7633_v28  ;;  %v7636_v7 = vpop.f32.mrb[190].mxu1 }
 0x4f5   : > { %v8294_v24 = vadd.f32 %v7502_v46, %v11442_v57  ;;  %v7637_v27 = vpop.f32.mrb[191].mxu1 }
 0x4f6   : > { %v7638_v45 = vadd.f32 %v7637_v27, %v7636_v7  ;;  %v11595_v41 = vadd.f32 %v8288_v55, %v7635_v17 }
 0x4f7   : > { %v7503_v60 = vpop.f32.mrb[112].mxu0 }
 0x4f8   : > { %v7504_v34 = vpop.f32.mrb[113].mxu0  ;;  %v11597_v54 = vadd.f32 %v8294_v24, %v7638_v45 }
 0x4f9   : > { %v7505_v31 = vadd.f32 %v7504_v34, %v7503_v60  ;;  %v7506_v42 = vpop.f32.mrb[114].mxu0 }
 0x4fa   : > { %v7507_v51 = vpop.f32.mrb[115].mxu0  ;;  %v7639_v39 = vpop.f32.mrb[192].mxu1 }
 0x4fb   : > { %v8285_v26 = vadd.f32 %v7505_v31, %v11459_v32  ;;  %v7508_v0 = vadd.f32 %v7507_v51, %v7506_v42  ;;  %v7640_v53 = vpop.f32.mrb[193].mxu1 }
 0x4fc   : > { %v7641_v52 = vadd.f32 %v7640_v53, %v7639_v39  ;;  %v7642_v43 = vpop.f32.mrb[194].mxu1 }
 0x4fd   : > { %v8291_v57 = vadd.f32 %v7508_v0, %v11464_v16  ;;  %v7643_v14 = vpop.f32.mrb[195].mxu1 }
 0x4fe   : > { %v7644_v40 = vadd.f32 %v7643_v14, %v7642_v43  ;;  %v11601_v11 = vadd.f32 %v8285_v26, %v7641_v52 }
 0x4ff   : > { %v7509_v8 = vpop.f32.mrb[116].mxu0 }
 0x500   : > { %v7510_v38 = vpop.f32.mrb[117].mxu0  ;;  %v11603_v63 = vadd.f32 %v8291_v57, %v7644_v40 }
 0x501   : > { %v7511_v19 = vadd.f32 %v7510_v38, %v7509_v8  ;;  %v7512_v1 = vpop.f32.mrb[118].mxu0 }
 0x502   : > { %v7513_v6 = vpop.f32.mrb[119].mxu0  ;;  %v7645_v47 = vpop.f32.mrb[196].mxu1 }
 0x503   : > { %v8300_v32 = vadd.f32 %v7511_v19, %v11472_v22  ;;  %v7514_v59 = vadd.f32 %v7513_v6, %v7512_v1  ;;  %v7646_v28 = vpop.f32.mrb[197].mxu1 }
 0x504   : > { %v7647_v55 = vadd.f32 %v7646_v28, %v7645_v47  ;;  %v7648_v46 = vpop.f32.mrb[198].mxu1 }
 0x505   : > { %v8306_v16 = vadd.f32 %v7514_v59, %v11479_v25  ;;  %v7649_v15 = vpop.f32.mrb[199].mxu1 }
 0x506   : > { %v7650_v17 = vadd.f32 %v7649_v15, %v7648_v46  ;;  %v11607_v7 = vadd.f32 %v8300_v32, %v7647_v55 }
 0x507   : > { %v7515_v24 = vpop.f32.mrb[120].mxu0 }
 0x508   : > { %v7516_v27 = vpop.f32.mrb[121].mxu0  ;;  %v11609_v45 = vadd.f32 %v8306_v16, %v7650_v17 }
 0x509   : > { %v7517_v60 = vadd.f32 %v7516_v27, %v7515_v24  ;;  %v7518_v34 = vpop.f32.mrb[122].mxu0 }
 0x50a   : > { %v7519_v31 = vpop.f32.mrb[123].mxu0  ;;  %v7651_v42 = vpop.f32.mrb[200].mxu1 }
 0x50b   : > { %v8297_v22 = vadd.f32 %v7517_v60, %v11492_v44  ;;  %v7520_v51 = vadd.f32 %v7519_v31, %v7518_v34  ;;  %v7652_v39 = vpop.f32.mrb[201].mxu1 }
 0x50c   : > { %v7653_v26 = vadd.f32 %v7652_v39, %v7651_v42  ;;  %v7654_v0 = vpop.f32.mrb[202].mxu1 }
 0x50d   : > { %v8303_v25 = vadd.f32 %v7520_v51, %v11495_v49  ;;  %v7655_v53 = vpop.f32.mrb[203].mxu1 }
 0x50e   : > { %v7656_v52 = vadd.f32 %v7655_v53, %v7654_v0  ;;  %v11613_v43 = vadd.f32 %v8297_v22, %v7653_v26 }
 0x50f   : > { %v7521_v57 = vpop.f32.mrb[124].mxu0 }
 0x510   : > { %v7522_v14 = vpop.f32.mrb[125].mxu0  ;;  %v11615_v40 = vadd.f32 %v8303_v25, %v7656_v52 }
 0x511   : > { %v7523_v8 = vadd.f32 %v7522_v14, %v7521_v57  ;;  %v7524_v38 = vpop.f32.mrb[126].mxu0 }
 0x512   : > { %v7525_v19 = vpop.f32.mrb[127].mxu0  ;;  %v7657_v1 = vpop.f32.mrb[204].mxu1 }
 0x513   : > { %v8312_v44 = vadd.f32 %v7523_v8, %v11505_v9  ;;  %v7526_v6 = vadd.f32 %v7525_v19, %v7524_v38  ;;  %v7658_v47 = vpop.f32.mrb[205].mxu1 }
 0x514   : > { %v7659_v32 = vadd.f32 %v7658_v47, %v7657_v1  ;;  %v7660_v59 = vpop.f32.mrb[206].mxu1 }
 0x515   : > { %v8318_v49 = vadd.f32 %v7526_v6, %v11508_v29  ;;  %v7661_v28 = vpop.f32.mrb[207].mxu1 }
 0x516   : > { %v7662_v55 = vadd.f32 %v7661_v28, %v7660_v59  ;;  %v11619_v46 = vadd.f32 %v8312_v44, %v7659_v32 }
 0x517   : > { %v7527_v16 = vpop.f32.mrb[128].mxu0 }
 0x518   : > { %v7528_v15 = vpop.f32.mrb[129].mxu0  ;;  %v11621_v17 = vadd.f32 %v8318_v49, %v7662_v55 }
 0x519   : > { %v7529_v24 = vadd.f32 %v7528_v15, %v7527_v16  ;;  %v7530_v27 = vpop.f32.mrb[130].mxu0 }
 0x51a   : > { %v7531_v60 = vpop.f32.mrb[131].mxu0  ;;  %v7663_v34 = vpop.f32.mrb[208].mxu1 }
 0x51b   : > { %v8309_v9 = vadd.f32 %v7529_v24, %v11516_v48  ;;  %v7532_v31 = vadd.f32 %v7531_v60, %v7530_v27  ;;  %v7664_v42 = vpop.f32.mrb[209].mxu1 }
 0x51c   : > { %v7665_v22 = vadd.f32 %v7664_v42, %v7663_v34  ;;  %v7666_v51 = vpop.f32.mrb[210].mxu1 }
 0x51d   : > { %v8315_v29 = vadd.f32 %v7532_v31, %v11520_v37  ;;  %v7667_v39 = vpop.f32.mrb[211].mxu1 }
 0x51e   : > { %v7668_v26 = vadd.f32 %v7667_v39, %v7666_v51  ;;  %v11625_v0 = vadd.f32 %v8309_v9, %v7665_v22 }
 0x51f   : > { %v7533_v25 = vpop.f32.mrb[132].mxu0 }
 0x520   : > { %v7534_v53 = vpop.f32.mrb[133].mxu0  ;;  %v11627_v52 = vadd.f32 %v8315_v29, %v7668_v26  ;;  %v11644_v26 = vld [vmem:[%s11739_s4] ss:$0 sm:$0xff] }
 0x521   : > { %v7535_v57 = vadd.f32 %v7534_v53, %v7533_v25  ;;  %v7536_v14 = vpop.f32.mrb[134].mxu0 }
 0x522   : > { %v7537_v8 = vpop.f32.mrb[135].mxu0  ;;  %v7669_v38 = vpop.f32.mrb[212].mxu1 }
 0x523   : > { %v8324_v48 = vadd.f32 %v7535_v57, %v11524_v18  ;;  %v7538_v19 = vadd.f32 %v7537_v8, %v7536_v14  ;;  %v7670_v1 = vpop.f32.mrb[213].mxu1 }
 0x524   : > { %v7671_v44 = vadd.f32 %v7670_v1, %v7669_v38  ;;  %v7672_v6 = vpop.f32.mrb[214].mxu1 }
 0x525   : > { %v8330_v37 = vadd.f32 %v7538_v19, %v11526_v10  ;;  %v7673_v47 = vpop.f32.mrb[215].mxu1 }
 0x526   : > { %v7674_v32 = vadd.f32 %v7673_v47, %v7672_v6  ;;  %v11631_v59 = vadd.f32 %v8324_v48, %v7671_v44 }
 0x527   : > { %v7539_v49 = vpop.f32.mrb[136].mxu0 }
 0x528   : > { %v7540_v28 = vpop.f32.mrb[137].mxu0  ;;  %v11633_v55 = vadd.f32 %v8330_v37, %v7674_v32 }
 0x529   : > { %v7541_v16 = vadd.f32 %v7540_v28, %v7539_v49  ;;  %v7542_v15 = vpop.f32.mrb[138].mxu0 }
 0x52a   : > { %v7543_v24 = vpop.f32.mrb[139].mxu0  ;;  %v7675_v27 = vpop.f32.mrb[216].mxu1 }
 0x52b   : > { %v8321_v18 = vadd.f32 %v7541_v16, %v11530_v33  ;;  %v7544_v60 = vadd.f32 %v7543_v24, %v7542_v15  ;;  %v7676_v34 = vpop.f32.mrb[217].mxu1 }
 0x52c   : > { %v7677_v9 = vadd.f32 %v7676_v34, %v7675_v27  ;;  %v7678_v31 = vpop.f32.mrb[218].mxu1 }
 0x52d   : > { %v8327_v10 = vadd.f32 %v7544_v60, %v11534_v12  ;;  %v7679_v42 = vpop.f32.mrb[219].mxu1 }
 0x52e   : > { %v7680_v22 = vadd.f32 %v7679_v42, %v7678_v31  ;;  %v11637_v51 = vadd.f32 %v8321_v18, %v7677_v9 }
 0x530   : > { %v11639_v29 = vadd.f32 %v8327_v10, %v7680_v22 }
 0x56f   : > { %v8191_v39 = vpop.f32.mrb[44].mxu0 }
 0x570   : > { %v8239_v33 = vadd.f32 %v11548_v61, %v8191_v39  ;;  %v5752_v25 = vpop.f32.mrb[45].mxu0 }
 0x571   : > { %v8242_v53 = vadd.f32 %v11540_v2, %v5752_v25  ;;  %v8192_v57 = vpop.f32.mrb[46].mxu0 }
 0x572   : > { %v5920_v12 = vadd.f32 %v8239_v33, %v11644_v26  ;;  %v8245_v14 = vadd.f32 %v11550_v50, %v8192_v57  ;;  %v5755_v8 = vpop.f32.mrb[47].mxu0 }
 0x573   : > { %v5918_v38 = vadd.f32 %v8242_v53, %v11644_v26  ;;  %v8248_v48 = vadd.f32 %v11542_v23, %v5755_v8 }
 0x574   : > { %v5921_v19 = vadd.f32 %v8245_v14, %v11644_v26  ;;  %v5952_v61 = vmax.f32 %v5920_v12, 0.0 }
 0x575   : > { %v5919_v1 = vadd.f32 %v8248_v48, %v11644_v26  ;;  %v5950_v6 = vmax.f32 %v5918_v38, 0.0 }
 0x576   : > { %v5953_v44 = vmax.f32 %v5921_v19, 0.0 }
 0x577   : > { %v5951_v2 = vmax.f32 %v5919_v1, 0.0  ;;  %v8195_v37 = vpop.f32.mrb[48].mxu0 }
 0x578   : > { %v7087_v47 = vpack.c.bf16 %v5953_v44, %v5952_v61  ;;  %v8251_v32 = vadd.f32 %v11564_v35, %v8195_v37  ;;  %v5768_v50 = vpop.f32.mrb[49].mxu0 }
 0x579   : > { %v7082_v49 = vpack.c.bf16 %v5951_v2, %v5950_v6  ;;  %v8254_v28 = vadd.f32 %v11556_v30, %v5768_v50  ;;  %v8196_v16 = vpop.f32.mrb[50].mxu0 }
 0x57a   : > { %7177 = vst [vmem:[%s8707_s29 + $0x8] sm:$0xff] %v7087_v47   ;;  %v5924_v23 = vadd.f32 %v8251_v32, %v11644_v26  ;;  %v8257_v15 = vadd.f32 %v11566_v4, %v8196_v16  ;;  %v5771_v24 = vpop.f32.mrb[51].mxu0 }
 0x57b   : > { %7083 = vst [vmem:[%s8707_s29] sm:$0xff] %v7082_v49   ;;  %v5922_v27 = vadd.f32 %v8254_v28, %v11644_v26  ;;  %v8260_v18 = vadd.f32 %v11558_v3, %v5771_v24 }
 0x57c   : > { %v5925_v60 = vadd.f32 %v8257_v15, %v11644_v26  ;;  %v5956_v34 = vmax.f32 %v5924_v23, 0.0 }
 0x57d   : > { %v5923_v35 = vadd.f32 %v8260_v18, %v11644_v26  ;;  %v5954_v9 = vmax.f32 %v5922_v27, 0.0 }
 0x57e   : > { %v5957_v30 = vmax.f32 %v5925_v60, 0.0 }
 0x57f   : > { %v5955_v31 = vmax.f32 %v5923_v35, 0.0  ;;  %v8199_v10 = vpop.f32.mrb[52].mxu0 }
 0x580   : > { %v7097_v42 = vpack.c.bf16 %v5957_v30, %v5956_v34  ;;  %v8263_v4 = vadd.f32 %v11577_v20, %v8199_v10  ;;  %v5784_v22 = vpop.f32.mrb[53].mxu0 }
 0x581   : > { %v7092_v39 = vpack.c.bf16 %v5955_v31, %v5954_v9  ;;  %v8266_v33 = vadd.f32 %v11571_v62, %v5784_v22  ;;  %v8200_v25 = vpop.f32.mrb[54].mxu0 }
 0x582   : > { %7179 = vst [vmem:[%s8707_s29 + $0x18] sm:$0xff] %v7097_v42   ;;  %v5928_v3 = vadd.f32 %v8263_v4, %v11644_v26  ;;  %v8269_v53 = vadd.f32 %v11579_v58, %v8200_v25  ;;  %v5787_v57 = vpop.f32.mrb[55].mxu0 }
 0x583   : > { %7178 = vst [vmem:[%s8707_s29 + $0x10] sm:$0xff] %v7092_v39   ;;  %v5926_v12 = vadd.f32 %v8266_v33, %v11644_v26  ;;  %v8272_v14 = vadd.f32 %v11573_v5, %v5787_v57 }
 0x584   : > { %v5929_v8 = vadd.f32 %v8269_v53, %v11644_v26  ;;  %v5960_v38 = vmax.f32 %v5928_v3, 0.0 }
 0x585   : > { %v5927_v20 = vadd.f32 %v8272_v14, %v11644_v26  ;;  %v5958_v48 = vmax.f32 %v5926_v12, 0.0 }
 0x586   : > { %v5961_v62 = vmax.f32 %v5929_v8, 0.0 }
 0x587   : > { %v5959_v19 = vmax.f32 %v5927_v20, 0.0  ;;  %v8203_v1 = vpop.f32.mrb[56].mxu0 }
 0x588   : > { %v7107_v61 = vpack.c.bf16 %v5961_v62, %v5960_v38  ;;  %v8275_v58 = vadd.f32 %v11589_v36, %v8203_v1  ;;  %v5800_v44 = vpop.f32.mrb[57].mxu0 }
 0x589   : > { %v7102_v6 = vpack.c.bf16 %v5959_v19, %v5958_v48  ;;  %v8278_v2 = vadd.f32 %v11583_v56, %v5800_v44  ;;  %v8204_v37 = vpop.f32.mrb[58].mxu0 }
 0x58a   : > { %7181 = vst [vmem:[%s8707_s29 + $0x28] sm:$0xff] %v7107_v61   ;;  %v5932_v5 = vadd.f32 %v8275_v58, %v11644_v26  ;;  %v8281_v47 = vadd.f32 %v11591_v21, %v8204_v37  ;;  %v5803_v32 = vpop.f32.mrb[59].mxu0 }
 0x58b   : > { %7180 = vst [vmem:[%s8707_s29 + $0x20] sm:$0xff] %v7102_v6   ;;  %v5930_v50 = vadd.f32 %v8278_v2, %v11644_v26  ;;  %v8284_v49 = vadd.f32 %v11585_v13, %v5803_v32 }
 0x58c   : > { %v5933_v28 = vadd.f32 %v8281_v47, %v11644_v26  ;;  %v5964_v16 = vmax.f32 %v5932_v5, 0.0 }
 0x58d   : > { %v5931_v36 = vadd.f32 %v8284_v49, %v11644_v26  ;;  %v5962_v23 = vmax.f32 %v5930_v50, 0.0 }
 0x58e   : > { %v5965_v56 = vmax.f32 %v5933_v28, 0.0 }
 0x58f   : > { %v5963_v15 = vmax.f32 %v5931_v36, 0.0  ;;  %v8207_v24 = vpop.f32.mrb[60].mxu0 }
 0x590   : > { %v7117_v27 = vpack.c.bf16 %v5965_v56, %v5964_v16  ;;  %v8287_v21 = vadd.f32 %v11601_v11, %v8207_v24  ;;  %v5816_v18 = vpop.f32.mrb[61].mxu0 }
 0x591   : > { %v7112_v60 = vpack.c.bf16 %v5963_v15, %v5962_v23  ;;  %v8290_v35 = vadd.f32 %v11595_v41, %v5816_v18  ;;  %v8208_v34 = vpop.f32.mrb[62].mxu0 }
 0x592   : > { %7183 = vst [vmem:[%s8707_s29 + $0x38] sm:$0xff] %v7117_v27   ;;  %v5936_v13 = vadd.f32 %v8287_v21, %v11644_v26  ;;  %v8293_v30 = vadd.f32 %v11603_v63, %v8208_v34  ;;  %v5819_v9 = vpop.f32.mrb[63].mxu0 }
 0x593   : > { %7182 = vst [vmem:[%s8707_s29 + $0x30] sm:$0xff] %v7112_v60   ;;  %v5934_v31 = vadd.f32 %v8290_v35, %v11644_v26  ;;  %v8296_v10 = vadd.f32 %v11597_v54, %v5819_v9 }
 0x594   : > { %v5937_v42 = vadd.f32 %v8293_v30, %v11644_v26  ;;  %v5968_v4 = vmax.f32 %v5936_v13, 0.0 }
 0x595   : > { %v5935_v11 = vadd.f32 %v8296_v10, %v11644_v26  ;;  %v5966_v22 = vmax.f32 %v5934_v31, 0.0 }
 0x596   : > { %v5969_v41 = vmax.f32 %v5937_v42, 0.0 }
 0x597   : > { %v5967_v39 = vmax.f32 %v5935_v11, 0.0  ;;  %v8211_v33 = vpop.f32.mrb[64].mxu0 }
 0x598   : > { %v7127_v25 = vpack.c.bf16 %v5969_v41, %v5968_v4  ;;  %v8299_v63 = vadd.f32 %v11613_v43, %v8211_v33  ;;  %v5832_v3 = vpop.f32.mrb[65].mxu0 }
 0x599   : > { %v7122_v53 = vpack.c.bf16 %v5967_v39, %v5966_v22  ;;  %v8302_v57 = vadd.f32 %v11607_v7, %v5832_v3  ;;  %v8212_v12 = vpop.f32.mrb[66].mxu0 }
 0x59a   : > { %7185 = vst [vmem:[%s8707_s29 + $0x48] sm:$0xff] %v7127_v25   ;;  %v5940_v54 = vadd.f32 %v8299_v63, %v11644_v26  ;;  %v8305_v14 = vadd.f32 %v11615_v40, %v8212_v12  ;;  %v5835_v8 = vpop.f32.mrb[67].mxu0 }
 0x59b   : > { %7184 = vst [vmem:[%s8707_s29 + $0x40] sm:$0xff] %v7122_v53   ;;  %v5938_v20 = vadd.f32 %v8302_v57, %v11644_v26  ;;  %v8308_v38 = vadd.f32 %v11609_v45, %v5835_v8 }
 0x59c   : > { %v5941_v62 = vadd.f32 %v8305_v14, %v11644_v26  ;;  %v5972_v48 = vmax.f32 %v5940_v54, 0.0 }
 0x59d   : > { %v5939_v43 = vadd.f32 %v8308_v38, %v11644_v26  ;;  %v5970_v19 = vmax.f32 %v5938_v20, 0.0 }
 0x59e   : > { %v5973_v7 = vmax.f32 %v5941_v62, 0.0 }
 0x59f   : > { %v5971_v1 = vmax.f32 %v5939_v43, 0.0  ;;  %v8215_v61 = vpop.f32.mrb[68].mxu0 }
 0x5a0   : > { %v7137_v58 = vpack.c.bf16 %v5973_v7, %v5972_v48  ;;  %v8311_v40 = vadd.f32 %v11625_v0, %v8215_v61  ;;  %v5848_v44 = vpop.f32.mrb[69].mxu0 }
 0x5a1   : > { %v7132_v6 = vpack.c.bf16 %v5971_v1, %v5970_v19  ;;  %v8314_v2 = vadd.f32 %v11619_v46, %v5848_v44  ;;  %v8216_v37 = vpop.f32.mrb[70].mxu0 }
 0x5a2   : > { %7187 = vst [vmem:[%s8707_s29 + $0x58] sm:$0xff] %v7137_v58   ;;  %v5944_v45 = vadd.f32 %v8311_v40, %v11644_v26  ;;  %v8317_v5 = vadd.f32 %v11627_v52, %v8216_v37  ;;  %v5851_v47 = vpop.f32.mrb[71].mxu0 }
 0x5a3   : > { %7186 = vst [vmem:[%s8707_s29 + $0x50] sm:$0xff] %v7132_v6   ;;  %v5942_v32 = vadd.f32 %v8314_v2, %v11644_v26  ;;  %v8320_v50 = vadd.f32 %v11621_v17, %v5851_v47 }
 0x5a4   : > { %v5945_v49 = vadd.f32 %v8317_v5, %v11644_v26  ;;  %v5976_v28 = vmax.f32 %v5944_v45, 0.0 }
 0x5a5   : > { %v5943_v0 = vadd.f32 %v8320_v50, %v11644_v26  ;;  %v5974_v36 = vmax.f32 %v5942_v32, 0.0 }
 0x5a6   : > { %v5977_v46 = vmax.f32 %v5945_v49, 0.0 }
 0x5a7   : > { %v5975_v16 = vmax.f32 %v5943_v0, 0.0  ;;  %v8219_v56 = vpop.f32.mrb[72].mxu0 }
 0x5a8   : > { %v7147_v23 = vpack.c.bf16 %v5977_v46, %v5976_v28  ;;  %v8323_v52 = vadd.f32 %v11637_v51, %v8219_v56  ;;  %v5864_v15 = vpop.f32.mrb[73].mxu0 }
 0x5a9   : > { %v7142_v24 = vpack.c.bf16 %v5975_v16, %v5974_v36  ;;  %v8326_v27 = vadd.f32 %v11631_v59, %v5864_v15  ;;  %v8220_v21 = vpop.f32.mrb[74].mxu0 }
 0x5aa   : > { %7189 = vst [vmem:[%s8707_s29 + $0x68] sm:$0xff] %v7147_v23   ;;  %v5948_v17 = vadd.f32 %v8323_v52, %v11644_v26  ;;  %v8329_v18 = vadd.f32 %v11639_v29, %v8220_v21  ;;  %v5867_v60 = vpop.f32.mrb[75].mxu0 }
 0x5ab   : > { %7188 = vst [vmem:[%s8707_s29 + $0x60] sm:$0xff] %v7142_v24   ;;  %v5946_v35 = vadd.f32 %v8326_v27, %v11644_v26  ;;  %v8332_v34 = vadd.f32 %v11633_v55, %v5867_v60 }
 0x5ac   : > { %v5949_v51 = vadd.f32 %v8329_v18, %v11644_v26  ;;  %v5980_v30 = vmax.f32 %v5948_v17, 0.0 }
 0x5ad   : > { %v5947_v13 = vadd.f32 %v8332_v34, %v11644_v26  ;;  %v5978_v9 = vmax.f32 %v5946_v35, 0.0 }
 0x5ae   : > { %v5981_v59 = vmax.f32 %v5949_v51, 0.0 }
 0x5af   : > { %v5979_v31 = vmax.f32 %v5947_v13, 0.0 }
 0x5b0   : > { %v7157_v10 = vpack.c.bf16 %v5981_v59, %v5980_v30 }
 0x5b1   : > { %v7152_v42 = vpack.c.bf16 %v5979_v31, %v5978_v9 }
 0x5b2   : > { %7191 = vst [vmem:[%s8707_s29 + $0x78] sm:$0xff] %v7157_v10  }
 0x5b3   : > { %7190 = vst [vmem:[%s8707_s29 + $0x70] sm:$0xff] %v7152_v42  }
 0x5b4 PF: > { %s15_s20 = sadd.s32 1, %s8641_s20   ;;  %s12138_s18 = smov %s8637_s19 }
 0x5b5   : > { %p12_p5 = scmp.ge.s32.totalorder %s15_s20, 4   ;;  %s12139_s19 = smov %s12141_s21 }
 0x5b7   :  { %14 = sbr.rel (!%p12_p5) target bundleno = 2 (0x2), region = 166 }
 0x5be   :  { %6177 = vsyncmov [#allocation3] }
 0x5c1   :  { %s6178_s30 = vpop.sfrf %6177 }
 0x5c2   :  { %p6978_p6 = scmp.ne.s32.totalorder %s6178_s30, 0 }
 0x5c4   :  { %6182 = shalt.err (%p6978_p6)  }
 0x5c5   :  { %6184 = vsyncmov [#allocation3 + $0x1] }
 0x5c8   :  { %s6185_s6 = vpop.sfrf %6184 }
 0x5c9   :  { %p6979_p7 = scmp.ne.s32.totalorder %s6185_s6, 0 }
 0x5cb   :  { %6189 = shalt.err (%p6979_p7)  }

</bundles_post_ra>
